<compile_context>
chip_gen: v6e
topology: v6e:2x2x1
jax: 0.10.0
libtpu: 0.0.40
codegen_flags: <defaults>
</compile_context>

<pallas_src>
import functools
import math

import jax
import jax.numpy as jnp
from jax import lax
from jax.experimental import pallas as pl
from jax.experimental.pallas import tpu as pltpu


# ----------------------------------------------------------------------------
# Fused Pallas kernel: embedding -> L encoder layers -> flatten -> decoder
# ----------------------------------------------------------------------------
def fused_transformer_kernel(
    x_ref,                         # (R, I)   R = block_b * S rows of this grid step
    emb_w_ref, emb_b_ref,          # (I, E), (1, E)
    wqkv_ref, bqkv_ref,            # (L, E, 3E), (L, 1, 3E)   (scale folded into Q columns)
    wo_ref, bo_ref,                # (L, E, E) (= Wo^T), (L, 1, E)
    ln1g_ref, ln1b_ref,            # (L, 1, E), (L, 1, E)
    w1_ref, b1_ref,                # (L, E, F), (L, 1, F)
    w2_ref, b2_ref,                # (L, F, E), (L, 1, E)
    ln2g_ref, ln2b_ref,            # (L, 1, E), (L, 1, E)
    dec_w_ref, dec_b_ref,          # (R, E) (decoder weight tiled per sample), (1, 128)
    mask_ref, seg_ref,             # (R, R) block-diagonal additive mask, (Bt, R) segment-sum matrix
    o_ref,                         # (1, Bt, 128) lane-dense output rows
    *, nheads: int, nlayers: int,
):
    eps = 1e-5
    x = x_ref[...].astype(jnp.float32)            # (R, I)
    E = emb_w_ref.shape[1]
    H = nheads
    dh = E // H

    mask = mask_ref[...][None]                    # (1, R, R): 0 within-sample, -1e30 across samples

    # --- embedding Linear over all block_b*S rows at once ---------------------
    h = jnp.dot(x, emb_w_ref[...], preferred_element_type=jnp.float32) + emb_b_ref[...]   # (R, E)

    # --- encoder stack (post-norm, relu; dropout identity in eval mode) -------
    for l in range(nlayers):   # static unroll: L is small; switch to lax.fori_loop if L grows
        # fused QKV projection: one (R,E)@(E,3E) matmul (1/sqrt(dh) already folded into Q)
        qkv = jnp.dot(h, wqkv_ref[l], preferred_element_type=jnp.float32) + bqkv_ref[l]    # (R, 3E)
        q = qkv[:, :E]
        k = qkv[:, E:2 * E]
        v = qkv[:, 2 * E:]

        # head split: static lane slices stacked into a small head-batch axis -> (H, R, dh)
        qh = jnp.stack([q[:, hh * dh:(hh + 1) * dh] for hh in range(H)], axis=0)
        kh = jnp.stack([k[:, hh * dh:(hh + 1) * dh] for hh in range(H)], axis=0)
        vh = jnp.stack([v[:, hh * dh:(hh + 1) * dh] for hh in range(H)], axis=0)

        # per-sample attention over all R rows with a block-diagonal mask (exact: masked entries
        # underflow to probability 0 after the stable softmax)
        s = jnp.einsum("hrd,htd->hrt", qh, kh, preferred_element_type=jnp.float32) + mask  # (H, R, R)
        s = s - jnp.max(s, axis=-1, keepdims=True)
        p = jnp.exp(s)
        p = p * pl.reciprocal(jnp.sum(p, axis=-1, keepdims=True), approx=True)   # EUP slot
        ctx = jnp.einsum("hrt,htd->hrd", p, vh, preferred_element_type=jnp.float32)        # (H, R, dh)

        # head-concat + single (R,E)@(E,E) output projection
        ctx_cat = jnp.concatenate([ctx[hh] for hh in range(H)], axis=-1)                   # (R, E)
        attn = jnp.dot(ctx_cat, wo_ref[l], preferred_element_type=jnp.float32) + bo_ref[l]

        # residual + LayerNorm 1
        h1 = h + attn
        mu1 = jnp.mean(h1, axis=-1, keepdims=True)
        var1 = jnp.mean((h1 - mu1) ** 2, axis=-1, keepdims=True)
        h1 = (h1 - mu1) * lax.rsqrt(var1 + eps) * ln1g_ref[l] + ln1b_ref[l]

        # feed-forward (relu)
        ff = jnp.dot(h1, w1_ref[l], preferred_element_type=jnp.float32) + b1_ref[l]
        ff = jnp.maximum(ff, 0.0)
        ff = jnp.dot(ff, w2_ref[l], preferred_element_type=jnp.float32) + b2_ref[l]

        # residual + LayerNorm 2
        h2 = h1 + ff
        mu2 = jnp.mean(h2, axis=-1, keepdims=True)
        var2 = jnp.mean((h2 - mu2) ** 2, axis=-1, keepdims=True)
        h = (h2 - mu2) * lax.rsqrt(var2 + eps) * ln2g_ref[l] + ln2b_ref[l]

    # --- flatten + decoder Linear(S*E -> 1), per sample ------------------------
    prod = h * dec_w_ref[...]                                                       # (R, E)
    per_sample = jnp.dot(seg_ref[...], prod, preferred_element_type=jnp.float32)    # (Bt, E): sum rows of each sample
    red = jnp.sum(per_sample, axis=-1, keepdims=True)                               # (Bt, 1)
    o_ref[0] = (red + dec_b_ref[...]).astype(o_ref.dtype)                           # lane-dense (Bt, 128)


# ----------------------------------------------------------------------------
# One-time parameter preprocessing (hoisted out of the forward path)
# ----------------------------------------------------------------------------
def preprocess_params(params, nheads, seq_len):
    """Repack torch-layout params: fused/transposed QKV, transposed Wo/W1/W2, scale folding."""
    E = params["emb_w"].shape[0]
    dh = E // nheads
    scale = 1.0 / math.sqrt(dh)
    f32 = jnp.float32

    def stack(fn):
        return jnp.stack([jnp.asarray(fn(lp), f32) for lp in params["layers"]], axis=0)

    def fused_wqkv(lp):
        w = jnp.asarray(lp["wqkv"], f32)          # (3E, E): rows [Wq; Wk; Wv]
        w = w.at[:E].multiply(scale)              # fold 1/sqrt(dh) into Q weights
        return w.T                                # (E, 3E)

    def fused_bqkv(lp):
        b = jnp.asarray(lp["bqkv"], f32)
        b = b.at[:E].multiply(scale)              # fold 1/sqrt(dh) into Q bias
        return b.reshape(1, 3 * E)

    prep = {
        "emb_w": jnp.asarray(params["emb_w"], f32).T,                    # (I, E)
        "emb_b": jnp.asarray(params["emb_b"], f32).reshape(1, -1),       # (1, E)
        "wqkv": stack(fused_wqkv),                                       # (L, E, 3E)
        "bqkv": stack(fused_bqkv),                                       # (L, 1, 3E)
        "wo": stack(lambda lp: lp["wo"].T),                              # (L, E, E)
        "bo": stack(lambda lp: lp["bo"].reshape(1, -1)),
        "ln1g": stack(lambda lp: lp["ln1g"].reshape(1, -1)),
        "ln1b": stack(lambda lp: lp["ln1b"].reshape(1, -1)),
        "w1": stack(lambda lp: lp["w1"].T),                              # (L, E, F)
        "b1": stack(lambda lp: lp["b1"].reshape(1, -1)),
        "w2": stack(lambda lp: lp["w2"].T),                              # (L, F, E)
        "b2": stack(lambda lp: lp["b2"].reshape(1, -1)),
        "ln2g": stack(lambda lp: lp["ln2g"].reshape(1, -1)),
        "ln2b": stack(lambda lp: lp["ln2b"].reshape(1, -1)),
        "dec_w": jnp.asarray(params["dec_w"], f32).reshape(seq_len, E),  # (S, E)
        "dec_b": jnp.full((1, 128), jnp.asarray(params["dec_b"], f32)[0], f32),
    }
    return prep


# ----------------------------------------------------------------------------
# Wrapper: single pallas_call for the whole forward
# ----------------------------------------------------------------------------
def transformer_regressor_forward(x, prep, nheads, nlayers, block_b=None):
    """Fused Pallas forward. x: (B, S, in_size) -> (B, 1)."""
    B, S, I = x.shape
    E = prep["emb_w"].shape[1]
    F = prep["w1"].shape[2]
    L = nlayers

    if block_b is None:
        block_b = B if B <= 2 else max(1, B // 2)   # keep >=2 grid steps for v7x's 2 TensorCores
    nb = pl.cdiv(B, block_b)
    Bp = nb * block_b
    if Bp != B:   # pad batch (attention is block-diagonal, so padding never leaks into real samples)
        x = jnp.concatenate([x, jnp.zeros((Bp - B, S, I), x.dtype)], axis=0)

    R = block_b * S
    x2 = x.reshape(Bp * S, I).astype(jnp.float32)

    # constants built once in the wrapper (hoisted out of the kernel body)
    dec_w_tiled = jnp.tile(prep["dec_w"], (block_b, 1))                                    # (R, E)
    r_idx = jnp.arange(R) // S
    attn_bias = jnp.where(r_idx[:, None] == r_idx[None, :], 0.0, -1e30).astype(jnp.float32)  # (R, R)
    seg = (jnp.arange(block_b)[:, None] == r_idx[None, :]).astype(jnp.float32)               # (Bt, R)

    def full(shape):
        n = len(shape)
        return pl.BlockSpec(shape, lambda b: (0,) * n)   # weights: same block every step -> VMEM resident

    kernel = functools.partial(fused_transformer_kernel, nheads=nheads, nlayers=nlayers)
    out = pl.pallas_call(
        kernel,
        out_shape=jax.ShapeDtypeStruct((nb, block_b, 128), jnp.float32),
        grid=(nb,),
        in_specs=[
            pl.BlockSpec((R, I), lambda b: (b, 0)),         # block_b samples (R rows) per grid step
            full((I, E)), full((1, E)),
            full((L, E, 3 * E)), full((L, 1, 3 * E)),
            full((L, E, E)), full((L, 1, E)),
            full((L, 1, E)), full((L, 1, E)),
            full((L, E, F)), full((L, 1, F)),
            full((L, F, E)), full((L, 1, E)),
            full((L, 1, E)), full((L, 1, E)),
            full((R, E)), full((1, 128)),
            full((R, R)), full((block_b, R)),
        ],
        out_specs=pl.BlockSpec((1, block_b, 128), lambda b: (b, 0, 0)),
        compiler_params=pltpu.CompilerParams(dimension_semantics=("parallel",)),
    )(
        x2,
        prep["emb_w"], prep["emb_b"],
        prep["wqkv"], prep["bqkv"],
        prep["wo"], prep["bo"],
        prep["ln1g"], prep["ln1b"],
        prep["w1"], prep["b1"], prep["w2"], prep["b2"],
        prep["ln2g"], prep["ln2b"],
        dec_w_tiled, prep["dec_b"],
        attn_bias, seg,
    )
    return out[:, :, 0].reshape(Bp, 1)[:B]     # (B, 1)


# ----------------------------------------------------------------------------
# Pure-JAX reference (same math, for correctness check)
# ----------------------------------------------------------------------------
def _layer_norm(x, g, b, eps=1e-5):
    mu = jnp.mean(x, axis=-1, keepdims=True)
    var = jnp.mean((x - mu) ** 2, axis=-1, keepdims=True)
    return (x - mu) * lax.rsqrt(var + eps) * g + b


def ref_forward(x, params, nheads):
    B, S, I = x.shape
    E = params["emb_w"].shape[0]
    dh = E // nheads
    h = x @ params["emb_w"].T + params["emb_b"]
    for lp in params["layers"]:
        qkv = h @ lp["wqkv"].T + lp["bqkv"]
        q, k, v = qkv[..., :E], qkv[..., E:2 * E], qkv[..., 2 * E:]
        qh = q.reshape(B, S, nheads, dh).transpose(0, 2, 1, 3)
        kh = k.reshape(B, S, nheads, dh).transpose(0, 2, 1, 3)
        vh = v.reshape(B, S, nheads, dh).transpose(0, 2, 1, 3)
        scores = jnp.einsum("bhqd,bhkd->bhqk", qh, kh) / math.sqrt(dh)
        p = jax.nn.softmax(scores, axis=-1)
        attn = jnp.einsum("bhqk,bhkd->bhqd", p, vh).transpose(0, 2, 1, 3).reshape(B, S, E)
        attn = attn @ lp["wo"].T + lp["bo"]
        h1 = _layer_norm(h + attn, lp["ln1g"], lp["ln1b"])
        ff = jax.nn.relu(h1 @ lp["w1"].T + lp["b1"]) @ lp["w2"].T + lp["b2"]
        h = _layer_norm(h1 + ff, lp["ln2g"], lp["ln2b"])
    flat = h.reshape(B, S * E)
    return flat @ params["dec_w"].T + params["dec_b"]


# ----------------------------------------------------------------------------
# Deterministic parameter construction (torch layout)
# ----------------------------------------------------------------------------
def make_params(key, in_size, seq_len, embed_size, nlayers, dim_feedforward):
    keys = iter(jax.random.split(key, 4 + nlayers * 12))

    def nrm(shape, scale=0.05):
        return (scale * jax.random.normal(next(keys), shape)).astype(jnp.float32)

    params = {
        "emb_w": nrm((embed_size, in_size)),
        "emb_b": nrm((embed_size,)),
        "dec_w": nrm((1, seq_len * embed_size)),
        "dec_b": nrm((1,)),
        "layers": [],
    }
    for _ in range(nlayers):
        params["layers"].append({
            "wqkv": nrm((3 * embed_size, embed_size)),
            "bqkv": nrm((3 * embed_size,)),
            "wo": nrm((embed_size, embed_size)),
            "bo": nrm((embed_size,)),
            "ln1g": jnp.ones((embed_size,), jnp.float32),
            "ln1b": jnp.zeros((embed_size,), jnp.float32),
            "w1": nrm((dim_feedforward, embed_size)),
            "b1": nrm((dim_feedforward,)),
            "w2": nrm((embed_size, dim_feedforward)),
            "b2": nrm((embed_size,)),
            "ln2g": jnp.ones((embed_size,), jnp.float32),
            "ln2b": jnp.zeros((embed_size,), jnp.float32),
        })
    return params


if __name__ == "__main__":
    # TransformerRegressor(in_size=16, seq_len=8, embed_size=32,
    #                      encoder_nlayers=2, encoder_nheads=4, dim_feedforward=64)
    in_size, seq_len, embed_size = 16, 8, 32
    nlayers, nheads, dim_ff = 2, 4, 64
    batch, block_b = 8, 4          # 2 grid steps of 4 samples each (keeps both v7x TCs busy)

    key = jax.random.PRNGKey(0)
    k_x, k_p = jax.random.split(key)
    x = jax.random.normal(k_x, (batch, seq_len, in_size), dtype=jnp.float32)
    params = make_params(k_p, in_size, seq_len, embed_size, nlayers, dim_ff)

    prep = preprocess_params(params, nheads, seq_len)          # one-time repack (hoisted out of forward)
    out = transformer_regressor_forward(x, prep, nheads, nlayers, block_b=block_b)
    out = jax.block_until_ready(out)

    ref = ref_forward(x, params, nheads)
    assert out.shape == (batch, 1), out.shape
    # tolerance loosened from 1e-4: softmax denominator now uses the EUP approximate reciprocal
    # (~1e-3-class relative error on the denominator), per the perf review.
    assert jnp.allclose(out, ref, atol=5e-3, rtol=5e-3), (out, ref)
    print("KERNEL_OK")
</pallas_src>

<mosaic_0001>
module attributes {stable_mosaic.version = 11 : i64} {
  func.func @fused_transformer_kernel(%arg0: i32, %arg1: memref<32x16xf32, #tpu.memory_space<vmem>>, %arg2: memref<16x32xf32, #tpu.memory_space<vmem>>, %arg3: memref<1x32xf32, #tpu.memory_space<vmem>>, %arg4: memref<2x32x96xf32, #tpu.memory_space<vmem>>, %arg5: memref<2x1x96xf32, #tpu.memory_space<vmem>>, %arg6: memref<2x32x32xf32, #tpu.memory_space<vmem>>, %arg7: memref<2x1x32xf32, #tpu.memory_space<vmem>>, %arg8: memref<2x1x32xf32, #tpu.memory_space<vmem>>, %arg9: memref<2x1x32xf32, #tpu.memory_space<vmem>>, %arg10: memref<2x32x64xf32, #tpu.memory_space<vmem>>, %arg11: memref<2x1x64xf32, #tpu.memory_space<vmem>>, %arg12: memref<2x64x32xf32, #tpu.memory_space<vmem>>, %arg13: memref<2x1x32xf32, #tpu.memory_space<vmem>>, %arg14: memref<2x1x32xf32, #tpu.memory_space<vmem>>, %arg15: memref<2x1x32xf32, #tpu.memory_space<vmem>>, %arg16: memref<32x32xf32, #tpu.memory_space<vmem>>, %arg17: memref<1x128xf32, #tpu.memory_space<vmem>>, %arg18: memref<32x32xf32, #tpu.memory_space<vmem>>, %arg19: memref<4x32xf32, #tpu.memory_space<vmem>>, %arg20: memref<1x4x128xf32, #tpu.memory_space<vmem>>) attributes {dimension_semantics = [#tpu.dimension_semantics<parallel>], iteration_bounds = array<i64: 2>, scalar_prefetch = 0 : i64, scratch_operands = 0 : i64, tpu.core_type = #tpu.core_type<tc>, window_params = [{transform_indices = @transform_0, window_bounds = array<i64: 32, 16>}, {pipeline_mode = #tpu.pipeline_mode<synchronous>, transform_indices = @transform_1, window_bounds = array<i64: 16, 32>}, {pipeline_mode = #tpu.pipeline_mode<synchronous>, transform_indices = @transform_2, window_bounds = array<i64: 1, 32>}, {pipeline_mode = #tpu.pipeline_mode<synchronous>, transform_indices = @transform_3, window_bounds = array<i64: 2, 32, 96>}, {pipeline_mode = #tpu.pipeline_mode<synchronous>, transform_indices = @transform_4, window_bounds = array<i64: 2, 1, 96>}, {pipeline_mode = #tpu.pipeline_mode<synchronous>, transform_indices = @transform_5, window_bounds = array<i64: 2, 32, 32>}, {pipeline_mode = #tpu.pipeline_mode<synchronous>, transform_indices = @transform_6, window_bounds = array<i64: 2, 1, 32>}, {pipeline_mode = #tpu.pipeline_mode<synchronous>, transform_indices = @transform_7, window_bounds = array<i64: 2, 1, 32>}, {pipeline_mode = #tpu.pipeline_mode<synchronous>, transform_indices = @transform_8, window_bounds = array<i64: 2, 1, 32>}, {pipeline_mode = #tpu.pipeline_mode<synchronous>, transform_indices = @transform_9, window_bounds = array<i64: 2, 32, 64>}, {pipeline_mode = #tpu.pipeline_mode<synchronous>, transform_indices = @transform_10, window_bounds = array<i64: 2, 1, 64>}, {pipeline_mode = #tpu.pipeline_mode<synchronous>, transform_indices = @transform_11, window_bounds = array<i64: 2, 64, 32>}, {pipeline_mode = #tpu.pipeline_mode<synchronous>, transform_indices = @transform_12, window_bounds = array<i64: 2, 1, 32>}, {pipeline_mode = #tpu.pipeline_mode<synchronous>, transform_indices = @transform_13, window_bounds = array<i64: 2, 1, 32>}, {pipeline_mode = #tpu.pipeline_mode<synchronous>, transform_indices = @transform_14, window_bounds = array<i64: 2, 1, 32>}, {pipeline_mode = #tpu.pipeline_mode<synchronous>, transform_indices = @transform_15, window_bounds = array<i64: 32, 32>}, {pipeline_mode = #tpu.pipeline_mode<synchronous>, transform_indices = @transform_16, window_bounds = array<i64: 1, 128>}, {pipeline_mode = #tpu.pipeline_mode<synchronous>, transform_indices = @transform_17, window_bounds = array<i64: 32, 32>}, {pipeline_mode = #tpu.pipeline_mode<synchronous>, transform_indices = @transform_18, window_bounds = array<i64: 4, 32>}, {transform_indices = @transform_19, window_bounds = array<i64: 1, 4, 128>}]} {
    %c0 = arith.constant 0 : index
    %c0_0 = arith.constant 0 : index
    %0 = vector.load %arg1[%c0, %c0_0] : memref<32x16xf32, #tpu.memory_space<vmem>>, vector<32x16xf32>
    %c0_1 = arith.constant 0 : index
    %c0_2 = arith.constant 0 : index
    %1 = vector.load %arg18[%c0_1, %c0_2] : memref<32x32xf32, #tpu.memory_space<vmem>>, vector<32x32xf32>
    %2 = vector.shape_cast %1 : vector<32x32xf32> to vector<1x32x32xf32>
    %c0_3 = arith.constant 0 : index
    %c0_4 = arith.constant 0 : index
    %3 = vector.load %arg2[%c0_3, %c0_4] : memref<16x32xf32, #tpu.memory_space<vmem>>, vector<16x32xf32>
    %cst = arith.constant dense<0.000000e+00> : vector<32x32xf32>
    %4 = tpu.matmul %0, %3, %cst {dimension_numbers = #tpu.dot_dimension_numbers<[1], [0], [0], [1], [0, 0, 1, 1], [], []>} : vector<32x16xf32>, vector<16x32xf32>, vector<32x32xf32> -> vector<32x32xf32>
    %c0_5 = arith.constant 0 : index
    %c0_6 = arith.constant 0 : index
    %5 = vector.load %arg3[%c0_5, %c0_6] : memref<1x32xf32, #tpu.memory_space<vmem>>, vector<1x32xf32>
    %6 = vector.broadcast %5 : vector<1x32xf32> to vector<32x32xf32>
    %7 = arith.addf %4, %6 : vector<32x32xf32>
    %c0_7 = arith.constant 0 : index
    %c0_8 = arith.constant 0 : index
    %c0_9 = arith.constant 0 : index
    %8 = vector.load %arg4[%c0_7, %c0_8, %c0_9] : memref<2x32x96xf32, #tpu.memory_space<vmem>>, vector<1x32x96xf32>
    %9 = vector.shape_cast %8 : vector<1x32x96xf32> to vector<32x96xf32>
    %cst_10 = arith.constant dense<0.000000e+00> : vector<32x96xf32>
    %10 = tpu.matmul %7, %9, %cst_10 {dimension_numbers = #tpu.dot_dimension_numbers<[1], [0], [0], [1], [0, 0, 1, 1], [], []>} : vector<32x32xf32>, vector<32x96xf32>, vector<32x96xf32> -> vector<32x96xf32>
    %c0_11 = arith.constant 0 : index
    %c0_12 = arith.constant 0 : index
    %c0_13 = arith.constant 0 : index
    %11 = vector.load %arg5[%c0_11, %c0_12, %c0_13] : memref<2x1x96xf32, #tpu.memory_space<vmem>>, vector<1x1x96xf32>
    %12 = vector.shape_cast %11 : vector<1x1x96xf32> to vector<1x96xf32>
    %13 = vector.broadcast %12 : vector<1x96xf32> to vector<32x96xf32>
    %14 = arith.addf %10, %13 : vector<32x96xf32>
    %15 = vector.extract_strided_slice %14 {offsets = [0, 0], sizes = [32, 32], strides = [1, 1]} : vector<32x96xf32> to vector<32x32xf32>
    %16 = vector.extract_strided_slice %14 {offsets = [0, 32], sizes = [32, 32], strides = [1, 1]} : vector<32x96xf32> to vector<32x32xf32>
    %17 = vector.extract_strided_slice %14 {offsets = [0, 64], sizes = [32, 32], strides = [1, 1]} : vector<32x96xf32> to vector<32x32xf32>
    %18 = vector.extract_strided_slice %15 {offsets = [0, 0], sizes = [32, 8], strides = [1, 1]} : vector<32x32xf32> to vector<32x8xf32>
    %19 = vector.extract_strided_slice %15 {offsets = [0, 8], sizes = [32, 8], strides = [1, 1]} : vector<32x32xf32> to vector<32x8xf32>
    %20 = vector.extract_strided_slice %15 {offsets = [0, 16], sizes = [32, 8], strides = [1, 1]} : vector<32x32xf32> to vector<32x8xf32>
    %21 = vector.extract_strided_slice %15 {offsets = [0, 24], sizes = [32, 8], strides = [1, 1]} : vector<32x32xf32> to vector<32x8xf32>
    %22 = vector.shape_cast %18 : vector<32x8xf32> to vector<1x32x8xf32>
    %23 = vector.shape_cast %19 : vector<32x8xf32> to vector<1x32x8xf32>
    %24 = vector.shape_cast %20 : vector<32x8xf32> to vector<1x32x8xf32>
    %25 = vector.shape_cast %21 : vector<32x8xf32> to vector<1x32x8xf32>
    %26 = tpu.concatenate %22, %23, %24, %25 in 0 : vector<1x32x8xf32>, vector<1x32x8xf32>, vector<1x32x8xf32>, vector<1x32x8xf32> -> vector<4x32x8xf32>
    %27 = vector.extract_strided_slice %16 {offsets = [0, 0], sizes = [32, 8], strides = [1, 1]} : vector<32x32xf32> to vector<32x8xf32>
    %28 = vector.extract_strided_slice %16 {offsets = [0, 8], sizes = [32, 8], strides = [1, 1]} : vector<32x32xf32> to vector<32x8xf32>
    %29 = vector.extract_strided_slice %16 {offsets = [0, 16], sizes = [32, 8], strides = [1, 1]} : vector<32x32xf32> to vector<32x8xf32>
    %30 = vector.extract_strided_slice %16 {offsets = [0, 24], sizes = [32, 8], strides = [1, 1]} : vector<32x32xf32> to vector<32x8xf32>
    %31 = vector.shape_cast %27 : vector<32x8xf32> to vector<1x32x8xf32>
    %32 = vector.shape_cast %28 : vector<32x8xf32> to vector<1x32x8xf32>
    %33 = vector.shape_cast %29 : vector<32x8xf32> to vector<1x32x8xf32>
    %34 = vector.shape_cast %30 : vector<32x8xf32> to vector<1x32x8xf32>
    %35 = tpu.concatenate %31, %32, %33, %34 in 0 : vector<1x32x8xf32>, vector<1x32x8xf32>, vector<1x32x8xf32>, vector<1x32x8xf32> -> vector<4x32x8xf32>
    %36 = vector.extract_strided_slice %17 {offsets = [0, 0], sizes = [32, 8], strides = [1, 1]} : vector<32x32xf32> to vector<32x8xf32>
    %37 = vector.extract_strided_slice %17 {offsets = [0, 8], sizes = [32, 8], strides = [1, 1]} : vector<32x32xf32> to vector<32x8xf32>
    %38 = vector.extract_strided_slice %17 {offsets = [0, 16], sizes = [32, 8], strides = [1, 1]} : vector<32x32xf32> to vector<32x8xf32>
    %39 = vector.extract_strided_slice %17 {offsets = [0, 24], sizes = [32, 8], strides = [1, 1]} : vector<32x32xf32> to vector<32x8xf32>
    %40 = vector.shape_cast %36 : vector<32x8xf32> to vector<1x32x8xf32>
    %41 = vector.shape_cast %37 : vector<32x8xf32> to vector<1x32x8xf32>
    %42 = vector.shape_cast %38 : vector<32x8xf32> to vector<1x32x8xf32>
    %43 = vector.shape_cast %39 : vector<32x8xf32> to vector<1x32x8xf32>
    %44 = tpu.concatenate %40, %41, %42, %43 in 0 : vector<1x32x8xf32>, vector<1x32x8xf32>, vector<1x32x8xf32>, vector<1x32x8xf32> -> vector<4x32x8xf32>
    "tpu.trace_start"() <{level = 10 : i32, message = "hrd,htd->hrt"}> : () -> ()
    %cst_14 = arith.constant dense<0.000000e+00> : vector<4x32x32xf32>
    %45 = tpu.matmul %26, %35, %cst_14 {dimension_numbers = #tpu.dot_dimension_numbers<[2], [2], [1], [1], [0, 0, 0, 1, 1, 1], [0], [0]>} : vector<4x32x8xf32>, vector<4x32x8xf32>, vector<4x32x32xf32> -> vector<4x32x32xf32>
    "tpu.trace_stop"() : () -> ()
    %46 = vector.broadcast %2 : vector<1x32x32xf32> to vector<4x32x32xf32>
    %47 = arith.addf %45, %46 : vector<4x32x32xf32>
    %cst_15 = arith.constant dense<0xFF800000> : vector<4x32xf32>
    %48 = vector.multi_reduction <maximumf>, %47, %cst_15 [2] : vector<4x32x32xf32> to vector<4x32xf32>
    %49 = vector.shape_cast %48 : vector<4x32xf32> to vector<4x32x1xf32>
    %50 = vector.broadcast %49 : vector<4x32x1xf32> to vector<4x32x32xf32>
    %51 = arith.subf %47, %50 : vector<4x32x32xf32>
    %52 = math.exp %51 : vector<4x32x32xf32>
    %cst_16 = arith.constant dense<0.000000e+00> : vector<4x32xf32>
    %53 = vector.multi_reduction <add>, %52, %cst_16 [2] : vector<4x32x32xf32> to vector<4x32xf32>
    %54 = vector.shape_cast %53 : vector<4x32xf32> to vector<4x32x1xf32>
    %55 = tpu.reciprocal %54 {approx = true} : vector<4x32x1xf32> -> vector<4x32x1xf32>
    %56 = vector.broadcast %55 : vector<4x32x1xf32> to vector<4x32x32xf32>
    %57 = arith.mulf %52, %56 : vector<4x32x32xf32>
    "tpu.trace_start"() <{level = 10 : i32, message = "hrt,htd->hrd"}> : () -> ()
    %cst_17 = arith.constant dense<0.000000e+00> : vector<4x32x8xf32>
    %58 = tpu.matmul %57, %44, %cst_17 {dimension_numbers = #tpu.dot_dimension_numbers<[2], [1], [1], [2], [0, 0, 0, 1, 1, 2], [0], [0]>} : vector<4x32x32xf32>, vector<4x32x8xf32>, vector<4x32x8xf32> -> vector<4x32x8xf32>
    "tpu.trace_stop"() : () -> ()
    %59 = vector.extract_strided_slice %58 {offsets = [0, 0, 0], sizes = [1, 32, 8], strides = [1, 1, 1]} : vector<4x32x8xf32> to vector<1x32x8xf32>
    %60 = vector.shape_cast %59 : vector<1x32x8xf32> to vector<32x8xf32>
    %61 = vector.extract_strided_slice %58 {offsets = [1, 0, 0], sizes = [1, 32, 8], strides = [1, 1, 1]} : vector<4x32x8xf32> to vector<1x32x8xf32>
    %62 = vector.shape_cast %61 : vector<1x32x8xf32> to vector<32x8xf32>
    %63 = vector.extract_strided_slice %58 {offsets = [2, 0, 0], sizes = [1, 32, 8], strides = [1, 1, 1]} : vector<4x32x8xf32> to vector<1x32x8xf32>
    %64 = vector.shape_cast %63 : vector<1x32x8xf32> to vector<32x8xf32>
    %65 = vector.extract_strided_slice %58 {offsets = [3, 0, 0], sizes = [1, 32, 8], strides = [1, 1, 1]} : vector<4x32x8xf32> to vector<1x32x8xf32>
    %66 = vector.shape_cast %65 : vector<1x32x8xf32> to vector<32x8xf32>
    %67 = tpu.concatenate %60, %62, %64, %66 in 1 : vector<32x8xf32>, vector<32x8xf32>, vector<32x8xf32>, vector<32x8xf32> -> vector<32x32xf32>
    %c0_18 = arith.constant 0 : index
    %c0_19 = arith.constant 0 : index
    %c0_20 = arith.constant 0 : index
    %68 = vector.load %arg6[%c0_18, %c0_19, %c0_20] : memref<2x32x32xf32, #tpu.memory_space<vmem>>, vector<1x32x32xf32>
    %69 = vector.shape_cast %68 : vector<1x32x32xf32> to vector<32x32xf32>
    %cst_21 = arith.constant dense<0.000000e+00> : vector<32x32xf32>
    %70 = tpu.matmul %67, %69, %cst_21 {dimension_numbers = #tpu.dot_dimension_numbers<[1], [0], [0], [1], [0, 0, 1, 1], [], []>} : vector<32x32xf32>, vector<32x32xf32>, vector<32x32xf32> -> vector<32x32xf32>
    %c0_22 = arith.constant 0 : index
    %c0_23 = arith.constant 0 : index
    %c0_24 = arith.constant 0 : index
    %71 = vector.load %arg7[%c0_22, %c0_23, %c0_24] : memref<2x1x32xf32, #tpu.memory_space<vmem>>, vector<1x1x32xf32>
    %72 = vector.shape_cast %71 : vector<1x1x32xf32> to vector<1x32xf32>
    %73 = vector.broadcast %72 : vector<1x32xf32> to vector<32x32xf32>
    %74 = arith.addf %70, %73 : vector<32x32xf32>
    %75 = arith.addf %7, %74 : vector<32x32xf32>
    %cst_25 = arith.constant dense<0.000000e+00> : vector<32xf32>
    %76 = vector.multi_reduction <add>, %75, %cst_25 [1] : vector<32x32xf32> to vector<32xf32>
    %77 = vector.shape_cast %76 : vector<32xf32> to vector<32x1xf32>
    %cst_26 = arith.constant 3.200000e+01 : f32
    %78 = vector.broadcast %cst_26 : f32 to vector<32x1xf32>
    %79 = arith.divf %77, %78 : vector<32x1xf32>
    %80 = vector.broadcast %79 : vector<32x1xf32> to vector<32x32xf32>
    %81 = arith.subf %75, %80 : vector<32x32xf32>
    %82 = arith.mulf %81, %81 : vector<32x32xf32>
    %cst_27 = arith.constant dense<0.000000e+00> : vector<32xf32>
    %83 = vector.multi_reduction <add>, %82, %cst_27 [1] : vector<32x32xf32> to vector<32xf32>
    %84 = vector.shape_cast %83 : vector<32xf32> to vector<32x1xf32>
    %cst_28 = arith.constant 3.200000e+01 : f32
    %85 = vector.broadcast %cst_28 : f32 to vector<32x1xf32>
    %86 = arith.divf %84, %85 : vector<32x1xf32>
    %87 = vector.broadcast %79 : vector<32x1xf32> to vector<32x32xf32>
    %88 = arith.subf %75, %87 : vector<32x32xf32>
    %cst_29 = arith.constant 9.99999974E-6 : f32
    %89 = vector.broadcast %cst_29 : f32 to vector<32x1xf32>
    %90 = arith.addf %86, %89 : vector<32x1xf32>
    %91 = math.rsqrt %90 : vector<32x1xf32>
    %92 = vector.broadcast %91 : vector<32x1xf32> to vector<32x32xf32>
    %93 = arith.mulf %88, %92 : vector<32x32xf32>
    %c0_30 = arith.constant 0 : index
    %c0_31 = arith.constant 0 : index
    %c0_32 = arith.constant 0 : index
    %94 = vector.load %arg8[%c0_30, %c0_31, %c0_32] : memref<2x1x32xf32, #tpu.memory_space<vmem>>, vector<1x1x32xf32>
    %95 = vector.shape_cast %94 : vector<1x1x32xf32> to vector<1x32xf32>
    %96 = vector.broadcast %95 : vector<1x32xf32> to vector<32x32xf32>
    %97 = arith.mulf %93, %96 : vector<32x32xf32>
    %c0_33 = arith.constant 0 : index
    %c0_34 = arith.constant 0 : index
    %c0_35 = arith.constant 0 : index
    %98 = vector.load %arg9[%c0_33, %c0_34, %c0_35] : memref<2x1x32xf32, #tpu.memory_space<vmem>>, vector<1x1x32xf32>
    %99 = vector.shape_cast %98 : vector<1x1x32xf32> to vector<1x32xf32>
    %100 = vector.broadcast %99 : vector<1x32xf32> to vector<32x32xf32>
    %101 = arith.addf %97, %100 : vector<32x32xf32>
    %c0_36 = arith.constant 0 : index
    %c0_37 = arith.constant 0 : index
    %c0_38 = arith.constant 0 : index
    %102 = vector.load %arg10[%c0_36, %c0_37, %c0_38] : memref<2x32x64xf32, #tpu.memory_space<vmem>>, vector<1x32x64xf32>
    %103 = vector.shape_cast %102 : vector<1x32x64xf32> to vector<32x64xf32>
    %cst_39 = arith.constant dense<0.000000e+00> : vector<32x64xf32>
    %104 = tpu.matmul %101, %103, %cst_39 {dimension_numbers = #tpu.dot_dimension_numbers<[1], [0], [0], [1], [0, 0, 1, 1], [], []>} : vector<32x32xf32>, vector<32x64xf32>, vector<32x64xf32> -> vector<32x64xf32>
    %c0_40 = arith.constant 0 : index
    %c0_41 = arith.constant 0 : index
    %c0_42 = arith.constant 0 : index
    %105 = vector.load %arg11[%c0_40, %c0_41, %c0_42] : memref<2x1x64xf32, #tpu.memory_space<vmem>>, vector<1x1x64xf32>
    %106 = vector.shape_cast %105 : vector<1x1x64xf32> to vector<1x64xf32>
    %107 = vector.broadcast %106 : vector<1x64xf32> to vector<32x64xf32>
    %108 = arith.addf %104, %107 : vector<32x64xf32>
    %cst_43 = arith.constant 0.000000e+00 : f32
    %109 = vector.broadcast %cst_43 : f32 to vector<32x64xf32>
    %110 = arith.maximumf %108, %109 : vector<32x64xf32>
    %c0_44 = arith.constant 0 : index
    %c0_45 = arith.constant 0 : index
    %c0_46 = arith.constant 0 : index
    %111 = vector.load %arg12[%c0_44, %c0_45, %c0_46] : memref<2x64x32xf32, #tpu.memory_space<vmem>>, vector<1x64x32xf32>
    %112 = vector.shape_cast %111 : vector<1x64x32xf32> to vector<64x32xf32>
    %cst_47 = arith.constant dense<0.000000e+00> : vector<32x32xf32>
    %113 = tpu.matmul %110, %112, %cst_47 {dimension_numbers = #tpu.dot_dimension_numbers<[1], [0], [0], [1], [0, 0, 1, 1], [], []>} : vector<32x64xf32>, vector<64x32xf32>, vector<32x32xf32> -> vector<32x32xf32>
    %c0_48 = arith.constant 0 : index
    %c0_49 = arith.constant 0 : index
    %c0_50 = arith.constant 0 : index
    %114 = vector.load %arg13[%c0_48, %c0_49, %c0_50] : memref<2x1x32xf32, #tpu.memory_space<vmem>>, vector<1x1x32xf32>
    %115 = vector.shape_cast %114 : vector<1x1x32xf32> to vector<1x32xf32>
    %116 = vector.broadcast %115 : vector<1x32xf32> to vector<32x32xf32>
    %117 = arith.addf %113, %116 : vector<32x32xf32>
    %118 = arith.addf %101, %117 : vector<32x32xf32>
    %cst_51 = arith.constant dense<0.000000e+00> : vector<32xf32>
    %119 = vector.multi_reduction <add>, %118, %cst_51 [1] : vector<32x32xf32> to vector<32xf32>
    %120 = vector.shape_cast %119 : vector<32xf32> to vector<32x1xf32>
    %cst_52 = arith.constant 3.200000e+01 : f32
    %121 = vector.broadcast %cst_52 : f32 to vector<32x1xf32>
    %122 = arith.divf %120, %121 : vector<32x1xf32>
    %123 = vector.broadcast %122 : vector<32x1xf32> to vector<32x32xf32>
    %124 = arith.subf %118, %123 : vector<32x32xf32>
    %125 = arith.mulf %124, %124 : vector<32x32xf32>
    %cst_53 = arith.constant dense<0.000000e+00> : vector<32xf32>
    %126 = vector.multi_reduction <add>, %125, %cst_53 [1] : vector<32x32xf32> to vector<32xf32>
    %127 = vector.shape_cast %126 : vector<32xf32> to vector<32x1xf32>
    %cst_54 = arith.constant 3.200000e+01 : f32
    %128 = vector.broadcast %cst_54 : f32 to vector<32x1xf32>
    %129 = arith.divf %127, %128 : vector<32x1xf32>
    %130 = vector.broadcast %122 : vector<32x1xf32> to vector<32x32xf32>
    %131 = arith.subf %118, %130 : vector<32x32xf32>
    %cst_55 = arith.constant 9.99999974E-6 : f32
    %132 = vector.broadcast %cst_55 : f32 to vector<32x1xf32>
    %133 = arith.addf %129, %132 : vector<32x1xf32>
    %134 = math.rsqrt %133 : vector<32x1xf32>
    %135 = vector.broadcast %134 : vector<32x1xf32> to vector<32x32xf32>
    %136 = arith.mulf %131, %135 : vector<32x32xf32>
    %c0_56 = arith.constant 0 : index
    %c0_57 = arith.constant 0 : index
    %c0_58 = arith.constant 0 : index
    %137 = vector.load %arg14[%c0_56, %c0_57, %c0_58] : memref<2x1x32xf32, #tpu.memory_space<vmem>>, vector<1x1x32xf32>
    %138 = vector.shape_cast %137 : vector<1x1x32xf32> to vector<1x32xf32>
    %139 = vector.broadcast %138 : vector<1x32xf32> to vector<32x32xf32>
    %140 = arith.mulf %136, %139 : vector<32x32xf32>
    %c0_59 = arith.constant 0 : index
    %c0_60 = arith.constant 0 : index
    %c0_61 = arith.constant 0 : index
    %141 = vector.load %arg15[%c0_59, %c0_60, %c0_61] : memref<2x1x32xf32, #tpu.memory_space<vmem>>, vector<1x1x32xf32>
    %142 = vector.shape_cast %141 : vector<1x1x32xf32> to vector<1x32xf32>
    %143 = vector.broadcast %142 : vector<1x32xf32> to vector<32x32xf32>
    %144 = arith.addf %140, %143 : vector<32x32xf32>
    %c1 = arith.constant 1 : index
    %c0_62 = arith.constant 0 : index
    %c0_63 = arith.constant 0 : index
    %145 = vector.load %arg4[%c1, %c0_62, %c0_63] : memref<2x32x96xf32, #tpu.memory_space<vmem>>, vector<1x32x96xf32>
    %146 = vector.shape_cast %145 : vector<1x32x96xf32> to vector<32x96xf32>
    %cst_64 = arith.constant dense<0.000000e+00> : vector<32x96xf32>
    %147 = tpu.matmul %144, %146, %cst_64 {dimension_numbers = #tpu.dot_dimension_numbers<[1], [0], [0], [1], [0, 0, 1, 1], [], []>} : vector<32x32xf32>, vector<32x96xf32>, vector<32x96xf32> -> vector<32x96xf32>
    %c1_65 = arith.constant 1 : index
    %c0_66 = arith.constant 0 : index
    %c0_67 = arith.constant 0 : index
    %148 = vector.load %arg5[%c1_65, %c0_66, %c0_67] : memref<2x1x96xf32, #tpu.memory_space<vmem>>, vector<1x1x96xf32>
    %149 = vector.shape_cast %148 : vector<1x1x96xf32> to vector<1x96xf32>
    %150 = vector.broadcast %149 : vector<1x96xf32> to vector<32x96xf32>
    %151 = arith.addf %147, %150 : vector<32x96xf32>
    %152 = vector.extract_strided_slice %151 {offsets = [0, 0], sizes = [32, 32], strides = [1, 1]} : vector<32x96xf32> to vector<32x32xf32>
    %153 = vector.extract_strided_slice %151 {offsets = [0, 32], sizes = [32, 32], strides = [1, 1]} : vector<32x96xf32> to vector<32x32xf32>
    %154 = vector.extract_strided_slice %151 {offsets = [0, 64], sizes = [32, 32], strides = [1, 1]} : vector<32x96xf32> to vector<32x32xf32>
    %155 = vector.extract_strided_slice %152 {offsets = [0, 0], sizes = [32, 8], strides = [1, 1]} : vector<32x32xf32> to vector<32x8xf32>
    %156 = vector.extract_strided_slice %152 {offsets = [0, 8], sizes = [32, 8], strides = [1, 1]} : vector<32x32xf32> to vector<32x8xf32>
    %157 = vector.extract_strided_slice %152 {offsets = [0, 16], sizes = [32, 8], strides = [1, 1]} : vector<32x32xf32> to vector<32x8xf32>
    %158 = vector.extract_strided_slice %152 {offsets = [0, 24], sizes = [32, 8], strides = [1, 1]} : vector<32x32xf32> to vector<32x8xf32>
    %159 = vector.shape_cast %155 : vector<32x8xf32> to vector<1x32x8xf32>
    %160 = vector.shape_cast %156 : vector<32x8xf32> to vector<1x32x8xf32>
    %161 = vector.shape_cast %157 : vector<32x8xf32> to vector<1x32x8xf32>
    %162 = vector.shape_cast %158 : vector<32x8xf32> to vector<1x32x8xf32>
    %163 = tpu.concatenate %159, %160, %161, %162 in 0 : vector<1x32x8xf32>, vector<1x32x8xf32>, vector<1x32x8xf32>, vector<1x32x8xf32> -> vector<4x32x8xf32>
    %164 = vector.extract_strided_slice %153 {offsets = [0, 0], sizes = [32, 8], strides = [1, 1]} : vector<32x32xf32> to vector<32x8xf32>
    %165 = vector.extract_strided_slice %153 {offsets = [0, 8], sizes = [32, 8], strides = [1, 1]} : vector<32x32xf32> to vector<32x8xf32>
    %166 = vector.extract_strided_slice %153 {offsets = [0, 16], sizes = [32, 8], strides = [1, 1]} : vector<32x32xf32> to vector<32x8xf32>
    %167 = vector.extract_strided_slice %153 {offsets = [0, 24], sizes = [32, 8], strides = [1, 1]} : vector<32x32xf32> to vector<32x8xf32>
    %168 = vector.shape_cast %164 : vector<32x8xf32> to vector<1x32x8xf32>
    %169 = vector.shape_cast %165 : vector<32x8xf32> to vector<1x32x8xf32>
    %170 = vector.shape_cast %166 : vector<32x8xf32> to vector<1x32x8xf32>
    %171 = vector.shape_cast %167 : vector<32x8xf32> to vector<1x32x8xf32>
    %172 = tpu.concatenate %168, %169, %170, %171 in 0 : vector<1x32x8xf32>, vector<1x32x8xf32>, vector<1x32x8xf32>, vector<1x32x8xf32> -> vector<4x32x8xf32>
    %173 = vector.extract_strided_slice %154 {offsets = [0, 0], sizes = [32, 8], strides = [1, 1]} : vector<32x32xf32> to vector<32x8xf32>
    %174 = vector.extract_strided_slice %154 {offsets = [0, 8], sizes = [32, 8], strides = [1, 1]} : vector<32x32xf32> to vector<32x8xf32>
    %175 = vector.extract_strided_slice %154 {offsets = [0, 16], sizes = [32, 8], strides = [1, 1]} : vector<32x32xf32> to vector<32x8xf32>
    %176 = vector.extract_strided_slice %154 {offsets = [0, 24], sizes = [32, 8], strides = [1, 1]} : vector<32x32xf32> to vector<32x8xf32>
    %177 = vector.shape_cast %173 : vector<32x8xf32> to vector<1x32x8xf32>
    %178 = vector.shape_cast %174 : vector<32x8xf32> to vector<1x32x8xf32>
    %179 = vector.shape_cast %175 : vector<32x8xf32> to vector<1x32x8xf32>
    %180 = vector.shape_cast %176 : vector<32x8xf32> to vector<1x32x8xf32>
    %181 = tpu.concatenate %177, %178, %179, %180 in 0 : vector<1x32x8xf32>, vector<1x32x8xf32>, vector<1x32x8xf32>, vector<1x32x8xf32> -> vector<4x32x8xf32>
    "tpu.trace_start"() <{level = 10 : i32, message = "hrd,htd->hrt"}> : () -> ()
    %cst_68 = arith.constant dense<0.000000e+00> : vector<4x32x32xf32>
    %182 = tpu.matmul %163, %172, %cst_68 {dimension_numbers = #tpu.dot_dimension_numbers<[2], [2], [1], [1], [0, 0, 0, 1, 1, 1], [0], [0]>} : vector<4x32x8xf32>, vector<4x32x8xf32>, vector<4x32x32xf32> -> vector<4x32x32xf32>
    "tpu.trace_stop"() : () -> ()
    %183 = vector.broadcast %2 : vector<1x32x32xf32> to vector<4x32x32xf32>
    %184 = arith.addf %182, %183 : vector<4x32x32xf32>
    %cst_69 = arith.constant dense<0xFF800000> : vector<4x32xf32>
    %185 = vector.multi_reduction <maximumf>, %184, %cst_69 [2] : vector<4x32x32xf32> to vector<4x32xf32>
    %186 = vector.shape_cast %185 : vector<4x32xf32> to vector<4x32x1xf32>
    %187 = vector.broadcast %186 : vector<4x32x1xf32> to vector<4x32x32xf32>
    %188 = arith.subf %184, %187 : vector<4x32x32xf32>
    %189 = math.exp %188 : vector<4x32x32xf32>
    %cst_70 = arith.constant dense<0.000000e+00> : vector<4x32xf32>
    %190 = vector.multi_reduction <add>, %189, %cst_70 [2] : vector<4x32x32xf32> to vector<4x32xf32>
    %191 = vector.shape_cast %190 : vector<4x32xf32> to vector<4x32x1xf32>
    %192 = tpu.reciprocal %191 {approx = true} : vector<4x32x1xf32> -> vector<4x32x1xf32>
    %193 = vector.broadcast %192 : vector<4x32x1xf32> to vector<4x32x32xf32>
    %194 = arith.mulf %189, %193 : vector<4x32x32xf32>
    "tpu.trace_start"() <{level = 10 : i32, message = "hrt,htd->hrd"}> : () -> ()
    %cst_71 = arith.constant dense<0.000000e+00> : vector<4x32x8xf32>
    %195 = tpu.matmul %194, %181, %cst_71 {dimension_numbers = #tpu.dot_dimension_numbers<[2], [1], [1], [2], [0, 0, 0, 1, 1, 2], [0], [0]>} : vector<4x32x32xf32>, vector<4x32x8xf32>, vector<4x32x8xf32> -> vector<4x32x8xf32>
    "tpu.trace_stop"() : () -> ()
    %196 = vector.extract_strided_slice %195 {offsets = [0, 0, 0], sizes = [1, 32, 8], strides = [1, 1, 1]} : vector<4x32x8xf32> to vector<1x32x8xf32>
    %197 = vector.shape_cast %196 : vector<1x32x8xf32> to vector<32x8xf32>
    %198 = vector.extract_strided_slice %195 {offsets = [1, 0, 0], sizes = [1, 32, 8], strides = [1, 1, 1]} : vector<4x32x8xf32> to vector<1x32x8xf32>
    %199 = vector.shape_cast %198 : vector<1x32x8xf32> to vector<32x8xf32>
    %200 = vector.extract_strided_slice %195 {offsets = [2, 0, 0], sizes = [1, 32, 8], strides = [1, 1, 1]} : vector<4x32x8xf32> to vector<1x32x8xf32>
    %201 = vector.shape_cast %200 : vector<1x32x8xf32> to vector<32x8xf32>
    %202 = vector.extract_strided_slice %195 {offsets = [3, 0, 0], sizes = [1, 32, 8], strides = [1, 1, 1]} : vector<4x32x8xf32> to vector<1x32x8xf32>
    %203 = vector.shape_cast %202 : vector<1x32x8xf32> to vector<32x8xf32>
    %204 = tpu.concatenate %197, %199, %201, %203 in 1 : vector<32x8xf32>, vector<32x8xf32>, vector<32x8xf32>, vector<32x8xf32> -> vector<32x32xf32>
    %c1_72 = arith.constant 1 : index
    %c0_73 = arith.constant 0 : index
    %c0_74 = arith.constant 0 : index
    %205 = vector.load %arg6[%c1_72, %c0_73, %c0_74] : memref<2x32x32xf32, #tpu.memory_space<vmem>>, vector<1x32x32xf32>
    %206 = vector.shape_cast %205 : vector<1x32x32xf32> to vector<32x32xf32>
    %cst_75 = arith.constant dense<0.000000e+00> : vector<32x32xf32>
    %207 = tpu.matmul %204, %206, %cst_75 {dimension_numbers = #tpu.dot_dimension_numbers<[1], [0], [0], [1], [0, 0, 1, 1], [], []>} : vector<32x32xf32>, vector<32x32xf32>, vector<32x32xf32> -> vector<32x32xf32>
    %c1_76 = arith.constant 1 : index
    %c0_77 = arith.constant 0 : index
    %c0_78 = arith.constant 0 : index
    %208 = vector.load %arg7[%c1_76, %c0_77, %c0_78] : memref<2x1x32xf32, #tpu.memory_space<vmem>>, vector<1x1x32xf32>
    %209 = vector.shape_cast %208 : vector<1x1x32xf32> to vector<1x32xf32>
    %210 = vector.broadcast %209 : vector<1x32xf32> to vector<32x32xf32>
    %211 = arith.addf %207, %210 : vector<32x32xf32>
    %212 = arith.addf %144, %211 : vector<32x32xf32>
    %cst_79 = arith.constant dense<0.000000e+00> : vector<32xf32>
    %213 = vector.multi_reduction <add>, %212, %cst_79 [1] : vector<32x32xf32> to vector<32xf32>
    %214 = vector.shape_cast %213 : vector<32xf32> to vector<32x1xf32>
    %cst_80 = arith.constant 3.200000e+01 : f32
    %215 = vector.broadcast %cst_80 : f32 to vector<32x1xf32>
    %216 = arith.divf %214, %215 : vector<32x1xf32>
    %217 = vector.broadcast %216 : vector<32x1xf32> to vector<32x32xf32>
    %218 = arith.subf %212, %217 : vector<32x32xf32>
    %219 = arith.mulf %218, %218 : vector<32x32xf32>
    %cst_81 = arith.constant dense<0.000000e+00> : vector<32xf32>
    %220 = vector.multi_reduction <add>, %219, %cst_81 [1] : vector<32x32xf32> to vector<32xf32>
    %221 = vector.shape_cast %220 : vector<32xf32> to vector<32x1xf32>
    %cst_82 = arith.constant 3.200000e+01 : f32
    %222 = vector.broadcast %cst_82 : f32 to vector<32x1xf32>
    %223 = arith.divf %221, %222 : vector<32x1xf32>
    %224 = vector.broadcast %216 : vector<32x1xf32> to vector<32x32xf32>
    %225 = arith.subf %212, %224 : vector<32x32xf32>
    %cst_83 = arith.constant 9.99999974E-6 : f32
    %226 = vector.broadcast %cst_83 : f32 to vector<32x1xf32>
    %227 = arith.addf %223, %226 : vector<32x1xf32>
    %228 = math.rsqrt %227 : vector<32x1xf32>
    %229 = vector.broadcast %228 : vector<32x1xf32> to vector<32x32xf32>
    %230 = arith.mulf %225, %229 : vector<32x32xf32>
    %c1_84 = arith.constant 1 : index
    %c0_85 = arith.constant 0 : index
    %c0_86 = arith.constant 0 : index
    %231 = vector.load %arg8[%c1_84, %c0_85, %c0_86] : memref<2x1x32xf32, #tpu.memory_space<vmem>>, vector<1x1x32xf32>
    %232 = vector.shape_cast %231 : vector<1x1x32xf32> to vector<1x32xf32>
    %233 = vector.broadcast %232 : vector<1x32xf32> to vector<32x32xf32>
    %234 = arith.mulf %230, %233 : vector<32x32xf32>
    %c1_87 = arith.constant 1 : index
    %c0_88 = arith.constant 0 : index
    %c0_89 = arith.constant 0 : index
    %235 = vector.load %arg9[%c1_87, %c0_88, %c0_89] : memref<2x1x32xf32, #tpu.memory_space<vmem>>, vector<1x1x32xf32>
    %236 = vector.shape_cast %235 : vector<1x1x32xf32> to vector<1x32xf32>
    %237 = vector.broadcast %236 : vector<1x32xf32> to vector<32x32xf32>
    %238 = arith.addf %234, %237 : vector<32x32xf32>
    %c1_90 = arith.constant 1 : index
    %c0_91 = arith.constant 0 : index
    %c0_92 = arith.constant 0 : index
    %239 = vector.load %arg10[%c1_90, %c0_91, %c0_92] : memref<2x32x64xf32, #tpu.memory_space<vmem>>, vector<1x32x64xf32>
    %240 = vector.shape_cast %239 : vector<1x32x64xf32> to vector<32x64xf32>
    %cst_93 = arith.constant dense<0.000000e+00> : vector<32x64xf32>
    %241 = tpu.matmul %238, %240, %cst_93 {dimension_numbers = #tpu.dot_dimension_numbers<[1], [0], [0], [1], [0, 0, 1, 1], [], []>} : vector<32x32xf32>, vector<32x64xf32>, vector<32x64xf32> -> vector<32x64xf32>
    %c1_94 = arith.constant 1 : index
    %c0_95 = arith.constant 0 : index
    %c0_96 = arith.constant 0 : index
    %242 = vector.load %arg11[%c1_94, %c0_95, %c0_96] : memref<2x1x64xf32, #tpu.memory_space<vmem>>, vector<1x1x64xf32>
    %243 = vector.shape_cast %242 : vector<1x1x64xf32> to vector<1x64xf32>
    %244 = vector.broadcast %243 : vector<1x64xf32> to vector<32x64xf32>
    %245 = arith.addf %241, %244 : vector<32x64xf32>
    %cst_97 = arith.constant 0.000000e+00 : f32
    %246 = vector.broadcast %cst_97 : f32 to vector<32x64xf32>
    %247 = arith.maximumf %245, %246 : vector<32x64xf32>
    %c1_98 = arith.constant 1 : index
    %c0_99 = arith.constant 0 : index
    %c0_100 = arith.constant 0 : index
    %248 = vector.load %arg12[%c1_98, %c0_99, %c0_100] : memref<2x64x32xf32, #tpu.memory_space<vmem>>, vector<1x64x32xf32>
    %249 = vector.shape_cast %248 : vector<1x64x32xf32> to vector<64x32xf32>
    %cst_101 = arith.constant dense<0.000000e+00> : vector<32x32xf32>
    %250 = tpu.matmul %247, %249, %cst_101 {dimension_numbers = #tpu.dot_dimension_numbers<[1], [0], [0], [1], [0, 0, 1, 1], [], []>} : vector<32x64xf32>, vector<64x32xf32>, vector<32x32xf32> -> vector<32x32xf32>
    %c1_102 = arith.constant 1 : index
    %c0_103 = arith.constant 0 : index
    %c0_104 = arith.constant 0 : index
    %251 = vector.load %arg13[%c1_102, %c0_103, %c0_104] : memref<2x1x32xf32, #tpu.memory_space<vmem>>, vector<1x1x32xf32>
    %252 = vector.shape_cast %251 : vector<1x1x32xf32> to vector<1x32xf32>
    %253 = vector.broadcast %252 : vector<1x32xf32> to vector<32x32xf32>
    %254 = arith.addf %250, %253 : vector<32x32xf32>
    %255 = arith.addf %238, %254 : vector<32x32xf32>
    %cst_105 = arith.constant dense<0.000000e+00> : vector<32xf32>
    %256 = vector.multi_reduction <add>, %255, %cst_105 [1] : vector<32x32xf32> to vector<32xf32>
    %257 = vector.shape_cast %256 : vector<32xf32> to vector<32x1xf32>
    %cst_106 = arith.constant 3.200000e+01 : f32
    %258 = vector.broadcast %cst_106 : f32 to vector<32x1xf32>
    %259 = arith.divf %257, %258 : vector<32x1xf32>
    %260 = vector.broadcast %259 : vector<32x1xf32> to vector<32x32xf32>
    %261 = arith.subf %255, %260 : vector<32x32xf32>
    %262 = arith.mulf %261, %261 : vector<32x32xf32>
    %cst_107 = arith.constant dense<0.000000e+00> : vector<32xf32>
    %263 = vector.multi_reduction <add>, %262, %cst_107 [1] : vector<32x32xf32> to vector<32xf32>
    %264 = vector.shape_cast %263 : vector<32xf32> to vector<32x1xf32>
    %cst_108 = arith.constant 3.200000e+01 : f32
    %265 = vector.broadcast %cst_108 : f32 to vector<32x1xf32>
    %266 = arith.divf %264, %265 : vector<32x1xf32>
    %267 = vector.broadcast %259 : vector<32x1xf32> to vector<32x32xf32>
    %268 = arith.subf %255, %267 : vector<32x32xf32>
    %cst_109 = arith.constant 9.99999974E-6 : f32
    %269 = vector.broadcast %cst_109 : f32 to vector<32x1xf32>
    %270 = arith.addf %266, %269 : vector<32x1xf32>
    %271 = math.rsqrt %270 : vector<32x1xf32>
    %272 = vector.broadcast %271 : vector<32x1xf32> to vector<32x32xf32>
    %273 = arith.mulf %268, %272 : vector<32x32xf32>
    %c1_110 = arith.constant 1 : index
    %c0_111 = arith.constant 0 : index
    %c0_112 = arith.constant 0 : index
    %274 = vector.load %arg14[%c1_110, %c0_111, %c0_112] : memref<2x1x32xf32, #tpu.memory_space<vmem>>, vector<1x1x32xf32>
    %275 = vector.shape_cast %274 : vector<1x1x32xf32> to vector<1x32xf32>
    %276 = vector.broadcast %275 : vector<1x32xf32> to vector<32x32xf32>
    %277 = arith.mulf %273, %276 : vector<32x32xf32>
    %c1_113 = arith.constant 1 : index
    %c0_114 = arith.constant 0 : index
    %c0_115 = arith.constant 0 : index
    %278 = vector.load %arg15[%c1_113, %c0_114, %c0_115] : memref<2x1x32xf32, #tpu.memory_space<vmem>>, vector<1x1x32xf32>
    %279 = vector.shape_cast %278 : vector<1x1x32xf32> to vector<1x32xf32>
    %280 = vector.broadcast %279 : vector<1x32xf32> to vector<32x32xf32>
    %281 = arith.addf %277, %280 : vector<32x32xf32>
    %c0_116 = arith.constant 0 : index
    %c0_117 = arith.constant 0 : index
    %282 = vector.load %arg16[%c0_116, %c0_117] : memref<32x32xf32, #tpu.memory_space<vmem>>, vector<32x32xf32>
    %283 = arith.mulf %281, %282 : vector<32x32xf32>
    %c0_118 = arith.constant 0 : index
    %c0_119 = arith.constant 0 : index
    %284 = vector.load %arg19[%c0_118, %c0_119] : memref<4x32xf32, #tpu.memory_space<vmem>>, vector<4x32xf32>
    %cst_120 = arith.constant dense<0.000000e+00> : vector<4x32xf32>
    %285 = tpu.matmul %284, %283, %cst_120 {dimension_numbers = #tpu.dot_dimension_numbers<[1], [0], [0], [1], [0, 0, 1, 1], [], []>} : vector<4x32xf32>, vector<32x32xf32>, vector<4x32xf32> -> vector<4x32xf32>
    %cst_121 = arith.constant dense<0.000000e+00> : vector<4xf32>
    %286 = vector.multi_reduction <add>, %285, %cst_121 [1] : vector<4x32xf32> to vector<4xf32>
    %287 = vector.shape_cast %286 : vector<4xf32> to vector<4x1xf32>
    %c0_122 = arith.constant 0 : index
    %c0_123 = arith.constant 0 : index
    %288 = vector.load %arg17[%c0_122, %c0_123] : memref<1x128xf32, #tpu.memory_space<vmem>>, vector<1x128xf32>
    %289 = vector.broadcast %287 : vector<4x1xf32> to vector<4x128xf32>
    %290 = vector.broadcast %288 : vector<1x128xf32> to vector<4x128xf32>
    %291 = arith.addf %289, %290 : vector<4x128xf32>
    %c0_124 = arith.constant 0 : index
    %c0_125 = arith.constant 0 : index
    %c0_126 = arith.constant 0 : index
    %292 = vector.load %arg20[%c0_124, %c0_125, %c0_126] : memref<1x4x128xf32, #tpu.memory_space<vmem>>, vector<1x4x128xf32>
    %293 = vector.shape_cast %292 : vector<1x4x128xf32> to vector<4x128xf32>
    %294 = vector.shape_cast %291 : vector<4x128xf32> to vector<1x4x128xf32>
    tpu.vector_store %arg20[%c0_124, %c0_125, %c0_126], %294 {strides = array<i32>} : memref<1x4x128xf32, #tpu.memory_space<vmem>>, vector<1x4x128xf32>,
    return
  }
  func.func @transform_0(%arg0: i32) -> (i32, i32) {
    %c0_i32 = arith.constant 0 : i32
    %c0_i32_0 = arith.constant 0 : i32
    return %arg0, %c0_i32 : i32, i32
  }
  func.func @transform_1(%arg0: i32) -> (i32, i32) {
    %c0_i32 = arith.constant 0 : i32
    %c0_i32_0 = arith.constant 0 : i32
    %c0_i32_1 = arith.constant 0 : i32
    return %c0_i32, %c0_i32_0 : i32, i32
  }
  func.func @transform_2(%arg0: i32) -> (i32, i32) {
    %c0_i32 = arith.constant 0 : i32
    %c0_i32_0 = arith.constant 0 : i32
    %c0_i32_1 = arith.constant 0 : i32
    return %c0_i32, %c0_i32_0 : i32, i32
  }
  func.func @transform_3(%arg0: i32) -> (i32, i32, i32) {
    %c0_i32 = arith.constant 0 : i32
    %c0_i32_0 = arith.constant 0 : i32
    %c0_i32_1 = arith.constant 0 : i32
    %c0_i32_2 = arith.constant 0 : i32
    return %c0_i32, %c0_i32_0, %c0_i32_1 : i32, i32, i32
  }
  func.func @transform_4(%arg0: i32) -> (i32, i32, i32) {
    %c0_i32 = arith.constant 0 : i32
    %c0_i32_0 = arith.constant 0 : i32
    %c0_i32_1 = arith.constant 0 : i32
    %c0_i32_2 = arith.constant 0 : i32
    return %c0_i32, %c0_i32_0, %c0_i32_1 : i32, i32, i32
  }
  func.func @transform_5(%arg0: i32) -> (i32, i32, i32) {
    %c0_i32 = arith.constant 0 : i32
    %c0_i32_0 = arith.constant 0 : i32
    %c0_i32_1 = arith.constant 0 : i32
    %c0_i32_2 = arith.constant 0 : i32
    return %c0_i32, %c0_i32_0, %c0_i32_1 : i32, i32, i32
  }
  func.func @transform_6(%arg0: i32) -> (i32, i32, i32) {
    %c0_i32 = arith.constant 0 : i32
    %c0_i32_0 = arith.constant 0 : i32
    %c0_i32_1 = arith.constant 0 : i32
    %c0_i32_2 = arith.constant 0 : i32
    return %c0_i32, %c0_i32_0, %c0_i32_1 : i32, i32, i32
  }
  func.func @transform_7(%arg0: i32) -> (i32, i32, i32) {
    %c0_i32 = arith.constant 0 : i32
    %c0_i32_0 = arith.constant 0 : i32
    %c0_i32_1 = arith.constant 0 : i32
    %c0_i32_2 = arith.constant 0 : i32
    return %c0_i32, %c0_i32_0, %c0_i32_1 : i32, i32, i32
  }
  func.func @transform_8(%arg0: i32) -> (i32, i32, i32) {
    %c0_i32 = arith.constant 0 : i32
    %c0_i32_0 = arith.constant 0 : i32
    %c0_i32_1 = arith.constant 0 : i32
    %c0_i32_2 = arith.constant 0 : i32
    return %c0_i32, %c0_i32_0, %c0_i32_1 : i32, i32, i32
  }
  func.func @transform_9(%arg0: i32) -> (i32, i32, i32) {
    %c0_i32 = arith.constant 0 : i32
    %c0_i32_0 = arith.constant 0 : i32
    %c0_i32_1 = arith.constant 0 : i32
    %c0_i32_2 = arith.constant 0 : i32
    return %c0_i32, %c0_i32_0, %c0_i32_1 : i32, i32, i32
  }
  func.func @transform_10(%arg0: i32) -> (i32, i32, i32) {
    %c0_i32 = arith.constant 0 : i32
    %c0_i32_0 = arith.constant 0 : i32
    %c0_i32_1 = arith.constant 0 : i32
    %c0_i32_2 = arith.constant 0 : i32
    return %c0_i32, %c0_i32_0, %c0_i32_1 : i32, i32, i32
  }
  func.func @transform_11(%arg0: i32) -> (i32, i32, i32) {
    %c0_i32 = arith.constant 0 : i32
    %c0_i32_0 = arith.constant 0 : i32
    %c0_i32_1 = arith.constant 0 : i32
    %c0_i32_2 = arith.constant 0 : i32
    return %c0_i32, %c0_i32_0, %c0_i32_1 : i32, i32, i32
  }
  func.func @transform_12(%arg0: i32) -> (i32, i32, i32) {
    %c0_i32 = arith.constant 0 : i32
    %c0_i32_0 = arith.constant 0 : i32
    %c0_i32_1 = arith.constant 0 : i32
    %c0_i32_2 = arith.constant 0 : i32
    return %c0_i32, %c0_i32_0, %c0_i32_1 : i32, i32, i32
  }
  func.func @transform_13(%arg0: i32) -> (i32, i32, i32) {
    %c0_i32 = arith.constant 0 : i32
    %c0_i32_0 = arith.constant 0 : i32
    %c0_i32_1 = arith.constant 0 : i32
    %c0_i32_2 = arith.constant 0 : i32
    return %c0_i32, %c0_i32_0, %c0_i32_1 : i32, i32, i32
  }
  func.func @transform_14(%arg0: i32) -> (i32, i32, i32) {
    %c0_i32 = arith.constant 0 : i32
    %c0_i32_0 = arith.constant 0 : i32
    %c0_i32_1 = arith.constant 0 : i32
    %c0_i32_2 = arith.constant 0 : i32
    return %c0_i32, %c0_i32_0, %c0_i32_1 : i32, i32, i32
  }
  func.func @transform_15(%arg0: i32) -> (i32, i32) {
    %c0_i32 = arith.constant 0 : i32
    %c0_i32_0 = arith.constant 0 : i32
    %c0_i32_1 = arith.constant 0 : i32
    return %c0_i32, %c0_i32_0 : i32, i32
  }
  func.func @transform_16(%arg0: i32) -> (i32, i32) {
    %c0_i32 = arith.constant 0 : i32
    %c0_i32_0 = arith.constant 0 : i32
    %c0_i32_1 = arith.constant 0 : i32
    return %c0_i32, %c0_i32_0 : i32, i32
  }
  func.func @transform_17(%arg0: i32) -> (i32, i32) {
    %c0_i32 = arith.constant 0 : i32
    %c0_i32_0 = arith.constant 0 : i32
    %c0_i32_1 = arith.constant 0 : i32
    return %c0_i32, %c0_i32_0 : i32, i32
  }
  func.func @transform_18(%arg0: i32) -> (i32, i32) {
    %c0_i32 = arith.constant 0 : i32
    %c0_i32_0 = arith.constant 0 : i32
    %c0_i32_1 = arith.constant 0 : i32
    return %c0_i32, %c0_i32_0 : i32, i32
  }
  func.func @transform_19(%arg0: i32) -> (i32, i32, i32) {
    %c0_i32 = arith.constant 0 : i32
    %c0_i32_0 = arith.constant 0 : i32
    %c0_i32_1 = arith.constant 0 : i32
    return %arg0, %c0_i32, %c0_i32_0 : i32, i32, i32
  }
}

</mosaic_0001>

<bundles_post_ra>
// kernel: tpu_custom_call.1
= control target key start
LH: loop header
LB: loop body
LE: loop exit
PB: predicated region body
PF: predicated region fallthrough
CT: control target
= control target key end

     0   :  { %s7462_s0 = inlined_call_operand.vmem [shape: f32[64,16], index: 0, kind: input, shape index: {}]   ;;  %s7463_s1 = inlined_call_operand.hbm [shape: f32[16,32], index: 1, kind: input, shape index: {}]   ;;  %s7464_s2 = inlined_call_operand.hbm [shape: f32[1,32], index: 2, kind: input, shape index: {}]   ;;  %s7465_s3 = inlined_call_operand.vmem [shape: f32[2,32,96], index: 3, kind: input, shape index: {}]   ;;  %s7466_s4 = inlined_call_operand.hbm [shape: f32[2,1,96], index: 4, kind: input, shape index: {}]   ;;  %s7467_s5 = inlined_call_operand.vmem [shape: f32[2,32,32], index: 5, kind: input, shape index: {}]   ;;  %s7468_s6 = inlined_call_operand.hbm [shape: f32[2,1,32], index: 6, kind: input, shape index: {}]   ;;  %s7469_s7 = inlined_call_operand.hbm [shape: f32[2,1,32], index: 7, kind: input, shape index: {}]   ;;  %s7470_s8 = inlined_call_operand.hbm [shape: f32[2,1,32], index: 8, kind: input, shape index: {}]   ;;  %s7471_s9 = inlined_call_operand.vmem [shape: f32[2,32,64], index: 9, kind: input, shape index: {}]   ;;  %s7472_s10 = inlined_call_operand.hbm [shape: f32[2,1,64], index: 10, kind: input, shape index: {}]   ;;  %s7473_s11 = inlined_call_operand.vmem [shape: f32[2,64,32], index: 11, kind: input, shape index: {}]   ;;  %s7474_s12 = inlined_call_operand.hbm [shape: f32[2,1,32], index: 12, kind: input, shape index: {}]   ;;  %s7475_s13 = inlined_call_operand.hbm [shape: f32[2,1,32], index: 13, kind: input, shape index: {}]   ;;  %s7476_s14 = inlined_call_operand.vmem [shape: f32[2,1,32], index: 14, kind: input, shape index: {}]   ;;  %s7477_s15 = inlined_call_operand.vmem [shape: f32[32,32], index: 15, kind: input, shape index: {}]   ;;  %s7478_s16 = inlined_call_operand.vmem [shape: f32[1,128], index: 16, kind: input, shape index: {}]   ;;  %s7479_s17 = inlined_call_operand.hbm [shape: f32[32,32], index: 17, kind: input, shape index: {}]   ;;  %s7480_s18 = inlined_call_operand.vmem [shape: f32[4,32], index: 18, kind: input, shape index: {}]   ;;  %s7481_s19 = inlined_call_operand.hbm [shape: f32[2,4,128], index: 19, kind: output, shape index: {}]  }
   0x1   :  { %7500 = sst [smem:[#allocation33_spill]] %s7462_s0 }
   0x2   :  { %7501 = sst [smem:[#allocation34_spill]] %s7463_s1 }
   0x3   :  { %7502 = sst [smem:[#allocation35_spill]] %s7464_s2 }
   0x4   :  { %7503 = sst [smem:[#allocation36_spill]] %s7465_s3 }
   0x5   :  { %7504 = sst [smem:[#allocation37_spill]] %s7468_s6 }
   0x6   :  { %7505 = sst [smem:[#allocation38_spill]] %s7470_s8 }
   0x7   :  { %7506 = sst [smem:[#allocation39_spill]] %s7481_s19 }
   0x8   :  { %24 = vsyncpa [#allocation3], 0 }
   0x9   :  { %25 = vsyncpa [#allocation6], 0 }
   0xa   :  { %26 = vsyncpa [#allocation9], 0 }
   0xb   :  { %27 = vsyncpa [#allocation12], 0 }
   0xc   :  { %28 = vsyncpa [#allocation15], 0 }
   0xd   :  { %29 = vsyncpa [#allocation18], 0 }
   0xe   :  { %30 = vsyncpa [#allocation4], 0 }
   0xf   :  { %32 = vsyncpa [#allocation4 + $0x1], 0  ;;  %s6185_s0 = smov 0   ;;  %s6187_s30 = smov 0  }
  0x10   :  { %s6189_s20 = smov 0   ;;  %s6191_s21 = smov 0  }
  0x11 LB: > { %7507 = sst [smem:[#allocation27_spill]] %s6046_s0  ;;  %s6206_s1 = sadd.s32 4294967295, %s6058_s21   ;;  %s6058_s21 = sphi %s6191_s21, %s7545_s21   ;;  %s6054_s20 = sphi %s6189_s20, %s7547_s20   ;;  %s6050_s30 = sphi %s6187_s30, %s7549_s30   ;;  %s6046_s0 = sphi %s6185_s0, %s7548_s0  }
  0x12   : > { %7508 = sst [smem:[#allocation28_spill]] %s6054_s20  ;;  %s4609_s22 = sadd.s32 4294967294, %s6058_s21  }
  0x13   : > { %7509 = sst [smem:[#allocation29_spill]] %s6058_s21  ;;  %s6210_s2 = sadd.s32 1, %s6058_s21  }
  0x14   : > { %7510 = sst [smem:[#allocation30_spill]] %s6210_s2  ;;  %s449_s23 = sadd.s32 1, %s6054_s20 }
  0x15   : > { %s446_s24 = ssub.s32 %s6058_s21, %s6210_s2  ;;  %p459_p0 = scmp.ne.s32.totalorder %s6054_s20, %s6050_s30 }
  0x16   : > { %p447_p1 = scmp.eq.s32.totalorder %s446_s24, 0  ;;  %p460_p2 = scmp.eq.s32.totalorder %s6206_s1, 1 }
  0x17   : > { %p465_p3 = scmp.ne.s32.totalorder %s6050_s30, %s6046_s0  ;;  %p466_p4 = scmp.eq.s32.totalorder %s4609_s22, 1 }
  0x18   : > { %s6221_s25 = scalar_select %p447_p1, %s6054_s20, %s449_s23  }
  0x19   : > { %p6223_p5 = por %p460_p2, %p459_p0  ;;  %p6227_p6 = por %p466_p4, %p465_p3 }
  0x1a   : > { %7511 = sst [smem:[#allocation31_spill]] %s6221_s25  ;;  %p4610_p7 = scmp.ge.s32.totalorder %s6058_s21, 1 }
  0x1b   : > { %s7513_s26 = scalar_select %p6227_p6, 1, 0 }
  0x1c   : > { %p473_p8 = scmp.lt.s32.totalorder %s6058_s21, 3  ;;  %p7489_p9 = scmp.eq.s32.totalorder %s6206_s1, 0 }
  0x1d   : > { %7514 = sst [smem:[#allocation32_spill]] %s7513_s26  ;;  %s6060_s28 = smov [#allocation5]  }
  0x1e   : > { %p6234_p10 = pnand %p4610_p7, %p473_p8  ;;  %s499_s29 = sshll.u32 %s6060_s28, 4  ;;  %s500_s29 = int_to_ptr.vmem [resolvable:$true] %s499_s29 }
  0x1f   : > { %s6061_s23 = smov [#allocation8]   ;;  %s6062_s25 = smov [#allocation11]  }
  0x20   : > { %p5438_p11 = pneg %p6234_p10  ;;  %s528_s24 = sshll.u32 %s6061_s23, 4  ;;  %s6246_s24 = int_to_ptr.vmem [resolvable:$true] %s528_s24 }
  0x21   : > { %s554_s20 = sshll.u32 %s6062_s25, 4  ;;  %s5725_s28 = scalar_lea.vmem %s500_s29, 16  ;;  %s555_s20 = int_to_ptr.vmem [resolvable:$true] %s554_s20 }
  0x22   : > { %p6242_p12 = pnand %p7489_p9, %p5438_p11  ;;  %p5726_p0 = scmp.ne.s32.totalorder %s500_s29, %s5725_s28 }
  0x23   : > { %s5732_s26 = scalar_lea.vmem %s500_s29, 32  ;;  %p5733_p3 = scmp.lt.s32.totalorder %s500_s29, %s500_s29 }
  0x24   : > { %p6250_p13 = pneg %p6242_p12  ;;  %p5734_p4 = scmp.lt.s32.totalorder %s5732_s26, %s5725_s28 }
  0x26   : > { %p5728_p1 = pnand %p5726_p0, %p6250_p13  ;;  %p5735_p7 = por %p5734_p4, %p5733_p3 }
  0x28   : > { %p5729_p2 = pneg %p5728_p1 }
  0x2a   : > { %p5736_p8 = pnand %p5735_p7, %p5729_p2 }
  0x2c   : > { %5739 = shalt.err (!%p5736_p8)
}
  0x2d   : > { %s7518_s0 = sld [smem:[#allocation35_spill]]  ;;  %s5751_s21 = scalar_lea.vmem %s6246_s24, 32 }
  0x2e   : > { %p5752_p11 = scmp.ne.s32.totalorder %s6246_s24, %s5751_s21  ;;  %p5759_p9 = scmp.lt.s32.totalorder %s6246_s24, %s6246_s24 }
  0x2f   : > { %p5760_p3 = scmp.lt.s32.totalorder %s5751_s21, %s5751_s21 }
  0x30   : > { %p5754_p0 = pnand %p5752_p11, %p6250_p13 }
  0x31   : > { %p5761_p2 = por %p5760_p3, %p5759_p9 }
  0x32   : > { %p5755_p1 = pneg %p5754_p0 }
  0x33   : > { %5444 = dma.hbm_to_vmem [thread:$0]  (!%p6242_p12), %s7518_s0, 16, %s500_s29, [#allocation6]  }
  0x34   : > { %p5762_p4 = pnand %p5761_p2, %p5755_p1 }
  0x36   : > { %5765 = shalt.err (!%p5762_p4)
}
  0x37   : > { %s7491_s26 = smov 16   ;;  %s7493_s28 = smov 1  }
  0x38   : > { %s7519_s6 = sld [smem:[#allocation37_spill]]  ;;  %s5777_s25 = scalar_lea.vmem %s555_s20, 32 }
  0x39   : > { %p5778_p7 = scmp.ne.s32.totalorder %s555_s20, %s5777_s25  ;;  %p5785_p11 = scmp.lt.s32.totalorder %s555_s20, %s555_s20 }
  0x3a   : > { %p5786_p0 = scmp.lt.s32.totalorder %s5777_s25, %s5777_s25 }
  0x3b   : > { %p5780_p9 = pnand %p5778_p7, %p6250_p13 }
  0x3c   : > { %p5787_p1 = por %p5786_p0, %p5785_p11 }
  0x3d   : > { %p5781_p8 = pneg %p5780_p9 }
  0x3e   : > { %5450 = dma.hbm_to_vmem [thread:$0]  (!%p6242_p12), %s7519_s6, 32, %s6246_s24, [#allocation9], %s7491_s26, %s7491_s26, %s7493_s28  }
  0x3f   : > { %p5788_p3 = pnand %p5787_p1, %p5781_p8 }
  0x41   : > { %5791 = shalt.err (!%p5788_p3)
}
  0x42   : > { %s7520_s8 = sld [smem:[#allocation38_spill]]  ;;  %s6065_s24 = smov [#allocation14]  }
  0x43   : > { %s586_s0 = sshll.u32 %s6065_s24, 4  ;;  %s6066_s29 = smov [#allocation2]   ;;  %s587_s0 = int_to_ptr.vmem [resolvable:$true] %s586_s0 }
  0x44   : > { %s485_s6 = sshll.u32 %s6066_s29, 4  ;;  %s5803_s19 = scalar_lea.vmem %s587_s0, 32  ;;  %s486_s6 = int_to_ptr.vmem [resolvable:$true] %s485_s6 }
  0x45   : > { %p5804_p2 = scmp.ne.s32.totalorder %s587_s0, %s5803_s19  ;;  %p5811_p9 = scmp.lt.s32.totalorder %s587_s0, %s587_s0 }
  0x46   : > { %p5812_p8 = scmp.lt.s32.totalorder %s5803_s19, %s5803_s19 }
  0x47   : > { %p5806_p4 = pnand %p5804_p2, %p6250_p13 }
  0x48   : > { %5456 = dma.hbm_to_vmem [thread:$0]  (!%p6242_p12), %s7520_s8, 32, %s555_s20, [#allocation12], %s7491_s26, %s7491_s26, %s7493_s28  }
  0x49   : > { %p5807_p7 = pneg %p5806_p4  ;;  %p5813_p11 = por %p5812_p8, %p5811_p9 }
  0x4b   : > { %p5814_p0 = pnand %p5813_p11, %p5807_p7 }
  0x4d   : > { %5817 = shalt.err (!%p5814_p0)
}
  0x4e   : > { %5462 = dma.hbm_to_vmem [thread:$0]  (!%p6242_p12), %s7474_s12, 32, %s587_s0, [#allocation15], %s7491_s26, %s7491_s26, %s7493_s28  }
  0x4f   : > { %s5829_s21 = scalar_lea.vmem %s486_s6, 256  ;;  %p5837_p4 = scmp.lt.s32.totalorder %s486_s6, %s486_s6 }
  0x50   : > { %p5830_p1 = scmp.ne.s32.totalorder %s486_s6, %s5829_s21  ;;  %p5838_p9 = scmp.lt.s32.totalorder %s5829_s21, %s5829_s21 }
  0x52   : > { %p5832_p3 = pnand %p5830_p1, %p6250_p13  ;;  %p5839_p7 = por %p5838_p9, %p5837_p4 }
  0x54   : > { %p5833_p2 = pneg %p5832_p3 }
  0x56   : > { %p5840_p8 = pnand %p5839_p7, %p5833_p2 }
  0x58   : > { %5843 = shalt.err (!%p5840_p8)
}
  0x59   : > { %s7495_s19 = smov 128   ;;  %s6068_s23 = smov 8  }
  0x5a   : > { %s7521_s29 = sld [smem:[#allocation34_spill]]  ;;  %s6069_s20 = smov [#allocation7]  }
  0x5b   : > { %s512_s25 = sshll.u32 %s6069_s20, 4  ;;  %s6070_s26 = smov [#allocation10]   ;;  %s513_s25 = int_to_ptr.vmem [resolvable:$true] %s512_s25 }
  0x5c   : > { %s541_s21 = sshll.u32 %s6070_s26, 4  ;;  %s5855_s28 = scalar_lea.vmem %s513_s25, 32  ;;  %s542_s21 = int_to_ptr.vmem [resolvable:$true] %s541_s21 }
  0x5d   : > { %p5856_p11 = scmp.ne.s32.totalorder %s513_s25, %s5855_s28  ;;  %p5863_p3 = scmp.lt.s32.totalorder %s513_s25, %s513_s25 }
  0x5e   : > { %p5864_p2 = scmp.lt.s32.totalorder %s5855_s28, %s5855_s28 }
  0x5f   : > { %p5858_p0 = pnand %p5856_p11, %p6250_p13 }
  0x60   : > { %5441 = dma.hbm_to_vmem [thread:$0]  (!%p6242_p12), %s7521_s29, 256, %s486_s6, [#allocation3], %s7495_s19, %s7495_s19, %s6068_s23  }
  0x61   : > { %p5859_p1 = pneg %p5858_p0  ;;  %p5865_p4 = por %p5864_p2, %p5863_p3 }
  0x63   : > { %p5866_p9 = pnand %p5865_p4, %p5859_p1 }
  0x65   : > { %5869 = shalt.err (!%p5866_p9)
}
  0x66   : > { %s7522_s8 = smov 1   ;;  %s7523_s24 = smov 16  }
  0x67   : > { %5447 = dma.hbm_to_vmem [thread:$0]  (!%p6242_p12), %s7466_s4, 32, %s513_s25, [#allocation6], %s7523_s24, %s7523_s24, %s7522_s8  }
  0x68   : > { %s5881_s26 = scalar_lea.vmem %s542_s21, 32  ;;  %p5889_p0 = scmp.lt.s32.totalorder %s542_s21, %s542_s21 }
  0x69   : > { %p5882_p7 = scmp.ne.s32.totalorder %s542_s21, %s5881_s26  ;;  %p5890_p3 = scmp.lt.s32.totalorder %s5881_s26, %s5881_s26 }
  0x6b   : > { %p5884_p8 = pnand %p5882_p7, %p6250_p13  ;;  %p5891_p1 = por %p5890_p3, %p5889_p0 }
  0x6d   : > { %p5885_p11 = pneg %p5884_p8 }
  0x6f   : > { %p5892_p2 = pnand %p5891_p1, %p5885_p11 }
  0x71   : > { %5895 = shalt.err (!%p5892_p2)
}
  0x72   : > { %5453 = dma.hbm_to_vmem [thread:$0]  (!%p6242_p12), %s7469_s7, 32, %s542_s21, [#allocation9], %s7523_s24, %s7523_s24, %s7522_s8  }
  0x73   : > { %s6071_s20 = smov [#allocation13]   ;;  %s6072_s6 = smov [#allocation16]  }
  0x74   : > { %s570_s25 = sshll.u32 %s6071_s20, 4  ;;  %s599_s0 = sshll.u32 %s6072_s6, 4  ;;  %s571_s25 = int_to_ptr.vmem [resolvable:$true] %s570_s25  ;;  %s600_s0 = int_to_ptr.vmem [resolvable:$true] %s599_s0 }
  0x75   : > { %s5907_s19 = scalar_lea.vmem %s571_s25, 32  ;;  %p5915_p8 = scmp.lt.s32.totalorder %s571_s25, %s571_s25 }
  0x76   : > { %p5908_p4 = scmp.ne.s32.totalorder %s571_s25, %s5907_s19  ;;  %p5916_p11 = scmp.lt.s32.totalorder %s5907_s19, %s5907_s19 }
  0x78   : > { %p5910_p9 = pnand %p5908_p4, %p6250_p13  ;;  %p5917_p0 = por %p5916_p11, %p5915_p8 }
  0x7a   : > { %p5911_p7 = pneg %p5910_p9 }
  0x7c   : > { %p5918_p3 = pnand %p5917_p0, %p5911_p7 }
  0x7e   : > { %5921 = shalt.err (!%p5918_p3)
}
  0x7f   : > { %5459 = dma.hbm_to_vmem [thread:$0]  (!%p6242_p12), %s7472_s10, 32, %s571_s25, [#allocation12], %s7523_s24, %s7523_s24, %s7522_s8  }
  0x80   : > { %s5933_s28 = scalar_lea.vmem %s600_s0, 32  ;;  %p5941_p9 = scmp.lt.s32.totalorder %s600_s0, %s600_s0 }
  0x81   : > { %p5934_p1 = scmp.ne.s32.totalorder %s600_s0, %s5933_s28  ;;  %p5942_p8 = scmp.lt.s32.totalorder %s5933_s28, %s5933_s28 }
  0x83   : > { %p5936_p2 = pnand %p5934_p1, %p6250_p13  ;;  %p5943_p7 = por %p5942_p8, %p5941_p9 }
  0x85   : > { %p5937_p4 = pneg %p5936_p2 }
  0x87   : > { %p5944_p11 = pnand %p5943_p7, %p5937_p4 }
  0x89   : > { %5947 = shalt.err (!%p5944_p11)
}
  0x8a   : > { %5465 = dma.hbm_to_vmem [thread:$0]  (!%p6242_p12), %s7475_s13, 32, %s600_s0, [#allocation15], %s7523_s24, %s7523_s24, %s7522_s8  }
  0x8b   : > { %s6073_s20 = smov [#allocation17]  }
  0x8c   : > { %s621_s25 = sshll.u32 %s6073_s20, 4  ;;  %s622_s25 = int_to_ptr.vmem [resolvable:$true] %s621_s25 }
  0x8d   : > { %s5959_s6 = scalar_lea.vmem %s622_s25, 512  ;;  %p5967_p2 = scmp.lt.s32.totalorder %s622_s25, %s622_s25 }
  0x8e   : > { %p5960_p0 = scmp.ne.s32.totalorder %s622_s25, %s5959_s6  ;;  %p5968_p4 = scmp.lt.s32.totalorder %s5959_s6, %s5959_s6 }
  0x90   : > { %p5962_p3 = pnand %p5960_p0, %p6250_p13  ;;  %p5969_p9 = por %p5968_p4, %p5967_p2 }
  0x92   : > { %p5963_p1 = pneg %p5962_p3 }
  0x94   : > { %p5970_p8 = pnand %p5969_p9, %p5963_p1 }
  0x96   : > { %5973 = shalt.err (!%p5970_p8)
}
  0x97   : > { %s7524_s21 = smov 128   ;;  %649 = sbr.rel (%p6234_p10) target bundleno = 5764 (0x1684), region = 96 }
  0x98   : > { %5468 = dma.hbm_to_vmem [thread:$0]  (!%p6242_p12), %s7479_s17, 512, %s622_s25, [#allocation18], %s7524_s21, %s7524_s21, %s6068_s23  }
  0x99   : > { %p7525_p13 = scmp.eq.s32.totalorder (!%p6234_p10), %s6206_s1, 0 }
  0x9c   : > { %6017 = dma.done.wait (%p7525_p13), [#allocation3], 256   ;;  %p7526_p7 = pmov %p7525_p13 }
  0x9e   : > { %6019 = vsyncadd (%p7526_p7), [#allocation3], 4294967040  ;;  %p7527_p11 = pmov %p7526_p7 }
  0x9f   : > { %p7528_p0 = pmov %p7526_p7 }
  0xa0   : > { %6021 = dma.done.wait (%p7527_p11), [#allocation6], 48  }
  0xa1   : > { %6023 = vsyncadd (%p7528_p0), [#allocation6], 4294967248  ;;  %p7529_p3 = pmov %p7528_p0 }
  0xa2   : > { %p7530_p12 = pmov %p7528_p0 }
  0xa3   : > { %6025 = dma.done.wait (%p7529_p3), [#allocation9], 64  }
  0xa4   : > { %6027 = vsyncadd (%p7530_p12), [#allocation9], 4294967232  ;;  %p7531_p10 = pmov %p7528_p0 }
  0xa5   : > { %p7532_p1 = pmov %p7528_p0 }
  0xa6   : > { %6029 = dma.done.wait (%p7531_p10), [#allocation12], 64  }
  0xa7   : > { %6031 = vsyncadd (%p7532_p1), [#allocation12], 4294967232  ;;  %p7533_p2 = pmov %p7528_p0 }
  0xa8   : > { %p7534_p4 = pmov %p7528_p0 }
  0xa9   : > { %6033 = dma.done.wait (%p7533_p2), [#allocation15], 64  }
  0xaa   : > { %6035 = vsyncadd (%p7534_p4), [#allocation15], 4294967232  ;;  %p7535_p9 = pmov %p7528_p0 }
  0xab   : > { %p7536_p8 = pmov %p7528_p0 }
  0xac   : > { %6037 = dma.done.wait (%p7535_p9), [#allocation18], 512  }
  0xad   : > { %6039 = vsyncadd (%p7536_p8), [#allocation18], 4294966784  ;;  %s4634_s2 = sshll.u32 %s6206_s1, 2  ;;  %vm764_vm0 = vcmask 130048   ;;  %s7537_s24 = sld [smem:[#allocation33_spill]]  ;;  %v756_v0 = vld [vmem:[#allocation2 + $0x8] sm:$0xff] }
  0xae   : > { %p742_p13 = scmp.lt.s32.totalorder %s4634_s2, 7  ;;  %v755_v1 = vld [vmem:[#allocation2] sm:$0xff]  ;;  %5023 = vmatprep.subr.mxu0 %v756_v0  ;;  %s7538_s29 = sld [smem:[#allocation36_spill]]  ;;  %v4636_v11 = vld [vmem:[#allocation5] ss:$0 sm:$0xff]  ;;  %vm873_vm1 = vcmask 261120  }
  0xaf   : > { %5024 = vmatpush3.msra.mxu0 %v756_v0  ;;  %v4641_v19 = vld [vmem:[#allocation7] ss:$0 sm:$0xff]  ;;  %vm1007_vm2 = vcmask 64512   ;;  %s6076_s22 = smov 112   ;;  %s6077_s23 = smov 96   ;;  %vm2104_vm3 = vcmask 195584  }
  0xb0   : > { %s7551_s2 = smov (!%p742_p13, %s4634_s2), 7  ;;  %5025 = vmatprep.subr.mxu0 %v755_v1  ;;  %s7498_s26 = smov 16   ;;  %vm2423_vm4 = vcmask 523264   ;;  %vm6083_vm5 = vmmov 0   ;;  %vm4425_vm6 = vcmask 257024  }
  0xb1   : > { %s4635_s27 = sshll.u32 %s7551_s2, 3  ;;  %5026 = vmatpush3.msra.mxu0 %v755_v1  ;;  %s6074_s2 = smov 120  }
  0xb2   : > { %s7496_s19 = smov 24   ;;  %s7539_s21 = smov 16  }
  0xb3   : > { %s745_s0 = scalar_lea.vmem %s7537_s24, %s4635_s27  ;;  %s6075_s27 = smov 104  }
  0xb4   : > { %v747_v2 = vld [vmem:[%s745_s0] sm:$0xff]  ;;  %v748_v3 = vld [vmem:[%s745_s0 + $0x8] sm:$0xff]  ;;  %v865_v4 = vld [vmem:[%s7538_s29 + $0x18] sm:$0xff]  ;;  %s6078_s24 = smov 64   ;;  %s4809_s28 = sshll.u32 %s6206_s1, 6 }
  0xb5   : > { %5027 = vmatprep.mubr.msk.f32.mxu0 %vm764_vm0, %v747_v2  ;;  %v749_v5 = vld [vmem:[%s745_s0 + $0x10] sm:$0xff]  ;;  %5033 = vmatprep.subr.mxu1 %v865_v4  ;;  %v750_v6 = vld [vmem:[%s745_s0 + $0x18] sm:$0xff]  ;;  %v863_v8 = vld [vmem:[%s7538_s29 + $0x8] sm:$0xff]  ;;  %s6079_s0 = smov 8   ;;  %s7541_s25 = sld [smem:[#allocation39_spill]] }
  0xb6   : > { %5034 = vmatpush3.msra.mxu1 %v865_v4  ;;  %5028 = vmatmul.mubr.msk.f32.vlgmr.msra.gmra.mxu0 %vm764_vm0, %v748_v3  ;;  %v864_v7 = vld [vmem:[%s7538_s29 + $0x10] sm:$0xff]  ;;  %v862_v9 = vld [vmem:[%s7538_s29] sm:$0xff]  ;;  %v752_v2 = vld [vmem:[#allocation17 + $0x8] sm:$0xff] }
  0xb7   : > { %5030 = vmatprep.mubr.msk.f32.mxu0 %vm764_vm0, %v749_v5  ;;  %5035 = vmatprep.subr.mxu1 %v864_v7  ;;  %v751_v4 = vld [vmem:[#allocation17] sm:$0xff] }
  0xb8   : > { %5036 = vmatpush3.msra.mxu1 %v864_v7  ;;  %v754_v7 = vld [vmem:[#allocation17 + $0x18] sm:$0xff] }
  0xb9   : > { %5037 = vmatprep.subr.mxu1 %v863_v8 }
  0xba   : > { %5031 = vmatmul.mubr.msk.f32.gmra.mxu0 %vm764_vm0, %v750_v6  ;;  %5038 = vmatpush3.msra.mxu1 %v863_v8 }
  0xbb   : > { %5039 = vmatprep.subr.mxu1 %v862_v9 }
  0xbc   : > { %5040 = vmatpush3.msra.mxu1 %v862_v9 }
 0x176   : > { %v5029_v10 = vpop.f32.mrf.mxu0 }
 0x177   : > { %v6404_v14 = vadd.f32 %v5029_v10, %v4636_v11 }
 0x178   : > { %v843_v12 = vpop.f32.mrf.mxu0 }
 0x179   : > { %v6402_v13 = vadd.f32 %v4636_v11, %v843_v12 }
 0x17a   : > { %v5032_v15 = vpop.f32.mrf.mxu0 }
 0x17b   : > { %5041 = vmatprep.mubr.msk.f32.mxu1 %vm873_vm1, %v6402_v13  ;;  %v6412_v18 = vadd.f32 %v5032_v15, %v4636_v11 }
 0x17c   : > { %v853_v16 = vpop.f32.mrf.mxu0  ;;  %5042 = vmatmul.mubr.msk.f32.vlgmr.msra.gmra.mxu1 %vm873_vm1, %v6404_v14 }
 0x17d   : > { %v6410_v17 = vadd.f32 %v4636_v11, %v853_v16  ;;  %v753_v11 = vld [vmem:[#allocation17 + $0x10] sm:$0xff] }
 0x17f   : > { %5044 = vmatprep.mubr.msk.f32.mxu1 %vm873_vm1, %v6410_v17 }
 0x180   : > { %5045 = vmatmul.mubr.msk.f32.gmra.mxu1 %vm873_vm1, %v6412_v18 }
 0x23c   : > { %v5043_v20 = vpop.f32.mrf.mxu1 }
 0x23d   : > { %v6418_v21 = vadd.f32 %v5043_v20, %v4641_v19 }
 0x23e   : > { %v952_v22 = vpop.f32.mrf.mxu1 }
 0x23f   : > { %v953_v23 = vadd.f32 %v4641_v19, %v952_v22  ;;  %977 = vrot.lane.b32.xlu1 %v6418_v21, %s6074_s2 }
 0x240   : > { %v5046_v24 = vpop.f32.mrf.mxu1 }
 0x241   : > { %v6422_v25 = vadd.f32 %v5046_v24, %v4641_v19  ;;  %5055 = vmatprep.mubr.msk.f32.mxu0 %vm1007_vm2, %v953_v23 }
 0x242   : > { %v962_v26 = vpop.f32.mrf.mxu1 }
 0x243   : > { %981 = vrot.lane.b32.xlu0 %v6422_v25, %s6074_s2  ;;  %975 = vrot.lane.b32.xlu1 %v953_v23, %s6074_s2  ;;  %v6428_v27 = vadd.f32 %v4641_v19, %v962_v26 }
 0x247   : > { %979 = vrot.lane.b32.xlu0 %v6428_v27, %s6074_s2  ;;  %997 = vrot.lane.b32.xlu1 %v6422_v25, %s6075_s27 }
 0x24b   : > { %989 = vrot.lane.b32.xlu0 %v6422_v25, %s6076_s22  ;;  %995 = vrot.lane.b32.xlu1 %v6428_v27, %s6075_s27 }
 0x24f   : > { %987 = vrot.lane.b32.xlu0 %v6428_v27, %s6076_s22  ;;  %993 = vrot.lane.b32.xlu1 %v6418_v21, %s6075_s27 }
 0x253   : > { %985 = vrot.lane.b32.xlu0 %v6418_v21, %s6076_s22  ;;  %991 = vrot.lane.b32.xlu1 %v953_v23, %s6075_s27 }
 0x257   : > { %983 = vrot.lane.b32.xlu0 %v953_v23, %s6076_s22 }
 0x25b   : > { %1005 = vrot.lane.b32.xlu0 %v6422_v25, %s6077_s23 }
 0x25f   : > { %1003 = vrot.lane.b32.xlu0 %v6428_v27, %s6077_s23 }
 0x263   : > { %1001 = vrot.lane.b32.xlu0 %v6418_v21, %s6077_s23 }
 0x267   : > { %999 = vrot.lane.b32.xlu0 %v953_v23, %s6077_s23 }
 0x2b1   : > { %v6453_v28 = vpop.permute.xlu1 %977 }
 0x2b5   : > { %v6455_v29 = vpop.permute.xlu0 %981  ;;  %v976_v30 = vpop.permute.xlu1 %975 }
 0x2b6   : > { %1115 = vrot.lane.b32.xlu1 %v6455_v29, %s6077_s23  ;;  %5069 = vmatprep.mubr.msk.f32.mxu1 %vm1007_vm2, %v976_v30 }
 0x2b9   : > { %v6460_v31 = vpop.permute.xlu0 %979  ;;  %v6470_v33 = vpop.permute.xlu1 %997 }
 0x2ba   : > { %1113 = vrot.lane.b32.xlu1 %v6460_v31, %s6077_s23 }
 0x2bd   : > { %v6464_v32 = vpop.permute.xlu0 %989  ;;  %v6479_v36 = vpop.permute.xlu1 %995 }
 0x2be   : > { %1224 = vrot.lane.b32.xlu0 %v6464_v32, %s6077_s23  ;;  %1111 = vrot.lane.b32.xlu1 %v6453_v28, %s6077_s23 }
 0x2c1   : > { %v6472_v34 = vpop.permute.xlu0 %987  ;;  %v6491_v38 = vpop.permute.xlu1 %993 }
 0x2c2   : > { %1222 = vrot.lane.b32.xlu0 %v6472_v34, %s6077_s23  ;;  %1109 = vrot.lane.b32.xlu1 %v976_v30, %s6077_s23 }
 0x2c5   : > { %v6477_v35 = vpop.permute.xlu0 %985  ;;  %v6499_v41 = vpop.permute.xlu1 %991 }
 0x2c6   : > { %1220 = vrot.lane.b32.xlu0 %v6477_v35, %s6077_s23  ;;  %1333 = vrot.lane.b32.xlu1 %v6470_v33, %s6077_s23 }
 0x2c9   : > { %v6485_v37 = vpop.permute.xlu0 %983 }
 0x2ca   : > { %1218 = vrot.lane.b32.xlu0 %v6485_v37, %s6077_s23  ;;  %1331 = vrot.lane.b32.xlu1 %v6479_v36, %s6077_s23 }
 0x2cd   : > { %v1006_v39 = vpop.permute.xlu0 %1005 }
 0x2ce   : > { %1727 = vrot.lane.b32.xlu0 %v6455_v29, %s6078_s24  ;;  %5047 = vmatprep.subr.msk.mxu0 %vm1007_vm2, %v1006_v39 }
 0x2cf   : > { %1329 = vrot.lane.b32.xlu1 %v6491_v38, %s6077_s23  ;;  %5048 = vmatpush3.xpose.msk.msra.mxu0 %vm1007_vm2, %v1006_v39 }
 0x2d1   : > { %v1004_v40 = vpop.permute.xlu0 %1003 }
 0x2d2   : > { %1614 = vrot.lane.b32.xlu0 %v6418_v21, %s6078_s24  ;;  %5049 = vmatprep.subr.msk.mxu0 %vm1007_vm2, %v1004_v40 }
 0x2d3   : > { %1327 = vrot.lane.b32.xlu1 %v6499_v41, %s6077_s23  ;;  %5050 = vmatpush3.xpose.msk.msra.mxu0 %vm1007_vm2, %v1004_v40 }
 0x2d5   : > { %v1002_v42 = vpop.permute.xlu0 %1001 }
 0x2d6   : > { %1612 = vrot.lane.b32.xlu0 %v953_v23, %s6078_s24  ;;  %5051 = vmatprep.subr.msk.mxu0 %vm1007_vm2, %v1002_v42 }
 0x2d7   : > { %1618 = vrot.lane.b32.xlu1 %v6422_v25, %s6078_s24  ;;  %5052 = vmatpush3.xpose.msk.msra.mxu0 %vm1007_vm2, %v1002_v42 }
 0x2d9   : > { %v1000_v43 = vpop.permute.xlu0 %999 }
 0x2da   : > { %1836 = vrot.lane.b32.xlu0 %v6464_v32, %s6078_s24  ;;  %5053 = vmatprep.subr.msk.mxu0 %vm1007_vm2, %v1000_v43 }
 0x2db   : > { %1616 = vrot.lane.b32.xlu1 %v6428_v27, %s6078_s24  ;;  %5054 = vmatpush3.xpose.msk.msra.mxu0 %vm1007_vm2, %v1000_v43 }
 0x2de   : > { %1834 = vrot.lane.b32.xlu0 %v6472_v34, %s6078_s24  ;;  %5056 = vmatmul.mubr.msk.f32.vlgmr.msra.gmra.mxu0 %vm1007_vm2, %v6418_v21 }
 0x2df   : > { %1723 = vrot.lane.b32.xlu1 %v6453_v28, %s6078_s24  ;;  %5058 = vmatprep.mubr.msk.f32.mxu0 %vm1007_vm2, %v6428_v27 }
 0x2e2   : > { %5059 = vmatmul.mubr.msk.f32.gmra.mxu0 %vm1007_vm2, %v6422_v25 }
 0x2e3   : > { %1721 = vrot.lane.b32.xlu1 %v976_v30, %s6078_s24  ;;  %5083 = vmatprep.mubr.msk.f32.mxu0 %vm1007_vm2, %v6485_v37 }
 0x2e7   : > { %1945 = vrot.lane.b32.xlu1 %v6470_v33, %s6078_s24 }
 0x2eb   : > { %1725 = vrot.lane.b32.xlu1 %v6460_v31, %s6078_s24 }
 0x2ef   : > { %1943 = vrot.lane.b32.xlu1 %v6479_v36, %s6078_s24 }
 0x328   : > { %v1116_v44 = vpop.permute.xlu1 %1115 }
 0x329   : > { %5061 = vmatprep.subr.msk.mxu1 %vm1007_vm2, %v1116_v44 }
 0x32a   : > { %5062 = vmatpush3.xpose.msk.msra.mxu1 %vm1007_vm2, %v1116_v44 }
 0x32c   : > { %v1114_v45 = vpop.permute.xlu1 %1113 }
 0x32d   : > { %5063 = vmatprep.subr.msk.mxu1 %vm1007_vm2, %v1114_v45 }
 0x32e   : > { %5064 = vmatpush3.xpose.msk.msra.mxu1 %vm1007_vm2, %v1114_v45 }
 0x330   : > { %v1225_v46 = vpop.permute.xlu0 %1224  ;;  %v1112_v47 = vpop.permute.xlu1 %1111 }
 0x331   : > { %5065 = vmatprep.subr.msk.mxu1 %vm1007_vm2, %v1112_v47  ;;  %5075 = vmatprep.subr.msk.mxu0 %vm1007_vm2, %v1225_v46 }
 0x332   : > { %5066 = vmatpush3.xpose.msk.msra.mxu1 %vm1007_vm2, %v1112_v47  ;;  %5076 = vmatpush3.xpose.msk.msra.mxu0 %vm1007_vm2, %v1225_v46 }
 0x334   : > { %v1223_v48 = vpop.permute.xlu0 %1222  ;;  %v1110_v49 = vpop.permute.xlu1 %1109 }
 0x335   : > { %5067 = vmatprep.subr.msk.mxu1 %vm1007_vm2, %v1110_v49  ;;  %5077 = vmatprep.subr.msk.mxu0 %vm1007_vm2, %v1223_v48 }
 0x336   : > { %5068 = vmatpush3.xpose.msk.msra.mxu1 %vm1007_vm2, %v1110_v49  ;;  %5078 = vmatpush3.xpose.msk.msra.mxu0 %vm1007_vm2, %v1223_v48 }
 0x338   : > { %v1221_v50 = vpop.permute.xlu0 %1220  ;;  %v1334_v51 = vpop.permute.xlu1 %1333 }
 0x339   : > { %5070 = vmatmul.mubr.msk.f32.vlgmr.msra.gmra.mxu1 %vm1007_vm2, %v6453_v28  ;;  %5079 = vmatprep.subr.msk.mxu0 %vm1007_vm2, %v1221_v50 }
 0x33a   : > { %5089 = vmatprep.subr.msk.mxu1 %vm1007_vm2, %v1334_v51  ;;  %5072 = vmatprep.mubr.msk.f32.mxu1 %vm1007_vm2, %v6460_v31 }
 0x33b   : > { %5080 = vmatpush3.xpose.msk.msra.mxu0 %vm1007_vm2, %v1221_v50  ;;  %5090 = vmatpush3.xpose.msk.msra.mxu1 %vm1007_vm2, %v1334_v51 }
 0x33c   : > { %v1219_v52 = vpop.permute.xlu0 %1218  ;;  %v1332_v53 = vpop.permute.xlu1 %1331 }
 0x33d   : > { %5073 = vmatmul.mubr.msk.f32.gmra.mxu1 %vm1007_vm2, %v6455_v29  ;;  %5081 = vmatprep.subr.msk.mxu0 %vm1007_vm2, %v1219_v52 }
 0x33e   : > { %5091 = vmatprep.subr.msk.mxu1 %vm1007_vm2, %v1332_v53  ;;  %5097 = vmatprep.mubr.msk.f32.mxu1 %vm1007_vm2, %v6499_v41 }
 0x33f   : > { %5082 = vmatpush3.xpose.msk.msra.mxu0 %vm1007_vm2, %v1219_v52  ;;  %5092 = vmatpush3.xpose.msk.msra.mxu1 %vm1007_vm2, %v1332_v53 }
 0x340   : > { %v1728_v54 = vpop.permute.xlu0 %1727 }
 0x341   : > { %v1330_v55 = vpop.permute.xlu1 %1329 }
 0x342   : > { %5084 = vmatmul.mubr.msk.f32.vlgmr.msra.gmra.mxu0 %vm1007_vm2, %v6477_v35  ;;  %5093 = vmatprep.subr.msk.mxu1 %vm1007_vm2, %v1330_v55 }
 0x343   : > { %5086 = vmatprep.mubr.msk.f32.mxu0 %vm1007_vm2, %v6472_v34  ;;  %5094 = vmatpush3.xpose.msk.msra.mxu1 %vm1007_vm2, %v1330_v55 }
 0x344   : > { %v1615_v57 = vpop.permute.xlu0 %1614 }
 0x345   : > { %v1328_v56 = vpop.permute.xlu1 %1327 }
 0x346   : > { %5087 = vmatmul.mubr.msk.f32.gmra.mxu0 %vm1007_vm2, %v6464_v32  ;;  %5095 = vmatprep.subr.msk.mxu1 %vm1007_vm2, %v1328_v56 }
 0x347   : > { %5096 = vmatpush3.xpose.msk.msra.mxu1 %vm1007_vm2, %v1328_v56 }
 0x348   : > { %5117 = vmatprep.subr.mxu1 %v1728_v54  ;;  %v1613_v59 = vpop.permute.xlu0 %1612 }
 0x349   : > { %v1619_v58 = vpop.permute.xlu1 %1618 }
 0x34a   : > { %5098 = vmatmul.mubr.msk.f32.vlgmr.msra.gmra.mxu1 %vm1007_vm2, %v6491_v38  ;;  %5103 = vmatprep.subr.mxu0 %v1619_v58 }
 0x34b   : > { %5100 = vmatprep.mubr.msk.f32.mxu1 %vm1007_vm2, %v6479_v36  ;;  %5104 = vmatpush3.msra.mxu0 %v1619_v58 }
 0x34c   : > { %5118 = vmatpush3.msra.mxu1 %v1728_v54  ;;  %v6581_v62 = vpop.permute.xlu0 %1836 }
 0x34d   : > { %v1617_v60 = vpop.permute.xlu1 %1616 }
 0x34e   : > { %5101 = vmatmul.mubr.msk.f32.gmra.mxu1 %vm1007_vm2, %v6470_v33  ;;  %5105 = vmatprep.subr.mxu0 %v1617_v60 }
 0x34f   : > { %5106 = vmatpush3.msra.mxu0 %v1617_v60 }
 0x350   : > { %5107 = vmatprep.subr.mxu0 %v1615_v57 }
 0x351   : > { %v1724_v61 = vpop.permute.xlu1 %1723  ;;  %5108 = vmatpush3.msra.mxu0 %v1615_v57 }
 0x352   : > { %5109 = vmatprep.subr.mxu0 %v1613_v59 }
 0x353   : > { %5110 = vmatpush3.msra.mxu0 %v1613_v59 }
 0x354   : > { %5131 = vmatprep.subr.mxu0 %v6581_v62 }
 0x355   : > { %v1722_v63 = vpop.permute.xlu1 %1721 }
 0x359   : > { %v6584_v0 = vpop.permute.xlu1 %1945 }
 0x35d   : > { %v1726_v1 = vpop.permute.xlu1 %1725 }
 0x35e   : > { %5119 = vmatprep.subr.mxu1 %v1726_v1 }
 0x35f   : > { %5120 = vmatpush3.msra.mxu1 %v1726_v1 }
 0x360   : > { %5121 = vmatprep.subr.mxu1 %v1724_v61 }
 0x361   : > { %5122 = vmatpush3.msra.mxu1 %v1724_v61  ;;  %v6655_v1 = vpop.permute.xlu1 %1943 }
 0x362   : > { %5123 = vmatprep.subr.mxu1 %v1722_v63 }
 0x363   : > { %5124 = vmatpush3.msra.mxu1 %v1722_v63  ;;  %v6653_v63 = vpop.permute.xlu0 %1834 }
 0x364   : > { %5145 = vmatprep.subr.mxu1 %v6584_v0 }
 0x39e   : > { %v5057_v3 = vpop.f32.mrf.mxu0 }
 0x39f   : > { %v6587_v5 = vadd.f32 %v5057_v3, %v752_v2 }
 0x3a0   : > { %v1090_v6 = vpop.f32.mrf.mxu0 }
 0x3a1   : > { %v6589_v8 = vadd.f32 %v1090_v6, %v751_v4  ;;  %v1439_v9 = vsel %vm873_vm1, %v6587_v5, -inf }
 0x3a2   : > { %1440 = vmax.xlane.f32.xlu1 %v1439_v9  ;;  %v5060_v10 = vpop.f32.mrf.mxu0 }
 0x3a3   : > { %v6593_v12 = vadd.f32 %v5060_v10, %v754_v7  ;;  %v1436_v15 = vsel %vm873_vm1, %v6589_v8, -inf }
 0x3a4   : > { %v1100_v16 = vpop.f32.mrf.mxu0  ;;  %1437 = vmax.xlane.f32.xlu0 %v1436_v15 }
 0x3a5   : > { %v6597_v19 = vadd.f32 %v1100_v16, %v753_v11  ;;  %v1445_v21 = vsel %vm873_vm1, %v6593_v12, -inf }
 0x3a7   : > { %v1442_v20 = vsel %vm873_vm1, %v6597_v19, -inf }
 0x3a8   : > { %1443 = vmax.xlane.f32.xlu1 %v1442_v20  ;;  %1446 = vmax.xlane.f32.xlu0 %v1445_v21 }
 0x3f9   : > { %v5071_v22 = vpop.f32.mrf.mxu1 }
 0x3fa   : > { %v6603_v23 = vadd.f32 %v5071_v22, %v752_v2 }
 0x3fb   : > { %v1199_v24 = vpop.f32.mrf.mxu1 }
 0x3fc   : > { %v1451_v25 = vsel %vm873_vm1, %v6603_v23, -inf  ;;  %v6609_v31 = vadd.f32 %v1199_v24, %v751_v4 }
 0x3fd   : > { %1452 = vmax.xlane.f32.xlu0 %v1451_v25  ;;  %v5074_v26 = vpop.f32.mrf.mxu1 }
 0x3fe   : > { %v6619_v42 = vadd.f32 %v5074_v26, %v754_v7  ;;  %v1448_v43 = vsel %vm873_vm1, %v6609_v31, -inf }
 0x3ff   : > { %v1209_v29 = vpop.f32.mrf.mxu1 }
 0x400   : > { %v6615_v36 = vadd.f32 %v1209_v29, %v753_v11  ;;  %v1457_v49 = vsel %vm873_vm1, %v6619_v42, -inf }
 0x402   : > { %v5085_v27 = vpop.f32.mrf.mxu0  ;;  %v1454_v46 = vsel %vm873_vm1, %v6615_v36, -inf }
 0x403   : > { %v6607_v28 = vadd.f32 %v5085_v27, %v752_v2 }
 0x404   : > { %v1308_v30 = vpop.f32.mrf.mxu0 }
 0x405   : > { %v6611_v32 = vadd.f32 %v1308_v30, %v751_v4  ;;  %v1463_v33 = vsel %vm873_vm1, %v6607_v28, -inf }
 0x406   : > { %v5088_v34 = vpop.f32.mrf.mxu0  ;;  %1464 = vmax.xlane.f32.xlu0 %v1463_v33 }
 0x407   : > { %v1460_v39 = vsel %vm873_vm1, %v6611_v32, -inf  ;;  %v6627_v48 = vadd.f32 %v5088_v34, %v754_v7 }
 0x408   : > { %v1318_v40 = vpop.f32.mrf.mxu0  ;;  %1461 = vmax.xlane.f32.xlu1 %v1460_v39 }
 0x409   : > { %v6623_v45 = vadd.f32 %v1318_v40, %v753_v11  ;;  %v1469_v55 = vsel %vm873_vm1, %v6627_v48, -inf }
 0x40a   : > { %v5099_v44 = vpop.f32.mrf.mxu1  ;;  %1449 = vmax.xlane.f32.xlu0 %v1448_v43 }
 0x40b   : > { %v1466_v52 = vsel %vm873_vm1, %v6623_v45, -inf  ;;  %v6635_v54 = vadd.f32 %v5099_v44, %v752_v2 }
 0x40c   : > { %v1417_v47 = vpop.f32.mrf.mxu1  ;;  %1455 = vmax.xlane.f32.xlu1 %v1454_v46 }
 0x40d   : > { %v6631_v51 = vadd.f32 %v1417_v47, %v751_v4  ;;  %v1475_v59 = vsel %vm873_vm1, %v6635_v54, -inf }
 0x40e   : > { %v5102_v50 = vpop.f32.mrf.mxu1  ;;  %1458 = vmax.xlane.f32.xlu0 %v1457_v49 }
 0x40f   : > { %v1472_v57 = vsel %vm873_vm1, %v6631_v51, -inf  ;;  %v6643_v58 = vadd.f32 %v5102_v50, %v754_v7 }
 0x410   : > { %v1427_v53 = vpop.f32.mrf.mxu1  ;;  %1467 = vmax.xlane.f32.xlu1 %v1466_v52 }
 0x411   : > { %v6639_v56 = vadd.f32 %v1427_v53, %v753_v11  ;;  %v1481_v61 = vsel %vm873_vm1, %v6643_v58, -inf }
 0x412   : > { %1470 = vmax.xlane.f32.xlu0 %v1469_v55 }
 0x413   : > { %v1478_v60 = vsel %vm873_vm1, %v6639_v56, -inf }
 0x414   : > { %1473 = vmax.xlane.f32.xlu1 %v1472_v57 }
 0x416   : > { %1476 = vmax.xlane.f32.xlu0 %v1475_v59 }
 0x418   : > { %1479 = vmax.xlane.f32.xlu1 %v1478_v60 }
 0x41a   : > { %1482 = vmax.xlane.f32.xlu0 %v1481_v61 }
 0x429   : > { %1941 = vrot.lane.b32.xlu1 %v6491_v38, %s6078_s24 }
 0x42b   : > { %v1441_v2 = vpop.xlane.xlu1 %1440 }
 0x42c   : > { %v1485_v7 = vsub.f32 %v6587_v5, %v1441_v2 }
 0x42d   : > { %v1438_v3 = vpop.xlane.xlu0 %1437 }
 0x42e   : > { %v1484_v4 = vsub.f32 %v6589_v8, %v1438_v3  ;;  %v1502_v15 = vmul.f32 1.442695, %v1485_v7 }
 0x430   : > { %1832 = vrot.lane.b32.xlu0 %v6477_v35, %s6078_s24  ;;  %v1500_v10 = vmul.f32 1.442695, %v1484_v4 }
 0x431   : > { %v1444_v6 = vpop.xlane.xlu1 %1443  ;;  %v1447_v9 = vpop.xlane.xlu0 %1446 }
 0x432   : > { %v1486_v11 = vsub.f32 %v6597_v19, %v1444_v6  ;;  %v1487_v38 = vsub.f32 %v6593_v12, %v1447_v9  ;;  %5550 = vpow2.f32 %v1500_v10 }
 0x433   : > { %5552 = vpow2.f32 %v1502_v15 }
 0x434   : > { %v1504_v16 = vmul.f32 1.442695, %v1486_v11  ;;  %v1506_v20 = vmul.f32 1.442695, %v1487_v38 }
 0x436   : > { %5554 = vpow2.f32 %v1504_v16 }
 0x437   : > { %5556 = vpow2.f32 %v1506_v20 }
 0x43f   : > { %v6663_v35 = vpop.eup %5550 }
 0x440   : > { %v6665_v21 = vpop.eup %5552  ;;  %v1532_v5 = vsel %vm873_vm1, %v6663_v35, 0.0 }
 0x441   : > { %v1535_v19 = vsel %vm873_vm1, %v6665_v21, 0.0 }
 0x443   : > { %v6669_v8 = vpop.eup %5554 }
 0x444   : > { %v6673_v12 = vpop.eup %5556  ;;  %v1538_v22 = vsel %vm873_vm1, %v6669_v8, 0.0 }
 0x445   : > { %v1541_v24 = vsel %vm873_vm1, %v6673_v12, 0.0 }
 0x44d   : > { %1533 = vadd.xlane.f32.xlu1 %v1532_v5 }
 0x44f   : > { %1536 = vadd.xlane.f32.xlu0 %v1535_v19 }
 0x451   : > { %1539 = vadd.xlane.f32.xlu1 %v1538_v22 }
 0x453   : > { %1542 = vadd.xlane.f32.xlu0 %v1541_v24 }
 0x486   : > { %v1453_v25 = vpop.xlane.xlu0 %1452 }
 0x487   : > { %v1489_v26 = vsub.f32 %v6603_v23, %v1453_v25 }
 0x489   : > { %v1510_v27 = vmul.f32 1.442695, %v1489_v26 }
 0x48b   : > { %5558 = vpow2.f32 %v1510_v27 }
 0x48f   : > { %v1465_v29 = vpop.xlane.xlu0 %1464 }
 0x490   : > { %v1493_v30 = vsub.f32 %v6607_v28, %v1465_v29 }
 0x491   : > { %v1462_v33 = vpop.xlane.xlu1 %1461 }
 0x492   : > { %v1518_v34 = vmul.f32 1.442695, %v1493_v30  ;;  %v1492_v39 = vsub.f32 %v6611_v32, %v1462_v33 }
 0x493   : > { %v1450_v40 = vpop.xlane.xlu0 %1449 }
 0x494   : > { %5560 = vpow2.f32 %v1518_v34  ;;  %v1488_v43 = vsub.f32 %v6609_v31, %v1450_v40  ;;  %v1516_v46 = vmul.f32 1.442695, %v1492_v39 }
 0x495   : > { %v1456_v44 = vpop.xlane.xlu1 %1455 }
 0x496   : > { %v1508_v47 = vmul.f32 1.442695, %v1488_v43  ;;  %v1490_v49 = vsub.f32 %v6615_v36, %v1456_v44 }
 0x497   : > { %v1459_v50 = vpop.xlane.xlu0 %1458 }
 0x498   : > { %v6684_v23 = vpop.eup %5558  ;;  %5562 = vpow2.f32 %v1508_v47  ;;  %v1491_v52 = vsub.f32 %v6619_v42, %v1459_v50  ;;  %v1512_v32 = vmul.f32 1.442695, %v1490_v49 }
 0x499   : > { %v1468_v28 = vpop.xlane.xlu1 %1467  ;;  %v1547_v53 = vsel %vm873_vm1, %v6684_v23, 0.0  ;;  %5564 = vpow2.f32 %v1516_v46 }
 0x49a   : > { %v1514_v55 = vmul.f32 1.442695, %v1491_v52  ;;  %v1494_v31 = vsub.f32 %v6623_v45, %v1468_v28  ;;  %1548 = vadd.xlane.f32.xlu0 %v1547_v53 }
 0x49b   : > { %v1471_v57 = vpop.xlane.xlu0 %1470 }
 0x49c   : > { %5566 = vpow2.f32 %v1514_v55  ;;  %v1495_v36 = vsub.f32 %v6627_v48, %v1471_v57  ;;  %v1520_v59 = vmul.f32 1.442695, %v1494_v31 }
 0x49d   : > { %v1474_v60 = vpop.xlane.xlu1 %1473  ;;  %5568 = vpow2.f32 %v1512_v32 }
 0x49e   : > { %v1522_v61 = vmul.f32 1.442695, %v1495_v36  ;;  %v1496_v42 = vsub.f32 %v6631_v51, %v1474_v60 }
 0x49f   : > { %v1477_v2 = vpop.xlane.xlu0 %1476 }
 0x4a0   : > { %5570 = vpow2.f32 %v1522_v61  ;;  %v1497_v3 = vsub.f32 %v6635_v54, %v1477_v2  ;;  %v1524_v45 = vmul.f32 1.442695, %v1496_v42 }
 0x4a1   : > { %v6693_v4 = vpop.eup %5560  ;;  %5572 = vpow2.f32 %v1520_v59  ;;  %v1480_v6 = vpop.xlane.xlu1 %1479 }
 0x4a2   : > { %v1526_v7 = vmul.f32 1.442695, %v1497_v3  ;;  %v1498_v9 = vsub.f32 %v6639_v56, %v1480_v6  ;;  %v1559_v48 = vsel %vm873_vm1, %v6693_v4, 0.0 }
 0x4a3   : > { %1560 = vadd.xlane.f32.xlu0 %v1559_v48  ;;  %v1483_v10 = vpop.xlane.xlu0 %1482 }
 0x4a4   : > { %5574 = vpow2.f32 %v1526_v7  ;;  %v1499_v51 = vsub.f32 %v6643_v58, %v1483_v10  ;;  %v1528_v54 = vmul.f32 1.442695, %v1498_v9 }
 0x4a5   : > { %v6699_v11 = vpop.eup %5562  ;;  %5576 = vpow2.f32 %v1524_v45  ;;  %v6743_v44 = vpop.permute.xlu1 %1941 }
 0x4a6   : > { %v1530_v15 = vmul.f32 1.442695, %v1499_v51  ;;  %v1544_v38 = vsel %vm873_vm1, %v6699_v11, 0.0  ;;  %v6703_v16 = vpop.eup %5564 }
 0x4a7   : > { %1545 = vadd.xlane.f32.xlu1 %v1544_v38  ;;  %v1556_v20 = vsel %vm873_vm1, %v6703_v16, 0.0  ;;  %v1833_v46 = vpop.permute.xlu0 %1832 }
 0x4a8   : > { %5578 = vpow2.f32 %v1530_v15 }
 0x4a9   : > { %v6705_v56 = vpop.eup %5566  ;;  %5580 = vpow2.f32 %v1528_v54 }
 0x4aa   : > { %v1553_v58 = vsel %vm873_vm1, %v6705_v56, 0.0  ;;  %v6711_v5 = vpop.eup %5568 }
 0x4ab   : > { %1557 = vadd.xlane.f32.xlu1 %v1556_v20  ;;  %1554 = vadd.xlane.f32.xlu0 %v1553_v58  ;;  %v1550_v24 = vsel %vm873_vm1, %v6711_v5, 0.0 }
 0x4ad   : > { %v6713_v19 = vpop.eup %5570 }
 0x4ae   : > { %v6715_v22 = vpop.eup %5572  ;;  %v1565_v25 = vsel %vm873_vm1, %v6713_v19, 0.0 }
 0x4af   : > { %1551 = vadd.xlane.f32.xlu1 %v1550_v24  ;;  %1566 = vadd.xlane.f32.xlu0 %v1565_v25  ;;  %v1562_v27 = vsel %vm873_vm1, %v6715_v22, 0.0 }
 0x4b1   : > { %v6721_v26 = vpop.eup %5574 }
 0x4b2   : > { %v1571_v29 = vsel %vm873_vm1, %v6721_v26, 0.0  ;;  %v6727_v30 = vpop.eup %5576 }
 0x4b3   : > { %1563 = vadd.xlane.f32.xlu1 %v1562_v27  ;;  %1572 = vadd.xlane.f32.xlu0 %v1571_v29  ;;  %v1568_v34 = vsel %vm873_vm1, %v6727_v30, 0.0 }
 0x4b5   : > { %v6729_v33 = vpop.eup %5578 }
 0x4b6   : > { %v1577_v39 = vsel %vm873_vm1, %v6729_v33, 0.0  ;;  %v6735_v40 = vpop.eup %5580 }
 0x4b7   : > { %1569 = vadd.xlane.f32.xlu1 %v1568_v34  ;;  %1578 = vadd.xlane.f32.xlu0 %v1577_v39  ;;  %v1574_v43 = vsel %vm873_vm1, %v6735_v40, 0.0 }
 0x4bb   : > { %1575 = vadd.xlane.f32.xlu1 %v1574_v43 }
 0x4cc   : > { %1939 = vrot.lane.b32.xlu1 %v6499_v41, %s6078_s24 }
 0x4cd   : > { %1830 = vrot.lane.b32.xlu0 %v6485_v37, %s6078_s24 }
 0x4d6   : > { %v1534_v47 = vpop.xlane.xlu1 %1533 }
 0x4d7   : > { %5582 = vrcp.f32 %v1534_v47  ;;  %v2109_v47 = vld [vmem:[%s7467_s5] sm:$0xff] }
 0x4d8   : > { %v1537_v49 = vpop.xlane.xlu0 %1536 }
 0x4d9   : > { %5584 = vrcp.f32 %v1537_v49 }
 0x4da   : > { %v1540_v50 = vpop.xlane.xlu1 %1539 }
 0x4db   : > { %5586 = vrcp.f32 %v1540_v50 }
 0x4dc   : > { %v1543_v52 = vpop.xlane.xlu0 %1542 }
 0x4dd   : > { %5588 = vrcp.f32 %v1543_v52 }
 0x4e4   : > { %v5583_v28 = vpop.eup %5582 }
 0x4e5   : > { %v1596_v53 = vmul.f32 %v5583_v28, %v6663_v35 }
 0x4e6   : > { %v5585_v32 = vpop.eup %5584 }
 0x4e7   : > { %v1597_v41 = vmul.f32 %v5585_v32, %v6665_v21  ;;  %5111 = vmatprep.mubr.msk.f32.mxu0 %vm873_vm1, %v1596_v53 }
 0x4e8   : > { %v5587_v37 = vpop.eup %5586 }
 0x4e9   : > { %5112 = vmatmul.mubr.msk.f32.vlgmr.msra.gmra.mxu0 %vm873_vm1, %v1597_v41  ;;  %v1598_v55 = vmul.f32 %v5587_v37, %v6669_v8 }
 0x4ea   : > { %v5589_v31 = vpop.eup %5588  ;;  %5132 = vmatpush3.msra.mxu0 %v6581_v62 }
 0x4eb   : > { %5133 = vmatprep.subr.mxu0 %v6653_v63  ;;  %5114 = vmatprep.mubr.msk.f32.mxu0 %vm873_vm1, %v1598_v55  ;;  %v1599_v57 = vmul.f32 %v5589_v31, %v6673_v12 }
 0x4ec   : > { %5134 = vmatpush3.msra.mxu0 %v6653_v63 }
 0x4ed   : > { %5135 = vmatprep.subr.mxu0 %v1833_v46  ;;  %5115 = vmatmul.mubr.msk.f32.gmra.mxu0 %vm873_vm1, %v1599_v57 }
 0x4ee   : > { %5136 = vmatpush3.msra.mxu0 %v1833_v46 }
 0x523   : > { %v1549_v35 = vpop.xlane.xlu0 %1548 }
 0x524   : > { %5590 = vrcp.f32 %v1549_v35 }
 0x52c   : > { %v1561_v21 = vpop.xlane.xlu0 %1560 }
 0x530   : > { %v1546_v36 = vpop.xlane.xlu1 %1545 }
 0x531   : > { %5592 = vrcp.f32 %v1546_v36  ;;  %v5591_v61 = vpop.eup %5590 }
 0x532   : > { %v1601_v3 = vmul.f32 %v5591_v61, %v6684_v23 }
 0x534   : > { %v1558_v8 = vpop.xlane.xlu1 %1557  ;;  %v1555_v59 = vpop.xlane.xlu0 %1554 }
 0x535   : > { %5594 = vrcp.f32 %v1558_v8 }
 0x536   : > { %5596 = vrcp.f32 %v1561_v21 }
 0x537   : > { %5598 = vrcp.f32 %v1555_v59 }
 0x538   : > { %v1552_v62 = vpop.xlane.xlu1 %1551  ;;  %v1567_v60 = vpop.xlane.xlu0 %1566 }
 0x539   : > { %5600 = vrcp.f32 %v1552_v62 }
 0x53a   : > { %5602 = vrcp.f32 %v1567_v60 }
 0x53c   : > { %v1564_v12 = vpop.xlane.xlu1 %1563  ;;  %v1573_v63 = vpop.xlane.xlu0 %1572 }
 0x53d   : > { %5604 = vrcp.f32 %v1564_v12 }
 0x53e   : > { %v5593_v42 = vpop.eup %5592  ;;  %5606 = vrcp.f32 %v1573_v63 }
 0x53f   : > { %v1600_v2 = vmul.f32 %v5593_v42, %v6699_v11 }
 0x540   : > { %v1570_v6 = vpop.xlane.xlu1 %1569  ;;  %v1579_v45 = vpop.xlane.xlu0 %1578 }
 0x541   : > { %5608 = vrcp.f32 %v1570_v6  ;;  %5125 = vmatprep.mubr.msk.f32.mxu1 %vm873_vm1, %v1600_v2 }
 0x542   : > { %v5595_v7 = vpop.eup %5594  ;;  %5126 = vmatmul.mubr.msk.f32.vlgmr.msra.gmra.mxu1 %vm873_vm1, %v1601_v3  ;;  %5610 = vrcp.f32 %v1579_v45 }
 0x543   : > { %v5597_v9 = vpop.eup %5596  ;;  %5146 = vmatpush3.msra.mxu1 %v6584_v0  ;;  %v1604_v48 = vmul.f32 %v5595_v7, %v6703_v16 }
 0x544   : > { %5147 = vmatprep.subr.mxu1 %v6655_v1  ;;  %v1576_v10 = vpop.xlane.xlu1 %1575  ;;  %v1831_v51 = vpop.permute.xlu0 %1830  ;;  %v1605_v54 = vmul.f32 %v5597_v9, %v6693_v4 }
 0x545   : > { %v5599_v23 = vpop.eup %5598  ;;  %5612 = vrcp.f32 %v1576_v10  ;;  %5148 = vmatpush3.msra.mxu1 %v6655_v1  ;;  %5137 = vmatprep.subr.mxu0 %v1831_v51 }
 0x546   : > { %v5601_v11 = vpop.eup %5600  ;;  %5139 = vmatprep.mubr.msk.f32.mxu0 %vm873_vm1, %v1604_v48  ;;  %5149 = vmatprep.subr.mxu1 %v6743_v44  ;;  %v1603_v38 = vmul.f32 %v5599_v23, %v6705_v56 }
 0x547   : > { %5138 = vmatpush3.msra.mxu0 %v1831_v51  ;;  %5150 = vmatpush3.msra.mxu1 %v6743_v44  ;;  %v1602_v0 = vmul.f32 %v5601_v11, %v6711_v5  ;;  %v5603_v16 = vpop.eup %5602  ;;  %v2110_v44 = vld [vmem:[%s7467_s5 + $0x8] sm:$0xff] }
 0x548   : > { %5140 = vmatmul.mubr.msk.f32.vlgmr.msra.gmra.mxu0 %vm873_vm1, %v1605_v54  ;;  %v1940_v15 = vpop.permute.xlu1 %1939  ;;  %v1607_v20 = vmul.f32 %v5603_v16, %v6713_v19  ;;  %v4694_v54 = vld [vmem:[#allocation8] ss:$0 sm:$0xff] }
 0x549   : > { %5128 = vmatprep.mubr.msk.f32.mxu1 %vm873_vm1, %v1602_v0  ;;  %5151 = vmatprep.subr.mxu1 %v1940_v15 }
 0x54a   : > { %v5605_v1 = vpop.eup %5604  ;;  %5129 = vmatmul.mubr.msk.f32.gmra.mxu1 %vm873_vm1, %v1603_v38 }
 0x54b   : > { %5152 = vmatpush3.msra.mxu1 %v1940_v15  ;;  %v1606_v4 = vmul.f32 %v5605_v1, %v6715_v22  ;;  %v5607_v58 = vpop.eup %5606 }
 0x54c   : > { %v1609_v24 = vmul.f32 %v5607_v58, %v6721_v26  ;;  %v2112_v26 = vld [vmem:[%s7467_s5 + $0x18] sm:$0xff] }
 0x54d   : > { %5142 = vmatprep.mubr.msk.f32.mxu0 %vm873_vm1, %v1606_v4  ;;  %5159 = vmatprep.subr.mxu0 %v2112_v26 }
 0x54e   : > { %v5609_v5 = vpop.eup %5608  ;;  %5143 = vmatmul.mubr.msk.f32.gmra.mxu0 %vm873_vm1, %v1607_v20 }
 0x54f   : > { %v1608_v56 = vmul.f32 %v5609_v5, %v6727_v30  ;;  %v5611_v25 = vpop.eup %5610  ;;  %5160 = vmatpush3.msra.mxu0 %v2112_v26 }
 0x550   : > { %v1611_v19 = vmul.f32 %v5611_v25, %v6729_v33  ;;  %v2111_v33 = vld [vmem:[%s7467_s5 + $0x10] sm:$0xff] }
 0x551   : > { %5153 = vmatprep.mubr.msk.f32.mxu1 %vm873_vm1, %v1608_v56  ;;  %5161 = vmatprep.subr.mxu0 %v2111_v33 }
 0x552   : > { %v5613_v27 = vpop.eup %5612  ;;  %5154 = vmatmul.mubr.msk.f32.vlgmr.msra.gmra.mxu1 %vm873_vm1, %v1609_v24  ;;  %5162 = vmatpush3.msra.mxu0 %v2111_v33 }
 0x553   : > { %v1610_v22 = vmul.f32 %v5613_v27, %v6735_v40  ;;  %5163 = vmatprep.subr.mxu0 %v2110_v44 }
 0x554   : > { %5164 = vmatpush3.msra.mxu0 %v2110_v44 }
 0x555   : > { %5156 = vmatprep.mubr.msk.f32.mxu1 %vm873_vm1, %v1610_v22  ;;  %5165 = vmatprep.subr.mxu0 %v2109_v47 }
 0x556   : > { %5157 = vmatmul.mubr.msk.f32.gmra.mxu1 %vm873_vm1, %v1611_v19  ;;  %5166 = vmatpush3.msra.mxu0 %v2109_v47 }
 0x5a9   : > { %v5113_v29 = vpop.f32.mrf.mxu0 }
 0x5ab   : > { %v1702_v34 = vpop.f32.mrf.mxu0 }
 0x5ad   : > { %v6785_v39 = vpop.f32.mrf.mxu0 }
 0x5af   : > { %v1712_v40 = vpop.f32.mrf.mxu0 }
 0x602   : > { %v5127_v30 = vpop.f32.mrf.mxu1 }
 0x603   : > { %2054 = vrot.lane.b32.xlu1 %v5127_v30, %s6079_s0 }
 0x604   : > { %v1811_v43 = vpop.f32.mrf.mxu1 }
 0x605   : > { %2052 = vrot.lane.b32.xlu0 %v1811_v43, %s6079_s0 }
 0x608   : > { %v5141_v46 = vpop.f32.mrf.mxu0 }
 0x609   : > { %2070 = vrot.lane.b32.xlu1 %v5141_v46, %s7498_s26 }
 0x60a   : > { %v1920_v49 = vpop.f32.mrf.mxu0  ;;  %v5130_v50 = vpop.f32.mrf.mxu1 }
 0x60b   : > { %2068 = vrot.lane.b32.xlu0 %v1920_v49, %s7498_s26 }
 0x60c   : > { %v1821_v52 = vpop.f32.mrf.mxu1 }
 0x60d   : > { %2058 = vrot.lane.b32.xlu1 %v5130_v50, %s6079_s0 }
 0x60e   : > { %v5144_v28 = vpop.f32.mrf.mxu0 }
 0x60f   : > { %2056 = vrot.lane.b32.xlu0 %v1821_v52, %s6079_s0 }
 0x610   : > { %v1930_v53 = vpop.f32.mrf.mxu0 }
 0x611   : > { %2074 = vrot.lane.b32.xlu1 %v5144_v28, %s7498_s26 }
 0x612   : > { %v5155_v32 = vpop.f32.mrf.mxu1 }
 0x613   : > { %2072 = vrot.lane.b32.xlu0 %v1930_v53, %s7498_s26  ;;  %s7540_s26 = smov 24  }
 0x614   : > { %v2029_v41 = vpop.f32.mrf.mxu1 }
 0x615   : > { %2086 = vrot.lane.b32.xlu1 %v5155_v32, %s7496_s19 }
 0x616   : > { %v5158_v37 = vpop.f32.mrf.mxu1 }
 0x617   : > { %2084 = vrot.lane.b32.xlu0 %v2029_v41, %s7496_s19  ;;  %v2299_v41 = vld [vmem:[%s7471_s9 + $0x18] sm:$0xff] }
 0x618   : > { %v2039_v55 = vpop.f32.mrf.mxu1  ;;  %5173 = vmatprep.subr.mxu1 %v2299_v41 }
 0x619   : > { %2090 = vrot.lane.b32.xlu1 %v5158_v37, %s7496_s19  ;;  %v2298_v37 = vld [vmem:[%s7471_s9 + $0x10] sm:$0xff]  ;;  %5174 = vmatpush3.msra.mxu1 %v2299_v41 }
 0x61a   : > { %5175 = vmatprep.subr.mxu1 %v2298_v37 }
 0x61b   : > { %2088 = vrot.lane.b32.xlu0 %v2039_v55, %s7496_s19  ;;  %v2297_v55 = vld [vmem:[%s7471_s9 + $0x8] sm:$0xff]  ;;  %5176 = vmatpush3.msra.mxu1 %v2298_v37 }
 0x61c   : > { %5177 = vmatprep.subr.mxu1 %v2297_v55 }
 0x61d   : > { %5178 = vmatpush3.msra.mxu1 %v2297_v55 }
 0x675   : > { %v2055_v31 = vpop.permute.xlu1 %2054 }
 0x676   : > { %v2097_v63 = vsel %vm1007_vm2, %v5113_v29, %v2055_v31  ;;  %v2296_v31 = vld [vmem:[%s7471_s9] sm:$0xff] }
 0x677   : > { %v2053_v57 = vpop.permute.xlu0 %2052  ;;  %5179 = vmatprep.subr.mxu1 %v2296_v31 }
 0x678   : > { %v2096_v12 = vsel %vm1007_vm2, %v1702_v34, %v2053_v57  ;;  %5180 = vmatpush3.msra.mxu1 %v2296_v31  ;;  %v2415_v57 = vld [vmem:[%s7473_s11 + $0x38] sm:$0xff] }
 0x679   : > { %5187 = vmatprep.subr.mxu0 %v2415_v57 }
 0x67b   : > { %v2071_v35 = vpop.permute.xlu1 %2070 }
 0x67c   : > { %v2101_v2 = vsel %vm764_vm0, %v2097_v63, %v2071_v35  ;;  %v2414_v35 = vld [vmem:[%s7473_s11 + $0x30] sm:$0xff] }
 0x67d   : > { %v2069_v21 = vpop.permute.xlu0 %2068 }
 0x67e   : > { %v2100_v61 = vsel %vm764_vm0, %v2096_v12, %v2069_v21  ;;  %v2413_v21 = vld [vmem:[%s7473_s11 + $0x28] sm:$0xff] }
 0x67f   : > { %v2059_v36 = vpop.permute.xlu1 %2058 }
 0x680   : > { %v2099_v9 = vsel %vm1007_vm2, %v6785_v39, %v2059_v36  ;;  %v2412_v36 = vld [vmem:[%s7473_s11 + $0x20] sm:$0xff] }
 0x681   : > { %v2057_v8 = vpop.permute.xlu0 %2056 }
 0x682   : > { %v2098_v45 = vsel %vm1007_vm2, %v1712_v40, %v2057_v8 }
 0x683   : > { %v2075_v59 = vpop.permute.xlu1 %2074 }
 0x684   : > { %v2103_v51 = vsel %vm764_vm0, %v2099_v9, %v2075_v59 }
 0x685   : > { %v2073_v62 = vpop.permute.xlu0 %2072 }
 0x686   : > { %v2102_v48 = vsel %vm764_vm0, %v2098_v45, %v2073_v62 }
 0x687   : > { %v2087_v60 = vpop.permute.xlu1 %2086 }
 0x688   : > { %v2106_v6 = vsel %vm2104_vm3, %v2101_v2, %v2087_v60 }
 0x689   : > { %v2085_v42 = vpop.permute.xlu0 %2084 }
 0x68a   : > { %v2105_v3 = vsel %vm2104_vm3, %v2100_v61, %v2085_v42 }
 0x68b   : > { %5167 = vmatprep.mubr.msk.f32.mxu0 %vm873_vm1, %v2105_v3  ;;  %v2091_v7 = vpop.permute.xlu1 %2090 }
 0x68c   : > { %5168 = vmatmul.mubr.msk.f32.vlgmr.msra.gmra.mxu0 %vm873_vm1, %v2106_v6  ;;  %v2108_v11 = vsel %vm2104_vm3, %v2103_v51, %v2091_v7 }
 0x68d   : > { %v2089_v10 = vpop.permute.xlu0 %2088  ;;  %5188 = vmatpush3.msra.mxu0 %v2415_v57 }
 0x68e   : > { %v2107_v23 = vsel %vm2104_vm3, %v2102_v48, %v2089_v10  ;;  %5189 = vmatprep.subr.mxu0 %v2414_v35  ;;  %v4699_v48 = vld [vmem:[#allocation10] ss:$0 sm:$0xff] }
 0x68f   : > { %5170 = vmatprep.mubr.msk.f32.mxu0 %vm873_vm1, %v2107_v23  ;;  %5190 = vmatpush3.msra.mxu0 %v2414_v35 }
 0x690   : > { %5171 = vmatmul.mubr.msk.f32.gmra.mxu0 %vm873_vm1, %v2108_v11  ;;  %5191 = vmatprep.subr.mxu0 %v2413_v21 }
 0x691   : > { %5192 = vmatpush3.msra.mxu0 %v2413_v21 }
 0x692   : > { %5193 = vmatprep.subr.mxu0 %v2412_v36 }
 0x693   : > { %5194 = vmatpush3.msra.mxu0 %v2412_v36 }
 0x74c   : > { %v5169_v0 = vpop.f32.mrf.mxu0 }
 0x74d   : > { %v2204_v15 = vadd.f32 %v5169_v0, %v4694_v54 }
 0x74e   : > { %v2198_v38 = vpop.f32.mrf.mxu0 }
 0x74f   : > { %v2199_v16 = vadd.f32 %v4694_v54, %v2198_v38  ;;  %v2218_v1 = vadd.f32 %v2204_v15, %v6404_v14 }
 0x750   : > { %v5172_v4 = vpop.f32.mrf.mxu0 }
 0x751   : > { %v2224_v20 = vsel %vm873_vm1, %v2218_v1, 0.0  ;;  %v2217_v58 = vadd.f32 %v2199_v16, %v6402_v13  ;;  %v2214_v56 = vadd.f32 %v5172_v4, %v4694_v54 }
 0x752   : > { %2225 = vadd.xlane.f32.xlu1 %v2224_v20  ;;  %v2208_v5 = vpop.f32.mrf.mxu0 }
 0x753   : > { %v2209_v24 = vadd.f32 %v4694_v54, %v2208_v5  ;;  %v2221_v25 = vsel %vm873_vm1, %v2217_v58, 0.0  ;;  %v2220_v19 = vadd.f32 %v2214_v56, %v6412_v18  ;;  %v4700_v54 = vld [vmem:[#allocation11] ss:$0 sm:$0xff] }
 0x754   : > { %2222 = vadd.xlane.f32.xlu0 %v2221_v25  ;;  %v2410_v25 = vld [vmem:[%s7473_s11 + $0x10] sm:$0xff] }
 0x755   : > { %v2219_v27 = vadd.f32 %v2209_v24, %v6410_v17  ;;  %v2230_v14 = vsel %vm873_vm1, %v2220_v19, 0.0  ;;  %v2411_v24 = vld [vmem:[%s7473_s11 + $0x18] sm:$0xff] }
 0x756   : > { %5195 = vmatprep.subr.mxu0 %v2411_v24 }
 0x757   : > { %v2227_v22 = vsel %vm873_vm1, %v2219_v27, 0.0  ;;  %5196 = vmatpush3.msra.mxu0 %v2411_v24 }
 0x758   : > { %2228 = vadd.xlane.f32.xlu0 %v2227_v22  ;;  %5197 = vmatprep.subr.mxu0 %v2410_v25  ;;  %v2408_v22 = vld [vmem:[%s7473_s11] sm:$0xff] }
 0x759   : > { %5198 = vmatpush3.msra.mxu0 %v2410_v25 }
 0x75c   : > { %2231 = vadd.xlane.f32.xlu0 %v2230_v14 }
 0x7db   : > { %v2226_v29 = vpop.xlane.xlu1 %2225 }
 0x7dc   : > { %v2235_v34 = vmul.f32 0.03125, %v2226_v29 }
 0x7dd   : > { %v2223_v13 = vpop.xlane.xlu0 %2222 }
 0x7de   : > { %v2239_v39 = vsub.f32 %v2218_v1, %v2235_v34  ;;  %v2234_v30 = vmul.f32 0.03125, %v2223_v13 }
 0x7e0   : > { %v6836_v26 = vsub.f32 %v2217_v58, %v2234_v30  ;;  %v2243_v43 = vmul.f32 %v2239_v39, %v2239_v39 }
 0x7e1   : > { %v2229_v33 = vpop.xlane.xlu0 %2228 }
 0x7e2   : > { %v2236_v40 = vmul.f32 0.03125, %v2229_v33  ;;  %v2249_v17 = vsel %vm873_vm1, %v2243_v43, 0.0  ;;  %v2242_v44 = vmul.f32 %v6836_v26, %v6836_v26 }
 0x7e3   : > { %2250 = vadd.xlane.f32.xlu0 %v2249_v17 }
 0x7e4   : > { %v2240_v18 = vsub.f32 %v2219_v27, %v2236_v40  ;;  %v2246_v46 = vsel %vm873_vm1, %v2242_v44, 0.0  ;;  %v2409_v27 = vld [vmem:[%s7473_s11 + $0x8] sm:$0xff] }
 0x7e5   : > { %2247 = vadd.xlane.f32.xlu1 %v2246_v46  ;;  %v2232_v47 = vpop.xlane.xlu0 %2231  ;;  %5199 = vmatprep.subr.mxu0 %v2409_v27 }
 0x7e6   : > { %v2237_v49 = vmul.f32 0.03125, %v2232_v47  ;;  %v2244_v50 = vmul.f32 %v2240_v18, %v2240_v18  ;;  %5200 = vmatpush3.msra.mxu0 %v2409_v27 }
 0x7e7   : > { %5201 = vmatprep.subr.mxu0 %v2408_v22 }
 0x7e8   : > { %v6842_v52 = vsub.f32 %v2220_v19, %v2237_v49  ;;  %v2252_v28 = vsel %vm873_vm1, %v2244_v50, 0.0  ;;  %5202 = vmatpush3.msra.mxu0 %v2408_v22  ;;  %v4701_v19 = vld [vmem:[#allocation13] ss:$0 sm:$0xff] }
 0x7e9   : > { %2253 = vadd.xlane.f32.xlu1 %v2252_v28 }
 0x7ea   : > { %v2245_v53 = vmul.f32 %v6842_v52, %v6842_v52 }
 0x7ec   : > { %v2255_v32 = vsel %vm873_vm1, %v2245_v53, 0.0 }
 0x7ed   : > { %2256 = vadd.xlane.f32.xlu0 %v2255_v32 }
 0x86c   : > { %v2251_v8 = vpop.xlane.xlu0 %2250 }
 0x86d   : > { %v2259_v59 = vmul.f32 0.03125, %v2251_v8 }
 0x86e   : > { %v2248_v62 = vpop.xlane.xlu1 %2247 }
 0x86f   : > { %v2263_v60 = vadd.f32 1e-05, %v2259_v59  ;;  %v2258_v12 = vmul.f32 0.03125, %v2248_v62 }
 0x871   : > { %5614 = vrsqrt.f32 %v2263_v60  ;;  %v2262_v63 = vadd.f32 1e-05, %v2258_v12 }
 0x872   : > { %v2254_v61 = vpop.xlane.xlu1 %2253 }
 0x873   : > { %5616 = vrsqrt.f32 %v2262_v63  ;;  %v2260_v42 = vmul.f32 0.03125, %v2254_v61 }
 0x875   : > { %v2264_v2 = vadd.f32 1e-05, %v2260_v42 }
 0x876   : > { %v2257_v3 = vpop.xlane.xlu0 %2256 }
 0x877   : > { %5618 = vrsqrt.f32 %v2264_v2  ;;  %v2261_v6 = vmul.f32 0.03125, %v2257_v3 }
 0x879   : > { %v2265_v45 = vadd.f32 1e-05, %v2261_v6 }
 0x87b   : > { %5620 = vrsqrt.f32 %v2265_v45 }
 0x87e   : > { %v5615_v7 = vpop.eup %5614 }
 0x87f   : > { %v2271_v9 = vmul.f32 %v5615_v7, %v2239_v39 }
 0x880   : > { %v5617_v10 = vpop.eup %5616 }
 0x881   : > { %v2270_v51 = vmul.f32 %v5617_v10, %v6836_v26  ;;  %v2282_v23 = vmul.f32 %v4699_v48, %v2271_v9 }
 0x883   : > { %v2281_v11 = vmul.f32 %v4699_v48, %v2270_v51  ;;  %v2293_v16 = vadd.f32 %v4700_v54, %v2282_v23 }
 0x884   : > { %v5619_v0 = vpop.eup %5618 }
 0x885   : > { %v2292_v15 = vadd.f32 %v4700_v54, %v2281_v11  ;;  %v2272_v38 = vmul.f32 %v5619_v0, %v2240_v18  ;;  %v4706_v18 = vld [vmem:[#allocation14] ss:$0 sm:$0xff] }
 0x886   : > { %v4716_v0 = vld [vmem:[%s7538_s29 + $0x38] sm:$0xff] }
 0x887   : > { %5181 = vmatprep.mubr.msk.f32.mxu1 %vm873_vm1, %v2292_v15  ;;  %v2283_v1 = vmul.f32 %v4699_v48, %v2272_v38  ;;  %5209 = vmatprep.subr.mxu1 %v4716_v0  ;;  %v4714_v38 = vld [vmem:[%s7538_s29 + $0x28] sm:$0xff] }
 0x888   : > { %v5621_v4 = vpop.eup %5620  ;;  %5182 = vmatmul.mubr.msk.f32.vlgmr.msra.gmra.mxu1 %vm873_vm1, %v2293_v16 }
 0x889   : > { %v2294_v20 = vadd.f32 %v4700_v54, %v2283_v1  ;;  %v2273_v58 = vmul.f32 %v5621_v4, %v6842_v52  ;;  %5210 = vmatpush3.msra.mxu1 %v4716_v0 }
 0x88b   : > { %5184 = vmatprep.mubr.msk.f32.mxu1 %vm873_vm1, %v2294_v20  ;;  %v2284_v5 = vmul.f32 %v4699_v48, %v2273_v58 }
 0x88d   : > { %v2295_v56 = vadd.f32 %v4700_v54, %v2284_v5 }
 0x88f   : > { %5185 = vmatmul.mubr.msk.f32.gmra.mxu1 %vm873_vm1, %v2295_v56 }
 0x948   : > { %v5183_v14 = vpop.f32.mrf.mxu1 }
 0x949   : > { %v2391_v29 = vadd.f32 %v5183_v14, %v4701_v19 }
 0x94a   : > { %v2385_v34 = vpop.f32.mrf.mxu1 }
 0x94b   : > { %v2386_v13 = vadd.f32 %v4701_v19, %v2385_v34  ;;  %v2405_v30 = vmax.f32 %v2391_v29, 0.0 }
 0x94d   : > { %v2404_v39 = vmax.f32 %v2386_v13, 0.0  ;;  %v4711_v13 = vld [vmem:[#allocation16] ss:$0 sm:$0xff] }
 0x94f   : > { %v5186_v26 = vpop.f32.mrf.mxu1  ;;  %5203 = vmatprep.mubr.msk.f32.mxu0 %vm2423_vm4, %v2404_v39 }
 0x950   : > { %5204 = vmatmul.mubr.msk.f32.vlgmr.msra.gmra.mxu0 %vm2423_vm4, %v2405_v30  ;;  %v2401_v43 = vadd.f32 %v5186_v26, %v4701_v19 }
 0x951   : > { %v2395_v33 = vpop.f32.mrf.mxu1 }
 0x952   : > { %v2396_v40 = vadd.f32 %v4701_v19, %v2395_v33  ;;  %v2407_v44 = vmax.f32 %v2401_v43, 0.0  ;;  %v4712_v33 = vld [vmem:[%s7476_s14] ss:$0 sm:$0xff] }
 0x954   : > { %v2406_v17 = vmax.f32 %v2396_v40, 0.0 }
 0x956   : > { %5206 = vmatprep.mubr.msk.f32.mxu0 %vm2423_vm4, %v2406_v17 }
 0x957   : > { %5207 = vmatmul.mubr.msk.f32.gmra.mxu0 %vm2423_vm4, %v2407_v44 }
 0xa10   : > { %v5205_v46 = vpop.f32.mrf.mxu0 }
 0xa11   : > { %v2508_v47 = vadd.f32 %v5205_v46, %v4706_v18 }
 0xa12   : > { %v2502_v49 = vpop.f32.mrf.mxu0 }
 0xa13   : > { %v2522_v50 = vadd.f32 %v2508_v47, %v2293_v16  ;;  %v2503_v52 = vadd.f32 %v4706_v18, %v2502_v49  ;;  %v4713_v16 = vld [vmem:[%s7538_s29 + $0x20] sm:$0xff] }
 0xa15   : > { %v2528_v28 = vsel %vm873_vm1, %v2522_v50, 0.0  ;;  %v2521_v53 = vadd.f32 %v2503_v52, %v2292_v15  ;;  %v4715_v15 = vld [vmem:[%s7538_s29 + $0x30] sm:$0xff] }
 0xa16   : > { %2529 = vadd.xlane.f32.xlu0 %v2528_v28  ;;  %5211 = vmatprep.subr.mxu1 %v4715_v15 }
 0xa17   : > { %v5208_v32 = vpop.f32.mrf.mxu0  ;;  %v2525_v41 = vsel %vm873_vm1, %v2521_v53, 0.0  ;;  %5212 = vmatpush3.msra.mxu1 %v4715_v15 }
 0xa18   : > { %v2518_v37 = vadd.f32 %v5208_v32, %v4706_v18  ;;  %2526 = vadd.xlane.f32.xlu1 %v2525_v41  ;;  %5213 = vmatprep.subr.mxu1 %v4714_v38  ;;  %v4717_v32 = vld [vmem:[#allocation7 + $0x1] ss:$0 sm:$0xff] }
 0xa19   : > { %v2512_v55 = vpop.f32.mrf.mxu0  ;;  %5214 = vmatpush3.msra.mxu1 %v4714_v38 }
 0xa1a   : > { %v2524_v31 = vadd.f32 %v2518_v37, %v2295_v56  ;;  %v2513_v57 = vadd.f32 %v4706_v18, %v2512_v55  ;;  %5215 = vmatprep.subr.mxu1 %v4713_v16 }
 0xa1b   : > { %5216 = vmatpush3.msra.mxu1 %v4713_v16 }
 0xa1c   : > { %v2534_v35 = vsel %vm873_vm1, %v2524_v31, 0.0  ;;  %v2523_v21 = vadd.f32 %v2513_v57, %v2294_v20 }
 0xa1d   : > { %2535 = vadd.xlane.f32.xlu0 %v2534_v35 }
 0xa1e   : > { %v2531_v36 = vsel %vm873_vm1, %v2523_v21, 0.0 }
 0xa1f   : > { %2532 = vadd.xlane.f32.xlu1 %v2531_v36 }
 0xa9f   : > { %v2530_v8 = vpop.xlane.xlu0 %2529 }
 0xaa0   : > { %v2538_v59 = vmul.f32 0.03125, %v2530_v8 }
 0xaa1   : > { %v2527_v62 = vpop.xlane.xlu1 %2526 }
 0xaa2   : > { %v2542_v60 = vsub.f32 %v2522_v50, %v2538_v59  ;;  %v2537_v12 = vmul.f32 0.03125, %v2527_v62 }
 0xaa4   : > { %v2541_v63 = vsub.f32 %v2521_v53, %v2537_v12  ;;  %v2546_v61 = vmul.f32 %v2542_v60, %v2542_v60 }
 0xaa6   : > { %v2536_v42 = vpop.xlane.xlu0 %2535  ;;  %v2552_v2 = vsel %vm873_vm1, %v2546_v61, 0.0  ;;  %v2545_v3 = vmul.f32 %v2541_v63, %v2541_v63 }
 0xaa7   : > { %v2540_v6 = vmul.f32 0.03125, %v2536_v42  ;;  %2553 = vadd.xlane.f32.xlu0 %v2552_v2 }
 0xaa8   : > { %v2533_v45 = vpop.xlane.xlu1 %2532  ;;  %v2549_v7 = vsel %vm873_vm1, %v2545_v3, 0.0 }
 0xaa9   : > { %v2544_v9 = vsub.f32 %v2524_v31, %v2540_v6  ;;  %v2539_v48 = vmul.f32 0.03125, %v2533_v45  ;;  %2550 = vadd.xlane.f32.xlu1 %v2549_v7 }
 0xaab   : > { %v2543_v10 = vsub.f32 %v2523_v21, %v2539_v48  ;;  %v2548_v51 = vmul.f32 %v2544_v9, %v2544_v9 }
 0xaad   : > { %v2558_v23 = vsel %vm873_vm1, %v2548_v51, 0.0  ;;  %v2547_v11 = vmul.f32 %v2543_v10, %v2543_v10 }
 0xaae   : > { %2559 = vadd.xlane.f32.xlu0 %v2558_v23 }
 0xaaf   : > { %v2555_v54 = vsel %vm873_vm1, %v2547_v11, 0.0 }
 0xab0   : > { %2556 = vadd.xlane.f32.xlu1 %v2555_v54 }
 0xb30   : > { %v2554_v1 = vpop.xlane.xlu0 %2553 }
 0xb31   : > { %v2562_v4 = vmul.f32 0.03125, %v2554_v1 }
 0xb32   : > { %v2551_v20 = vpop.xlane.xlu1 %2550 }
 0xb33   : > { %v2566_v58 = vadd.f32 1e-05, %v2562_v4  ;;  %v2561_v5 = vmul.f32 0.03125, %v2551_v20 }
 0xb35   : > { %5622 = vrsqrt.f32 %v2566_v58  ;;  %v2565_v56 = vadd.f32 1e-05, %v2561_v5 }
 0xb37   : > { %5624 = vrsqrt.f32 %v2565_v56  ;;  %v2560_v24 = vpop.xlane.xlu0 %2559 }
 0xb38   : > { %v2564_v25 = vmul.f32 0.03125, %v2560_v24 }
 0xb39   : > { %v2557_v27 = vpop.xlane.xlu1 %2556 }
 0xb3a   : > { %v2568_v22 = vadd.f32 1e-05, %v2564_v25  ;;  %v2563_v19 = vmul.f32 0.03125, %v2557_v27 }
 0xb3c   : > { %5626 = vrsqrt.f32 %v2568_v22  ;;  %v2567_v14 = vadd.f32 1e-05, %v2563_v19 }
 0xb3e   : > { %5628 = vrsqrt.f32 %v2567_v14 }
 0xb42   : > { %v5623_v29 = vpop.eup %5622 }
 0xb43   : > { %v2574_v34 = vmul.f32 %v5623_v29, %v2542_v60 }
 0xb44   : > { %v5625_v39 = vpop.eup %5624 }
 0xb45   : > { %v2573_v30 = vmul.f32 %v5625_v39, %v2541_v63  ;;  %v2585_v26 = vmul.f32 %v4711_v13, %v2574_v34 }
 0xb47   : > { %v2584_v43 = vmul.f32 %v4711_v13, %v2573_v30  ;;  %v6919_v44 = vadd.f32 %v4712_v33, %v2585_v26  ;;  %v5711_v26 = vld [vmem:[#allocation17] sm:$0xff] }
 0xb49   : > { %v5627_v40 = vpop.eup %5626  ;;  %v6917_v17 = vadd.f32 %v4712_v33, %v2584_v43 }
 0xb4a   : > { %v2576_v18 = vmul.f32 %v5627_v40, %v2544_v9 }
 0xb4b   : > { %v5629_v46 = vpop.eup %5628  ;;  %5217 = vmatprep.mubr.msk.f32.mxu1 %vm873_vm1, %v6917_v17 }
 0xb4c   : > { %5218 = vmatmul.mubr.msk.f32.vlgmr.msra.gmra.mxu1 %vm873_vm1, %v6919_v44  ;;  %v2575_v47 = vmul.f32 %v5629_v46, %v2543_v10  ;;  %v2587_v49 = vmul.f32 %v4711_v13, %v2576_v18  ;;  %v5712_v18 = vld [vmem:[#allocation17 + $0x18] sm:$0xff] }
 0xb4e   : > { %v2586_v50 = vmul.f32 %v4711_v13, %v2575_v47  ;;  %v6927_v28 = vadd.f32 %v4712_v33, %v2587_v49  ;;  %v5710_v13 = vld [vmem:[#allocation17 + $0x8] sm:$0xff] }
 0xb50   : > { %v6925_v52 = vadd.f32 %v4712_v33, %v2586_v50  ;;  %v5713_v50 = vld [vmem:[#allocation17 + $0x10] sm:$0xff] }
 0xb52   : > { %5220 = vmatprep.mubr.msk.f32.mxu1 %vm873_vm1, %v6925_v52 }
 0xb53   : > { %5221 = vmatmul.mubr.msk.f32.gmra.mxu1 %vm873_vm1, %v6927_v28 }
 0xc0c   : > { %v5219_v53 = vpop.f32.mrf.mxu1 }
 0xc0d   : > { %v2696_v21 = vadd.f32 %v5219_v53, %v4717_v32 }
 0xc0e   : > { %v2690_v41 = vpop.f32.mrf.mxu1 }
 0xc0f   : > { %v2691_v37 = vadd.f32 %v4717_v32, %v2690_v41 }
 0xc11   : > { %5231 = vmatprep.mubr.msk.f32.mxu1 %vm1007_vm2, %v2691_v37 }
 0xc13   : > { %v5222_v55 = vpop.f32.mrf.mxu1 }
 0xc14   : > { %v6934_v31 = vadd.f32 %v5222_v55, %v4717_v32 }
 0xc15   : > { %v2700_v57 = vpop.f32.mrf.mxu1 }
 0xc16   : > { %v6936_v35 = vadd.f32 %v4717_v32, %v2700_v57  ;;  %2719 = vrot.lane.b32.xlu1 %v6934_v31, %s6074_s2 }
 0xc18   : > { %2717 = vrot.lane.b32.xlu0 %v6936_v35, %s6074_s2 }
 0xc1a   : > { %2715 = vrot.lane.b32.xlu1 %v2696_v21, %s6074_s2 }
 0xc1c   : > { %2727 = vrot.lane.b32.xlu0 %v6934_v31, %s6076_s22 }
 0xc1e   : > { %2713 = vrot.lane.b32.xlu1 %v2691_v37, %s6074_s2  ;;  %s4450_s2 = scalar_lea.hbm %s7541_s25, %s4809_s28 }
 0xc20   : > { %2725 = vrot.lane.b32.xlu0 %v6936_v35, %s6076_s22 }
 0xc22   : > { %2735 = vrot.lane.b32.xlu1 %v6934_v31, %s6075_s27 }
 0xc24   : > { %2723 = vrot.lane.b32.xlu0 %v2696_v21, %s6076_s22 }
 0xc26   : > { %2733 = vrot.lane.b32.xlu1 %v6936_v35, %s6075_s27 }
 0xc28   : > { %2721 = vrot.lane.b32.xlu0 %v2691_v37, %s6076_s22 }
 0xc2a   : > { %2731 = vrot.lane.b32.xlu1 %v2696_v21, %s6075_s27 }
 0xc2c   : > { %2743 = vrot.lane.b32.xlu0 %v6934_v31, %s6077_s23 }
 0xc2e   : > { %2729 = vrot.lane.b32.xlu1 %v2691_v37, %s6075_s27 }
 0xc30   : > { %2741 = vrot.lane.b32.xlu0 %v6936_v35, %s6077_s23 }
 0xc34   : > { %2739 = vrot.lane.b32.xlu0 %v2696_v21, %s6077_s23 }
 0xc38   : > { %2737 = vrot.lane.b32.xlu0 %v2691_v37, %s6077_s23 }
 0xc88   : > { %v6962_v36 = vpop.permute.xlu1 %2719 }
 0xc89   : > { %2852 = vrot.lane.b32.xlu1 %v6962_v36, %s6077_s23 }
 0xc8a   : > { %v6966_v8 = vpop.permute.xlu0 %2717 }
 0xc8c   : > { %v6968_v59 = vpop.permute.xlu1 %2715 }
 0xc8d   : > { %2850 = vrot.lane.b32.xlu1 %v6966_v8, %s6077_s23 }
 0xc8e   : > { %v6972_v62 = vpop.permute.xlu0 %2727 }
 0xc8f   : > { %2961 = vrot.lane.b32.xlu0 %v6972_v62, %s6077_s23 }
 0xc90   : > { %v2714_v60 = vpop.permute.xlu1 %2713 }
 0xc91   : > { %5245 = vmatprep.mubr.msk.f32.mxu0 %vm1007_vm2, %v2714_v60  ;;  %2848 = vrot.lane.b32.xlu1 %v6968_v59, %s6077_s23 }
 0xc92   : > { %v6979_v12 = vpop.permute.xlu0 %2725 }
 0xc93   : > { %2959 = vrot.lane.b32.xlu0 %v6979_v12, %s6077_s23 }
 0xc94   : > { %v6983_v63 = vpop.permute.xlu1 %2735 }
 0xc95   : > { %2846 = vrot.lane.b32.xlu1 %v2714_v60, %s6077_s23 }
 0xc96   : > { %v6986_v61 = vpop.permute.xlu0 %2723 }
 0xc97   : > { %2957 = vrot.lane.b32.xlu0 %v6986_v61, %s6077_s23 }
 0xc98   : > { %v6990_v42 = vpop.permute.xlu1 %2733 }
 0xc99   : > { %3070 = vrot.lane.b32.xlu1 %v6983_v63, %s6077_s23 }
 0xc9a   : > { %v6994_v2 = vpop.permute.xlu0 %2721 }
 0xc9b   : > { %2955 = vrot.lane.b32.xlu0 %v6994_v2, %s6077_s23 }
 0xc9c   : > { %v7000_v3 = vpop.permute.xlu1 %2731 }
 0xc9d   : > { %3068 = vrot.lane.b32.xlu1 %v6990_v42, %s6077_s23 }
 0xc9e   : > { %v2744_v6 = vpop.permute.xlu0 %2743 }
 0xc9f   : > { %3464 = vrot.lane.b32.xlu0 %v6962_v36, %s6078_s24  ;;  %5223 = vmatprep.subr.msk.mxu1 %vm1007_vm2, %v2744_v6 }
 0xca0   : > { %5224 = vmatpush3.xpose.msk.msra.mxu1 %vm1007_vm2, %v2744_v6  ;;  %v7010_v7 = vpop.permute.xlu1 %2729 }
 0xca1   : > { %3066 = vrot.lane.b32.xlu1 %v7000_v3, %s6077_s23 }
 0xca2   : > { %v2742_v45 = vpop.permute.xlu0 %2741 }
 0xca3   : > { %3351 = vrot.lane.b32.xlu0 %v2696_v21, %s6078_s24  ;;  %5225 = vmatprep.subr.msk.mxu1 %vm1007_vm2, %v2742_v45 }
 0xca4   : > { %5226 = vmatpush3.xpose.msk.msra.mxu1 %vm1007_vm2, %v2742_v45 }
 0xca5   : > { %3064 = vrot.lane.b32.xlu1 %v7010_v7, %s6077_s23  ;;  %s6084_s23 = smov [#allocation19]  }
 0xca6   : > { %v2740_v9 = vpop.permute.xlu0 %2739 }
 0xca7   : > { %3349 = vrot.lane.b32.xlu0 %v2691_v37, %s6078_s24  ;;  %5227 = vmatprep.subr.msk.mxu1 %vm1007_vm2, %v2740_v9 }
 0xca8   : > { %5228 = vmatpush3.xpose.msk.msra.mxu1 %vm1007_vm2, %v2740_v9 }
 0xca9   : > { %3355 = vrot.lane.b32.xlu1 %v6934_v31, %s6078_s24 }
 0xcaa   : > { %v2738_v48 = vpop.permute.xlu0 %2737 }
 0xcab   : > { %3573 = vrot.lane.b32.xlu0 %v6972_v62, %s6078_s24  ;;  %5229 = vmatprep.subr.msk.mxu1 %vm1007_vm2, %v2738_v48 }
 0xcac   : > { %5230 = vmatpush3.xpose.msk.msra.mxu1 %vm1007_vm2, %v2738_v48 }
 0xcad   : > { %3353 = vrot.lane.b32.xlu1 %v6936_v35, %s6078_s24 }
 0xcaf   : > { %3571 = vrot.lane.b32.xlu0 %v6979_v12, %s6078_s24  ;;  %5232 = vmatmul.mubr.msk.f32.vlgmr.msra.gmra.mxu1 %vm1007_vm2, %v2696_v21 }
 0xcb0   : > { %5234 = vmatprep.mubr.msk.f32.mxu1 %vm1007_vm2, %v6936_v35 }
 0xcb1   : > { %3460 = vrot.lane.b32.xlu1 %v6968_v59, %s6078_s24 }
 0xcb3   : > { %5235 = vmatmul.mubr.msk.f32.gmra.mxu1 %vm1007_vm2, %v6934_v31 }
 0xcb4   : > { %5259 = vmatprep.mubr.msk.f32.mxu1 %vm1007_vm2, %v6994_v2 }
 0xcb5   : > { %3458 = vrot.lane.b32.xlu1 %v2714_v60, %s6078_s24 }
 0xcb9   : > { %3682 = vrot.lane.b32.xlu1 %v6983_v63, %s6078_s24 }
 0xcbd   : > { %3462 = vrot.lane.b32.xlu1 %v6966_v8, %s6078_s24 }
 0xcc1   : > { %3680 = vrot.lane.b32.xlu1 %v6990_v42, %s6078_s24 }
 0xcfb   : > { %v2853_v10 = vpop.permute.xlu1 %2852 }
 0xcfc   : > { %5237 = vmatprep.subr.msk.mxu0 %vm1007_vm2, %v2853_v10 }
 0xcfd   : > { %5238 = vmatpush3.xpose.msk.msra.mxu0 %vm1007_vm2, %v2853_v10 }
 0xcff   : > { %v2851_v51 = vpop.permute.xlu1 %2850 }
 0xd00   : > { %5239 = vmatprep.subr.msk.mxu0 %vm1007_vm2, %v2851_v51 }
 0xd01   : > { %5240 = vmatpush3.xpose.msk.msra.mxu0 %vm1007_vm2, %v2851_v51  ;;  %v2962_v23 = vpop.permute.xlu0 %2961 }
 0xd02   : > { %5251 = vmatprep.subr.msk.mxu1 %vm1007_vm2, %v2962_v23 }
 0xd03   : > { %v2849_v11 = vpop.permute.xlu1 %2848  ;;  %5252 = vmatpush3.xpose.msk.msra.mxu1 %vm1007_vm2, %v2962_v23 }
 0xd04   : > { %5241 = vmatprep.subr.msk.mxu0 %vm1007_vm2, %v2849_v11 }
 0xd05   : > { %5242 = vmatpush3.xpose.msk.msra.mxu0 %vm1007_vm2, %v2849_v11  ;;  %v2960_v54 = vpop.permute.xlu0 %2959 }
 0xd06   : > { %5253 = vmatprep.subr.msk.mxu1 %vm1007_vm2, %v2960_v54 }
 0xd07   : > { %v2847_v0 = vpop.permute.xlu1 %2846  ;;  %5254 = vmatpush3.xpose.msk.msra.mxu1 %vm1007_vm2, %v2960_v54 }
 0xd08   : > { %5243 = vmatprep.subr.msk.mxu0 %vm1007_vm2, %v2847_v0 }
 0xd09   : > { %5244 = vmatpush3.xpose.msk.msra.mxu0 %vm1007_vm2, %v2847_v0  ;;  %v2958_v15 = vpop.permute.xlu0 %2957 }
 0xd0a   : > { %5255 = vmatprep.subr.msk.mxu1 %vm1007_vm2, %v2958_v15 }
 0xd0b   : > { %v3071_v38 = vpop.permute.xlu1 %3070  ;;  %5256 = vmatpush3.xpose.msk.msra.mxu1 %vm1007_vm2, %v2958_v15 }
 0xd0c   : > { %5246 = vmatmul.mubr.msk.f32.vlgmr.msra.gmra.mxu0 %vm1007_vm2, %v6968_v59  ;;  %5265 = vmatprep.subr.msk.mxu0 %vm1007_vm2, %v3071_v38 }
 0xd0d   : > { %5248 = vmatprep.mubr.msk.f32.mxu0 %vm1007_vm2, %v6966_v8  ;;  %5266 = vmatpush3.xpose.msk.msra.mxu0 %vm1007_vm2, %v3071_v38  ;;  %v2956_v16 = vpop.permute.xlu0 %2955 }
 0xd0e   : > { %5257 = vmatprep.subr.msk.mxu1 %vm1007_vm2, %v2956_v16 }
 0xd0f   : > { %v3069_v1 = vpop.permute.xlu1 %3068  ;;  %5258 = vmatpush3.xpose.msk.msra.mxu1 %vm1007_vm2, %v2956_v16 }
 0xd10   : > { %5249 = vmatmul.mubr.msk.f32.gmra.mxu0 %vm1007_vm2, %v6962_v36  ;;  %5267 = vmatprep.subr.msk.mxu0 %vm1007_vm2, %v3069_v1 }
 0xd11   : > { %5268 = vmatpush3.xpose.msk.msra.mxu0 %vm1007_vm2, %v3069_v1  ;;  %5273 = vmatprep.mubr.msk.f32.mxu0 %vm1007_vm2, %v7010_v7  ;;  %v3465_v4 = vpop.permute.xlu0 %3464 }
 0xd12   : > { %5260 = vmatmul.mubr.msk.f32.vlgmr.msra.gmra.mxu1 %vm1007_vm2, %v6986_v61 }
 0xd13   : > { %v3067_v20 = vpop.permute.xlu1 %3066  ;;  %5262 = vmatprep.mubr.msk.f32.mxu1 %vm1007_vm2, %v6979_v12 }
 0xd14   : > { %5269 = vmatprep.subr.msk.mxu0 %vm1007_vm2, %v3067_v20 }
 0xd15   : > { %5270 = vmatpush3.xpose.msk.msra.mxu0 %vm1007_vm2, %v3067_v20  ;;  %v3352_v5 = vpop.permute.xlu0 %3351 }
 0xd16   : > { %5263 = vmatmul.mubr.msk.f32.gmra.mxu1 %vm1007_vm2, %v6972_v62 }
 0xd17   : > { %v3065_v58 = vpop.permute.xlu1 %3064 }
 0xd18   : > { %5271 = vmatprep.subr.msk.mxu0 %vm1007_vm2, %v3065_v58 }
 0xd19   : > { %5272 = vmatpush3.xpose.msk.msra.mxu0 %vm1007_vm2, %v3065_v58  ;;  %v3350_v24 = vpop.permute.xlu0 %3349 }
 0xd1a   : > { %5293 = vmatprep.subr.mxu0 %v3465_v4 }
 0xd1b   : > { %v3356_v56 = vpop.permute.xlu1 %3355 }
 0xd1c   : > { %5274 = vmatmul.mubr.msk.f32.vlgmr.msra.gmra.mxu0 %vm1007_vm2, %v7000_v3  ;;  %5279 = vmatprep.subr.mxu1 %v3356_v56 }
 0xd1d   : > { %5276 = vmatprep.mubr.msk.f32.mxu0 %vm1007_vm2, %v6990_v42  ;;  %5280 = vmatpush3.msra.mxu1 %v3356_v56  ;;  %v7088_v22 = vpop.permute.xlu0 %3573 }
 0xd1e   : > { %5294 = vmatpush3.msra.mxu0 %v3465_v4 }
 0xd1f   : > { %v3354_v25 = vpop.permute.xlu1 %3353 }
 0xd20   : > { %5277 = vmatmul.mubr.msk.f32.gmra.mxu0 %vm1007_vm2, %v6983_v63  ;;  %5281 = vmatprep.subr.mxu1 %v3354_v25 }
 0xd21   : > { %5282 = vmatpush3.msra.mxu1 %v3354_v25 }
 0xd22   : > { %5283 = vmatprep.subr.mxu1 %v3352_v5 }
 0xd23   : > { %v3461_v27 = vpop.permute.xlu1 %3460  ;;  %5284 = vmatpush3.msra.mxu1 %v3352_v5 }
 0xd24   : > { %5285 = vmatprep.subr.mxu1 %v3350_v24 }
 0xd25   : > { %5286 = vmatpush3.msra.mxu1 %v3350_v24 }
 0xd26   : > { %5307 = vmatprep.subr.mxu1 %v7088_v22 }
 0xd27   : > { %v3459_v19 = vpop.permute.xlu1 %3458 }
 0xd2b   : > { %v7091_v14 = vpop.permute.xlu1 %3682 }
 0xd2f   : > { %v3463_v29 = vpop.permute.xlu1 %3462 }
 0xd30   : > { %5295 = vmatprep.subr.mxu0 %v3463_v29 }
 0xd31   : > { %5296 = vmatpush3.msra.mxu0 %v3463_v29 }
 0xd32   : > { %5297 = vmatprep.subr.mxu0 %v3461_v27 }
 0xd33   : > { %5298 = vmatpush3.msra.mxu0 %v3461_v27  ;;  %v7162_v29 = vpop.permute.xlu1 %3680 }
 0xd34   : > { %5299 = vmatprep.subr.mxu0 %v3459_v19 }
 0xd35   : > { %5300 = vmatpush3.msra.mxu0 %v3459_v19  ;;  %v7160_v19 = vpop.permute.xlu0 %3571 }
 0xd36   : > { %5321 = vmatprep.subr.mxu0 %v7091_v14 }
 0xd6f   : > { %v5233_v34 = vpop.f32.mrf.mxu1 }
 0xd70   : > { %v7094_v39 = vadd.f32 %v5710_v13, %v5233_v34 }
 0xd71   : > { %v2827_v30 = vpop.f32.mrf.mxu1 }
 0xd72   : > { %v7096_v43 = vadd.f32 %v5711_v26, %v2827_v30  ;;  %v3176_v33 = vsel %vm873_vm1, %v7094_v39, -inf }
 0xd73   : > { %3177 = vmax.xlane.f32.xlu1 %v3176_v33  ;;  %v5236_v40 = vpop.f32.mrf.mxu1 }
 0xd74   : > { %v7100_v46 = vadd.f32 %v5712_v18, %v5236_v40  ;;  %v3173_v47 = vsel %vm873_vm1, %v7096_v43, -inf }
 0xd75   : > { %v2837_v49 = vpop.f32.mrf.mxu1  ;;  %3174 = vmax.xlane.f32.xlu0 %v3173_v47 }
 0xd76   : > { %v7104_v53 = vadd.f32 %v5713_v50, %v2837_v49  ;;  %v3182_v41 = vsel %vm873_vm1, %v7100_v46, -inf }
 0xd78   : > { %v3179_v32 = vsel %vm873_vm1, %v7104_v53, -inf }
 0xd79   : > { %3180 = vmax.xlane.f32.xlu1 %v3179_v32  ;;  %3183 = vmax.xlane.f32.xlu0 %v3182_v41 }
 0xdcc   : > { %v5247_v37 = vpop.f32.mrf.mxu0 }
 0xdcd   : > { %v7110_v55 = vadd.f32 %v5710_v13, %v5247_v37 }
 0xdce   : > { %v2936_v31 = vpop.f32.mrf.mxu0 }
 0xdcf   : > { %v3188_v57 = vsel %vm873_vm1, %v7110_v55, -inf  ;;  %v7116_v62 = vadd.f32 %v5711_v26, %v2936_v31 }
 0xdd0   : > { %v5250_v35 = vpop.f32.mrf.mxu0  ;;  %3189 = vmax.xlane.f32.xlu0 %v3188_v57 }
 0xdd1   : > { %v7126_v9 = vadd.f32 %v5712_v18, %v5250_v35  ;;  %v3185_v48 = vsel %vm873_vm1, %v7116_v62, -inf }
 0xdd2   : > { %v5261_v21 = vpop.f32.mrf.mxu1  ;;  %v2946_v8 = vpop.f32.mrf.mxu0 }
 0xdd3   : > { %v7114_v36 = vadd.f32 %v5710_v13, %v5261_v21  ;;  %v7122_v42 = vadd.f32 %v5713_v50, %v2946_v8  ;;  %v3194_v54 = vsel %vm873_vm1, %v7126_v9, -inf }
 0xdd4   : > { %v3045_v59 = vpop.f32.mrf.mxu1 }
 0xdd5   : > { %v7118_v60 = vadd.f32 %v5711_v26, %v3045_v59  ;;  %v3200_v12 = vsel %vm873_vm1, %v7114_v36, -inf  ;;  %v3191_v51 = vsel %vm873_vm1, %v7122_v42, -inf }
 0xdd6   : > { %3201 = vmax.xlane.f32.xlu0 %v3200_v12  ;;  %v5264_v63 = vpop.f32.mrf.mxu1 }
 0xdd7   : > { %v3197_v6 = vsel %vm873_vm1, %v7118_v60, -inf  ;;  %v7134_v11 = vadd.f32 %v5712_v18, %v5264_v63 }
 0xdd8   : > { %v3055_v45 = vpop.f32.mrf.mxu1  ;;  %3198 = vmax.xlane.f32.xlu1 %v3197_v6 }
 0xdd9   : > { %v7130_v10 = vadd.f32 %v5713_v50, %v3055_v45  ;;  %v3206_v4 = vsel %vm873_vm1, %v7134_v11, -inf }
 0xdda   : > { %3186 = vmax.xlane.f32.xlu0 %v3185_v48 }
 0xddb   : > { %v3203_v38 = vsel %vm873_vm1, %v7130_v10, -inf }
 0xddc   : > { %v5275_v23 = vpop.f32.mrf.mxu0  ;;  %3192 = vmax.xlane.f32.xlu1 %v3191_v51 }
 0xddd   : > { %v7142_v1 = vadd.f32 %v5710_v13, %v5275_v23 }
 0xdde   : > { %v3154_v0 = vpop.f32.mrf.mxu0  ;;  %3195 = vmax.xlane.f32.xlu0 %v3194_v54 }
 0xddf   : > { %v7138_v15 = vadd.f32 %v5711_v26, %v3154_v0  ;;  %v3212_v24 = vsel %vm873_vm1, %v7142_v1, -inf }
 0xde0   : > { %v5278_v16 = vpop.f32.mrf.mxu0  ;;  %3204 = vmax.xlane.f32.xlu1 %v3203_v38 }
 0xde1   : > { %v3209_v5 = vsel %vm873_vm1, %v7138_v15, -inf  ;;  %v7150_v56 = vadd.f32 %v5712_v18, %v5278_v16 }
 0xde2   : > { %v3164_v20 = vpop.f32.mrf.mxu0  ;;  %3207 = vmax.xlane.f32.xlu0 %v3206_v4 }
 0xde3   : > { %v7146_v58 = vadd.f32 %v5713_v50, %v3164_v20  ;;  %v3218_v27 = vsel %vm873_vm1, %v7150_v56, -inf }
 0xde4   : > { %3210 = vmax.xlane.f32.xlu1 %v3209_v5 }
 0xde5   : > { %v3215_v25 = vsel %vm873_vm1, %v7146_v58, -inf }
 0xde6   : > { %3213 = vmax.xlane.f32.xlu0 %v3212_v24 }
 0xde8   : > { %3216 = vmax.xlane.f32.xlu1 %v3215_v25 }
 0xdea   : > { %3219 = vmax.xlane.f32.xlu0 %v3218_v27 }
 0xdf9   : > { %3678 = vrot.lane.b32.xlu1 %v7000_v3, %s6078_s24 }
 0xdfc   : > { %v3178_v34 = vpop.xlane.xlu1 %3177 }
 0xdfd   : > { %v3222_v33 = vsub.f32 %v7094_v39, %v3178_v34 }
 0xdfe   : > { %v3175_v13 = vpop.xlane.xlu0 %3174 }
 0xdff   : > { %v3221_v30 = vsub.f32 %v7096_v43, %v3175_v13  ;;  %v3239_v49 = vmul.f32 1.442695, %v3222_v33 }
 0xe00   : > { %3569 = vrot.lane.b32.xlu0 %v6986_v61, %s6078_s24 }
 0xe01   : > { %v3237_v18 = vmul.f32 1.442695, %v3221_v30 }
 0xe02   : > { %v3181_v26 = vpop.xlane.xlu1 %3180  ;;  %v3184_v40 = vpop.xlane.xlu0 %3183 }
 0xe03   : > { %v3223_v47 = vsub.f32 %v7104_v53, %v3181_v26  ;;  %v3224_v3 = vsub.f32 %v7100_v46, %v3184_v40  ;;  %5630 = vpow2.f32 %v3237_v18 }
 0xe04   : > { %5632 = vpow2.f32 %v3239_v49 }
 0xe05   : > { %v3241_v50 = vmul.f32 1.442695, %v3223_v47  ;;  %v3243_v32 = vmul.f32 1.442695, %v3224_v3 }
 0xe07   : > { %5634 = vpow2.f32 %v3241_v50 }
 0xe08   : > { %5636 = vpow2.f32 %v3243_v32 }
 0xe10   : > { %v7170_v61 = vpop.eup %5630 }
 0xe11   : > { %v7172_v41 = vpop.eup %5632  ;;  %v3269_v39 = vsel %vm873_vm1, %v7170_v61, 0.0 }
 0xe12   : > { %v3272_v53 = vsel %vm873_vm1, %v7172_v41, 0.0 }
 0xe14   : > { %v7176_v43 = vpop.eup %5634 }
 0xe15   : > { %v7180_v46 = vpop.eup %5636  ;;  %v3275_v37 = vsel %vm873_vm1, %v7176_v43, 0.0 }
 0xe16   : > { %v3278_v31 = vsel %vm873_vm1, %v7180_v46, 0.0 }
 0xe1d   : > { %3270 = vadd.xlane.f32.xlu1 %v3269_v39 }
 0xe1f   : > { %3273 = vadd.xlane.f32.xlu0 %v3272_v53 }
 0xe21   : > { %3276 = vadd.xlane.f32.xlu1 %v3275_v37 }
 0xe23   : > { %3279 = vadd.xlane.f32.xlu0 %v3278_v31 }
 0xe59   : > { %v3190_v57 = vpop.xlane.xlu0 %3189 }
 0xe5a   : > { %v3226_v35 = vsub.f32 %v7110_v55, %v3190_v57 }
 0xe5c   : > { %v3247_v21 = vmul.f32 1.442695, %v3226_v35 }
 0xe5e   : > { %5638 = vpow2.f32 %v3247_v21 }
 0xe5f   : > { %v3202_v8 = vpop.xlane.xlu0 %3201 }
 0xe60   : > { %v3230_v59 = vsub.f32 %v7114_v36, %v3202_v8 }
 0xe61   : > { %v3199_v12 = vpop.xlane.xlu1 %3198 }
 0xe62   : > { %v3255_v63 = vmul.f32 1.442695, %v3230_v59  ;;  %v3229_v6 = vsub.f32 %v7118_v60, %v3199_v12 }
 0xe63   : > { %v3187_v45 = vpop.xlane.xlu0 %3186 }
 0xe64   : > { %5640 = vpow2.f32 %v3255_v63  ;;  %v3225_v48 = vsub.f32 %v7116_v62, %v3187_v45  ;;  %v3253_v23 = vmul.f32 1.442695, %v3229_v6 }
 0xe65   : > { %v3193_v51 = vpop.xlane.xlu1 %3192 }
 0xe66   : > { %v3245_v54 = vmul.f32 1.442695, %v3225_v48  ;;  %v3227_v0 = vsub.f32 %v7122_v42, %v3193_v51 }
 0xe67   : > { %v3196_v38 = vpop.xlane.xlu0 %3195 }
 0xe68   : > { %5642 = vpow2.f32 %v3245_v54  ;;  %v3228_v55 = vsub.f32 %v7126_v9, %v3196_v38  ;;  %v3249_v36 = vmul.f32 1.442695, %v3227_v0 }
 0xe69   : > { %v3205_v16 = vpop.xlane.xlu1 %3204  ;;  %5644 = vpow2.f32 %v3253_v23 }
 0xe6a   : > { %v3251_v4 = vmul.f32 1.442695, %v3228_v55  ;;  %v3231_v20 = vsub.f32 %v7130_v10, %v3205_v16 }
 0xe6b   : > { %v7193_v60 = vpop.eup %5638  ;;  %v3208_v5 = vpop.xlane.xlu0 %3207 }
 0xe6c   : > { %5646 = vpow2.f32 %v3251_v4  ;;  %v3232_v62 = vsub.f32 %v7134_v11, %v3208_v5  ;;  %v3284_v24 = vsel %vm873_vm1, %v7193_v60, 0.0  ;;  %v3257_v42 = vmul.f32 1.442695, %v3231_v20 }
 0xe6d   : > { %v3211_v25 = vpop.xlane.xlu1 %3210  ;;  %3285 = vadd.xlane.f32.xlu0 %v3284_v24  ;;  %5648 = vpow2.f32 %v3249_v36 }
 0xe6e   : > { %v3259_v9 = vmul.f32 1.442695, %v3232_v62  ;;  %v3233_v27 = vsub.f32 %v7138_v15, %v3211_v25 }
 0xe6f   : > { %v3214_v34 = vpop.xlane.xlu0 %3213 }
 0xe70   : > { %5650 = vpow2.f32 %v3259_v9  ;;  %v3234_v10 = vsub.f32 %v7142_v1, %v3214_v34  ;;  %v3261_v26 = vmul.f32 1.442695, %v3233_v27 }
 0xe71   : > { %v7200_v13 = vpop.eup %5640  ;;  %5652 = vpow2.f32 %v3257_v42  ;;  %v3217_v30 = vpop.xlane.xlu1 %3216 }
 0xe72   : > { %v3263_v11 = vmul.f32 1.442695, %v3234_v10  ;;  %v3235_v33 = vsub.f32 %v7146_v58, %v3217_v30  ;;  %v3296_v40 = vsel %vm873_vm1, %v7200_v13, 0.0 }
 0xe73   : > { %3297 = vadd.xlane.f32.xlu0 %v3296_v40  ;;  %v3220_v18 = vpop.xlane.xlu0 %3219 }
 0xe74   : > { %5654 = vpow2.f32 %v3263_v11  ;;  %v3236_v15 = vsub.f32 %v7150_v56, %v3220_v18  ;;  %v3265_v1 = vmul.f32 1.442695, %v3235_v33 }
 0xe75   : > { %v7206_v47 = vpop.eup %5642  ;;  %5656 = vpow2.f32 %v3261_v26  ;;  %v7250_v51 = vpop.permute.xlu1 %3678 }
 0xe76   : > { %v3267_v49 = vmul.f32 1.442695, %v3236_v15  ;;  %v3281_v3 = vsel %vm873_vm1, %v7206_v47, 0.0  ;;  %v7210_v50 = vpop.eup %5644 }
 0xe77   : > { %3282 = vadd.xlane.f32.xlu1 %v3281_v3  ;;  %v3293_v32 = vsel %vm873_vm1, %v7210_v50, 0.0  ;;  %v3570_v23 = vpop.permute.xlu0 %3569 }
 0xe78   : > { %5658 = vpow2.f32 %v3267_v49 }
 0xe79   : > { %v7212_v58 = vpop.eup %5646  ;;  %5660 = vpow2.f32 %v3265_v1 }
 0xe7a   : > { %v3290_v56 = vsel %vm873_vm1, %v7212_v58, 0.0  ;;  %v7218_v39 = vpop.eup %5648 }
 0xe7b   : > { %3294 = vadd.xlane.f32.xlu1 %v3293_v32  ;;  %3291 = vadd.xlane.f32.xlu0 %v3290_v56  ;;  %v3287_v31 = vsel %vm873_vm1, %v7218_v39, 0.0 }
 0xe7d   : > { %v7220_v53 = vpop.eup %5650 }
 0xe7e   : > { %v7222_v37 = vpop.eup %5652  ;;  %v3302_v57 = vsel %vm873_vm1, %v7220_v53, 0.0 }
 0xe7f   : > { %3288 = vadd.xlane.f32.xlu1 %v3287_v31  ;;  %3303 = vadd.xlane.f32.xlu0 %v3302_v57  ;;  %v3299_v21 = vsel %vm873_vm1, %v7222_v37, 0.0 }
 0xe81   : > { %v7228_v35 = vpop.eup %5654 }
 0xe82   : > { %v3308_v8 = vsel %vm873_vm1, %v7228_v35, 0.0  ;;  %v7234_v59 = vpop.eup %5656 }
 0xe83   : > { %3300 = vadd.xlane.f32.xlu1 %v3299_v21  ;;  %3309 = vadd.xlane.f32.xlu0 %v3308_v8  ;;  %v3305_v63 = vsel %vm873_vm1, %v7234_v59, 0.0 }
 0xe85   : > { %v7236_v12 = vpop.eup %5658 }
 0xe86   : > { %v3314_v6 = vsel %vm873_vm1, %v7236_v12, 0.0  ;;  %v7242_v45 = vpop.eup %5660 }
 0xe87   : > { %3306 = vadd.xlane.f32.xlu1 %v3305_v63  ;;  %3315 = vadd.xlane.f32.xlu0 %v3314_v6  ;;  %v3311_v48 = vsel %vm873_vm1, %v7242_v45, 0.0 }
 0xe8b   : > { %3312 = vadd.xlane.f32.xlu1 %v3311_v48 }
 0xe9c   : > { %3676 = vrot.lane.b32.xlu1 %v7010_v7, %s6078_s24 }
 0xe9d   : > { %3567 = vrot.lane.b32.xlu0 %v6994_v2, %s6078_s24  ;;  %s738_s24 = sand.u32 1, %s6050_s30  }
 0xe9e   : > { %s4633_s6 = sshll.u32 %s738_s24, 2  ;;  %s4439_s27 = scalar_lea.sflag [#allocation4], %s738_s24 }
 0xea6   : > { %v3271_v54 = vpop.xlane.xlu1 %3270 }
 0xea7   : > { %5662 = vrcp.f32 %v3271_v54  ;;  %v4770_v54 = vld [vmem:[%s7467_s5 + $0x20] sm:$0xff] }
 0xea8   : > { %v3274_v0 = vpop.xlane.xlu0 %3273 }
 0xea9   : > { %5664 = vrcp.f32 %v3274_v0 }
 0xeaa   : > { %v3277_v38 = vpop.xlane.xlu1 %3276 }
 0xeab   : > { %5666 = vrcp.f32 %v3277_v38 }
 0xeac   : > { %v3280_v55 = vpop.xlane.xlu0 %3279 }
 0xead   : > { %5668 = vrcp.f32 %v3280_v55 }
 0xeb4   : > { %v5663_v16 = vpop.eup %5662 }
 0xeb5   : > { %v3333_v36 = vmul.f32 %v5663_v16, %v7170_v61 }
 0xeb6   : > { %v5665_v4 = vpop.eup %5664 }
 0xeb7   : > { %v3334_v7 = vmul.f32 %v5665_v4, %v7172_v41  ;;  %5287 = vmatprep.mubr.msk.f32.mxu1 %vm873_vm1, %v3333_v36 }
 0xeb8   : > { %v5667_v2 = vpop.eup %5666 }
 0xeb9   : > { %5288 = vmatmul.mubr.msk.f32.vlgmr.msra.gmra.mxu1 %vm873_vm1, %v3334_v7  ;;  %v3335_v20 = vmul.f32 %v5667_v2, %v7176_v43 }
 0xeba   : > { %v5669_v5 = vpop.eup %5668  ;;  %5308 = vmatpush3.msra.mxu1 %v7088_v22 }
 0xebb   : > { %5309 = vmatprep.subr.mxu1 %v7160_v19  ;;  %5290 = vmatprep.mubr.msk.f32.mxu1 %vm873_vm1, %v3335_v20  ;;  %v3336_v62 = vmul.f32 %v5669_v5, %v7180_v46 }
 0xebc   : > { %5310 = vmatpush3.msra.mxu1 %v7160_v19 }
 0xebd   : > { %5311 = vmatprep.subr.mxu1 %v3570_v23  ;;  %5291 = vmatmul.mubr.msk.f32.gmra.mxu1 %vm873_vm1, %v3336_v62 }
 0xebe   : > { %5312 = vmatpush3.msra.mxu1 %v3570_v23 }
 0xef6   : > { %v3286_v61 = vpop.xlane.xlu0 %3285 }
 0xef7   : > { %5670 = vrcp.f32 %v3286_v61 }
 0xefc   : > { %v3298_v41 = vpop.xlane.xlu0 %3297 }
 0xf00   : > { %v3283_v24 = vpop.xlane.xlu1 %3282 }
 0xf01   : > { %5672 = vrcp.f32 %v3283_v24 }
 0xf04   : > { %v3295_v43 = vpop.xlane.xlu1 %3294  ;;  %v3292_v42 = vpop.xlane.xlu0 %3291 }
 0xf05   : > { %5674 = vrcp.f32 %v3295_v43  ;;  %v5671_v9 = vpop.eup %5670 }
 0xf06   : > { %5676 = vrcp.f32 %v3298_v41  ;;  %v3338_v10 = vmul.f32 %v5671_v9, %v7193_v60 }
 0xf07   : > { %5678 = vrcp.f32 %v3292_v42 }
 0xf08   : > { %v3289_v22 = vpop.xlane.xlu1 %3288  ;;  %v3304_v25 = vpop.xlane.xlu0 %3303 }
 0xf09   : > { %5680 = vrcp.f32 %v3289_v22 }
 0xf0a   : > { %5682 = vrcp.f32 %v3304_v25 }
 0xf0c   : > { %v3301_v46 = vpop.xlane.xlu1 %3300  ;;  %v3310_v19 = vpop.xlane.xlu0 %3309 }
 0xf0d   : > { %5684 = vrcp.f32 %v3301_v46 }
 0xf0e   : > { %v5673_v27 = vpop.eup %5672  ;;  %5686 = vrcp.f32 %v3310_v19 }
 0xf0f   : > { %v3337_v34 = vmul.f32 %v5673_v27, %v7206_v47 }
 0xf10   : > { %v3307_v30 = vpop.xlane.xlu1 %3306  ;;  %v3316_v26 = vpop.xlane.xlu0 %3315 }
 0xf11   : > { %5688 = vrcp.f32 %v3307_v30  ;;  %5301 = vmatprep.mubr.msk.f32.mxu0 %vm873_vm1, %v3337_v34 }
 0xf12   : > { %v5675_v11 = vpop.eup %5674  ;;  %5302 = vmatmul.mubr.msk.f32.vlgmr.msra.gmra.mxu0 %vm873_vm1, %v3338_v10  ;;  %5690 = vrcp.f32 %v3316_v26 }
 0xf13   : > { %v5677_v33 = vpop.eup %5676  ;;  %5322 = vmatpush3.msra.mxu0 %v7091_v14  ;;  %v3341_v40 = vmul.f32 %v5675_v11, %v7210_v50 }
 0xf14   : > { %5323 = vmatprep.subr.mxu0 %v7162_v29  ;;  %v3313_v18 = vpop.xlane.xlu1 %3312  ;;  %v3568_v15 = vpop.permute.xlu0 %3567  ;;  %v3342_v1 = vmul.f32 %v5677_v33, %v7200_v13 }
 0xf15   : > { %v5679_v60 = vpop.eup %5678  ;;  %5692 = vrcp.f32 %v3313_v18  ;;  %5324 = vmatpush3.msra.mxu0 %v7162_v29  ;;  %5313 = vmatprep.subr.mxu1 %v3568_v15 }
 0xf16   : > { %v5681_v47 = vpop.eup %5680  ;;  %5315 = vmatprep.mubr.msk.f32.mxu1 %vm873_vm1, %v3341_v40  ;;  %5325 = vmatprep.subr.mxu0 %v7250_v51  ;;  %v3340_v3 = vmul.f32 %v5679_v60, %v7212_v58 }
 0xf17   : > { %5314 = vmatpush3.msra.mxu1 %v3568_v15  ;;  %5326 = vmatpush3.msra.mxu0 %v7250_v51  ;;  %v3339_v14 = vmul.f32 %v5681_v47, %v7218_v39  ;;  %v5683_v50 = vpop.eup %5682  ;;  %v4771_v51 = vld [vmem:[%s7467_s5 + $0x28] sm:$0xff] }
 0xf18   : > { %5316 = vmatmul.mubr.msk.f32.vlgmr.msra.gmra.mxu1 %vm873_vm1, %v3342_v1  ;;  %v3677_v49 = vpop.permute.xlu1 %3676  ;;  %v3344_v32 = vmul.f32 %v5683_v50, %v7220_v53  ;;  %v4774_v1 = vld [vmem:[#allocation8 + $0x1] ss:$0 sm:$0xff] }
 0xf19   : > { %5304 = vmatprep.mubr.msk.f32.mxu0 %vm873_vm1, %v3339_v14  ;;  %5327 = vmatprep.subr.mxu0 %v3677_v49 }
 0xf1a   : > { %v5685_v29 = vpop.eup %5684  ;;  %5305 = vmatmul.mubr.msk.f32.gmra.mxu0 %vm873_vm1, %v3340_v3 }
 0xf1b   : > { %5328 = vmatpush3.msra.mxu0 %v3677_v49  ;;  %v3343_v13 = vmul.f32 %v5685_v29, %v7222_v37  ;;  %v5687_v56 = vpop.eup %5686 }
 0xf1c   : > { %v3346_v31 = vmul.f32 %v5687_v56, %v7228_v35  ;;  %v4773_v35 = vld [vmem:[%s7467_s5 + $0x38] sm:$0xff] }
 0xf1d   : > { %5318 = vmatprep.mubr.msk.f32.mxu1 %vm873_vm1, %v3343_v13  ;;  %5335 = vmatprep.subr.mxu1 %v4773_v35 }
 0xf1e   : > { %v5689_v39 = vpop.eup %5688  ;;  %5319 = vmatmul.mubr.msk.f32.gmra.mxu1 %vm873_vm1, %v3344_v32 }
 0xf1f   : > { %v3345_v58 = vmul.f32 %v5689_v39, %v7234_v59  ;;  %v5691_v57 = vpop.eup %5690  ;;  %5336 = vmatpush3.msra.mxu1 %v4773_v35 }
 0xf20   : > { %v3348_v53 = vmul.f32 %v5691_v57, %v7236_v12  ;;  %v4772_v12 = vld [vmem:[%s7467_s5 + $0x30] sm:$0xff] }
 0xf21   : > { %5329 = vmatprep.mubr.msk.f32.mxu0 %vm873_vm1, %v3345_v58  ;;  %5337 = vmatprep.subr.mxu1 %v4772_v12 }
 0xf22   : > { %v5693_v21 = vpop.eup %5692  ;;  %5330 = vmatmul.mubr.msk.f32.vlgmr.msra.gmra.mxu0 %vm873_vm1, %v3346_v31  ;;  %5338 = vmatpush3.msra.mxu1 %v4772_v12 }
 0xf23   : > { %v3347_v37 = vmul.f32 %v5693_v21, %v7242_v45  ;;  %5339 = vmatprep.subr.mxu1 %v4771_v51 }
 0xf24   : > { %5340 = vmatpush3.msra.mxu1 %v4771_v51 }
 0xf25   : > { %5332 = vmatprep.mubr.msk.f32.mxu0 %vm873_vm1, %v3347_v37  ;;  %5341 = vmatprep.subr.mxu1 %v4770_v54 }
 0xf26   : > { %5333 = vmatmul.mubr.msk.f32.gmra.mxu0 %vm873_vm1, %v3348_v53  ;;  %5342 = vmatpush3.msra.mxu1 %v4770_v54 }
 0xf79   : > { %v5289_v8 = vpop.f32.mrf.mxu1 }
 0xf7b   : > { %v3439_v63 = vpop.f32.mrf.mxu1 }
 0xf7d   : > { %v5292_v6 = vpop.f32.mrf.mxu1 }
 0xf7f   : > { %v3449_v45 = vpop.f32.mrf.mxu1 }
 0xfd2   : > { %v5303_v59 = vpop.f32.mrf.mxu0 }
 0xfd3   : > { %3791 = vrot.lane.b32.xlu1 %v5303_v59, %s6079_s0 }
 0xfd4   : > { %v3548_v48 = vpop.f32.mrf.mxu0 }
 0xfd5   : > { %3789 = vrot.lane.b32.xlu0 %v3548_v48, %s6079_s0 }
 0xfd8   : > { %v5317_v23 = vpop.f32.mrf.mxu1 }
 0xfd9   : > { %3807 = vrot.lane.b32.xlu1 %v5317_v23, %s7539_s21 }
 0xfda   : > { %v3657_v0 = vpop.f32.mrf.mxu1  ;;  %v5306_v38 = vpop.f32.mrf.mxu0 }
 0xfdb   : > { %3805 = vrot.lane.b32.xlu0 %v3657_v0, %s7539_s21 }
 0xfdc   : > { %v3558_v55 = vpop.f32.mrf.mxu0 }
 0xfdd   : > { %3795 = vrot.lane.b32.xlu1 %v5306_v38, %s6079_s0 }
 0xfde   : > { %v5320_v16 = vpop.f32.mrf.mxu1 }
 0xfdf   : > { %3793 = vrot.lane.b32.xlu0 %v3558_v55, %s6079_s0 }
 0xfe0   : > { %v3667_v36 = vpop.f32.mrf.mxu1 }
 0xfe1   : > { %3811 = vrot.lane.b32.xlu1 %v5320_v16, %s7539_s21 }
 0xfe2   : > { %v5331_v4 = vpop.f32.mrf.mxu0 }
 0xfe3   : > { %3809 = vrot.lane.b32.xlu0 %v3667_v36, %s7539_s21  ;;  %s5978_s21 = sshll.u32 %s6084_s23, 4  ;;  %s5979_s21 = int_to_ptr.vmem [resolvable:$false] %s5978_s21 }
 0xfe4   : > { %v3766_v7 = vpop.f32.mrf.mxu0  ;;  %s5980_s1 = scalar_lea.vmem %s5979_s21, 128 }
 0xfe5   : > { %3823 = vrot.lane.b32.xlu1 %v5331_v4, %s7540_s26 }
 0xfe6   : > { %v5334_v2 = vpop.f32.mrf.mxu0 }
 0xfe7   : > { %3821 = vrot.lane.b32.xlu0 %v3766_v7, %s7540_s26  ;;  %v4784_v7 = vld [vmem:[%s7471_s9 + $0x38] sm:$0xff] }
 0xfe8   : > { %v3776_v20 = vpop.f32.mrf.mxu0  ;;  %5349 = vmatprep.subr.mxu0 %v4784_v7 }
 0xfe9   : > { %3827 = vrot.lane.b32.xlu1 %v5334_v2, %s7540_s26  ;;  %v4783_v2 = vld [vmem:[%s7471_s9 + $0x30] sm:$0xff]  ;;  %5350 = vmatpush3.msra.mxu0 %v4784_v7 }
 0xfea   : > { %5351 = vmatprep.subr.mxu0 %v4783_v2 }
 0xfeb   : > { %3825 = vrot.lane.b32.xlu0 %v3776_v20, %s7540_s26  ;;  %v4782_v20 = vld [vmem:[%s7471_s9 + $0x28] sm:$0xff]  ;;  %5352 = vmatpush3.msra.mxu0 %v4783_v2  ;;  %s740_s26 = scalar_lea.vmem [#allocation19], %s4633_s6 }
 0xfec   : > { %5353 = vmatprep.subr.mxu0 %v4782_v20  ;;  %s4452_s0 = sshll.u32 %s740_s26, 4  ;;  %s4453_s0 = int_to_ptr.vmem [resolvable:$true] %s4452_s0 }
 0xfed   : > { %5354 = vmatpush3.msra.mxu0 %v4782_v20  ;;  %s5974_s22 = scalar_lea.vmem %s4453_s0, 64  ;;  %p5981_p3 = scmp.lt.s32.totalorder %s4453_s0, %s5979_s21 }
 0xfee   : > { %p5975_p7 = scmp.ne.s32.totalorder %s4453_s0, %s5974_s22  ;;  %p5982_p12 = scmp.lt.s32.totalorder %s5980_s1, %s5974_s22 }
 0xff0   : > { %p5976_p11 = pnand %p5975_p7, %p6223_p5  ;;  %p5983_p10 = por %p5982_p12, %p5981_p3 }
 0xff2   : > { %p5977_p0 = pneg %p5976_p11 }
 0xff4   : > { %p5984_p1 = pnand %p5983_p10, %p5977_p0 }
0x1045   : > { %v3792_v5 = vpop.permute.xlu1 %3791 }
0x1046   : > { %v3834_v19 = vsel %vm1007_vm2, %v5289_v8, %v3792_v5  ;;  %v4781_v5 = vld [vmem:[%s7471_s9 + $0x20] sm:$0xff] }
0x1047   : > { %v3790_v62 = vpop.permute.xlu0 %3789  ;;  %5355 = vmatprep.subr.mxu0 %v4781_v5 }
0x1048   : > { %v3833_v46 = vsel %vm1007_vm2, %v3439_v63, %v3790_v62  ;;  %5356 = vmatpush3.msra.mxu0 %v4781_v5  ;;  %v4797_v62 = vld [vmem:[%s7473_s11 + $0x78] sm:$0xff] }
0x1049   : > { %5363 = vmatprep.subr.mxu1 %v4797_v62 }
0x104b   : > { %v3808_v61 = vpop.permute.xlu1 %3807 }
0x104c   : > { %v3838_v34 = vsel %vm764_vm0, %v3834_v19, %v3808_v61  ;;  %v4796_v61 = vld [vmem:[%s7473_s11 + $0x70] sm:$0xff] }
0x104d   : > { %v3806_v41 = vpop.permute.xlu0 %3805 }
0x104e   : > { %v3837_v9 = vsel %vm764_vm0, %v3833_v46, %v3806_v41  ;;  %v4795_v41 = vld [vmem:[%s7473_s11 + $0x68] sm:$0xff] }
0x104f   : > { %v3796_v24 = vpop.permute.xlu1 %3795 }
0x1050   : > { %v3836_v33 = vsel %vm1007_vm2, %v5292_v6, %v3796_v24  ;;  %v4794_v24 = vld [vmem:[%s7473_s11 + $0x60] sm:$0xff] }
0x1051   : > { %v3794_v43 = vpop.permute.xlu0 %3793 }
0x1052   : > { %v3835_v26 = vsel %vm1007_vm2, %v3449_v45, %v3794_v43 }
0x1053   : > { %v3812_v42 = vpop.permute.xlu1 %3811 }
0x1054   : > { %v3840_v15 = vsel %vm764_vm0, %v3836_v33, %v3812_v42 }
0x1055   : > { %v3810_v22 = vpop.permute.xlu0 %3809 }
0x1056   : > { %v3839_v40 = vsel %vm764_vm0, %v3835_v26, %v3810_v22 }
0x1057   : > { %v3824_v25 = vpop.permute.xlu1 %3823 }
0x1058   : > { %v3842_v30 = vsel %vm2104_vm3, %v3838_v34, %v3824_v25 }
0x1059   : > { %v3822_v27 = vpop.permute.xlu0 %3821 }
0x105a   : > { %v3841_v10 = vsel %vm2104_vm3, %v3837_v9, %v3822_v27 }
0x105b   : > { %5343 = vmatprep.mubr.msk.f32.mxu1 %vm873_vm1, %v3841_v10  ;;  %v3828_v11 = vpop.permute.xlu1 %3827 }
0x105c   : > { %5344 = vmatmul.mubr.msk.f32.vlgmr.msra.gmra.mxu1 %vm873_vm1, %v3842_v30  ;;  %v3844_v47 = vsel %vm2104_vm3, %v3840_v15, %v3828_v11 }
0x105d   : > { %v3826_v18 = vpop.permute.xlu0 %3825  ;;  %5364 = vmatpush3.msra.mxu1 %v4797_v62 }
0x105e   : > { %v3843_v60 = vsel %vm2104_vm3, %v3839_v40, %v3826_v18  ;;  %5365 = vmatprep.subr.mxu1 %v4796_v61  ;;  %v4779_v40 = vld [vmem:[#allocation10 + $0x1] ss:$0 sm:$0xff] }
0x105f   : > { %5346 = vmatprep.mubr.msk.f32.mxu1 %vm873_vm1, %v3843_v60  ;;  %5366 = vmatpush3.msra.mxu1 %v4796_v61 }
0x1060   : > { %5347 = vmatmul.mubr.msk.f32.gmra.mxu1 %vm873_vm1, %v3844_v47  ;;  %5367 = vmatprep.subr.mxu1 %v4795_v41 }
0x1061   : > { %5368 = vmatpush3.msra.mxu1 %v4795_v41 }
0x1062   : > { %5369 = vmatprep.subr.mxu1 %v4794_v24 }
0x1063   : > { %5370 = vmatpush3.msra.mxu1 %v4794_v24 }
0x111c   : > { %v5345_v14 = vpop.f32.mrf.mxu1 }
0x111d   : > { %v3942_v49 = vadd.f32 %v5345_v14, %v4774_v1 }
0x111e   : > { %v3936_v3 = vpop.f32.mrf.mxu1 }
0x111f   : > { %v3956_v50 = vadd.f32 %v3942_v49, %v6919_v44  ;;  %v3937_v29 = vadd.f32 %v4774_v1, %v3936_v3 }
0x1120   : > { %v5348_v13 = vpop.f32.mrf.mxu1 }
0x1121   : > { %v3955_v32 = vadd.f32 %v3937_v29, %v6917_v17  ;;  %v3962_v56 = vsel %vm873_vm1, %v3956_v50, 0.0  ;;  %v3952_v58 = vadd.f32 %v5348_v13, %v4774_v1 }
0x1122   : > { %3963 = vadd.xlane.f32.xlu1 %v3962_v56  ;;  %v3946_v39 = vpop.f32.mrf.mxu1 }
0x1123   : > { %v3947_v31 = vadd.f32 %v4774_v1, %v3946_v39  ;;  %v3959_v57 = vsel %vm873_vm1, %v3955_v32, 0.0  ;;  %v3958_v37 = vadd.f32 %v3952_v58, %v6927_v28  ;;  %v4780_v1 = vld [vmem:[#allocation11 + $0x1] ss:$0 sm:$0xff] }
0x1124   : > { %3960 = vadd.xlane.f32.xlu0 %v3959_v57  ;;  %v4792_v57 = vld [vmem:[%s7473_s11 + $0x50] sm:$0xff] }
0x1125   : > { %v3957_v21 = vadd.f32 %v3947_v31, %v6925_v52  ;;  %v3968_v44 = vsel %vm873_vm1, %v3958_v37, 0.0  ;;  %v4793_v31 = vld [vmem:[%s7473_s11 + $0x58] sm:$0xff] }
0x1126   : > { %5371 = vmatprep.subr.mxu1 %v4793_v31 }
0x1127   : > { %v3965_v53 = vsel %vm873_vm1, %v3957_v21, 0.0  ;;  %5372 = vmatpush3.msra.mxu1 %v4793_v31 }
0x1128   : > { %3966 = vadd.xlane.f32.xlu0 %v3965_v53  ;;  %5373 = vmatprep.subr.mxu1 %v4792_v57  ;;  %v4785_v53 = vld [vmem:[#allocation13 + $0x1] ss:$0 sm:$0xff] }
0x1129   : > { %5374 = vmatpush3.msra.mxu1 %v4792_v57 }
0x112c   : > { %3969 = vadd.xlane.f32.xlu0 %v3968_v44 }
0x11ab   : > { %v3964_v17 = vpop.xlane.xlu1 %3963 }
0x11ac   : > { %v3972_v8 = vmul.f32 0.03125, %v3964_v17 }
0x11ad   : > { %v3961_v63 = vpop.xlane.xlu0 %3960 }
0x11ae   : > { %v3976_v6 = vsub.f32 %v3956_v50, %v3972_v8  ;;  %v3971_v59 = vmul.f32 0.03125, %v3961_v63 }
0x11b0   : > { %v7340_v35 = vsub.f32 %v3955_v32, %v3971_v59  ;;  %v3980_v48 = vmul.f32 %v3976_v6, %v3976_v6 }
0x11b1   : > { %v3967_v12 = vpop.xlane.xlu0 %3966 }
0x11b2   : > { %v3973_v45 = vmul.f32 0.03125, %v3967_v12  ;;  %v3986_v52 = vsel %vm873_vm1, %v3980_v48, 0.0  ;;  %v3979_v28 = vmul.f32 %v7340_v35, %v7340_v35 }
0x11b3   : > { %3987 = vadd.xlane.f32.xlu0 %v3986_v52 }
0x11b4   : > { %v3977_v51 = vsub.f32 %v3957_v21, %v3973_v45  ;;  %v3983_v23 = vsel %vm873_vm1, %v3979_v28, 0.0  ;;  %v4791_v21 = vld [vmem:[%s7473_s11 + $0x48] sm:$0xff] }
0x11b5   : > { %3984 = vadd.xlane.f32.xlu1 %v3983_v23  ;;  %v3970_v54 = vpop.xlane.xlu0 %3969  ;;  %5375 = vmatprep.subr.mxu1 %v4791_v21  ;;  %v4798_v23 = vld [vmem:[#allocation14 + $0x1] ss:$0 sm:$0xff] }
0x11b6   : > { %v3974_v0 = vmul.f32 0.03125, %v3970_v54  ;;  %v3981_v38 = vmul.f32 %v3977_v51, %v3977_v51  ;;  %5376 = vmatpush3.msra.mxu1 %v4791_v21 }
0x11b8   : > { %v7346_v55 = vsub.f32 %v3958_v37, %v3974_v0  ;;  %v3989_v16 = vsel %vm873_vm1, %v3981_v38, 0.0  ;;  %v4790_v37 = vld [vmem:[%s7473_s11 + $0x40] sm:$0xff] }
0x11b9   : > { %3990 = vadd.xlane.f32.xlu1 %v3989_v16  ;;  %5377 = vmatprep.subr.mxu1 %v4790_v37 }
0x11ba   : > { %v3982_v36 = vmul.f32 %v7346_v55, %v7346_v55  ;;  %5378 = vmatpush3.msra.mxu1 %v4790_v37 }
0x11bc   : > { %v3992_v4 = vsel %vm873_vm1, %v3982_v36, 0.0 }
0x11bd   : > { %3993 = vadd.xlane.f32.xlu0 %v3992_v4 }
0x123c   : > { %v3988_v43 = vpop.xlane.xlu0 %3987 }
0x123d   : > { %v3996_v42 = vmul.f32 0.03125, %v3988_v43 }
0x123e   : > { %v3985_v22 = vpop.xlane.xlu1 %3984 }
0x123f   : > { %v4000_v25 = vadd.f32 1e-05, %v3996_v42  ;;  %v3995_v46 = vmul.f32 0.03125, %v3985_v22 }
0x1241   : > { %5694 = vrsqrt.f32 %v4000_v25  ;;  %v3999_v19 = vadd.f32 1e-05, %v3995_v46 }
0x1242   : > { %v3991_v9 = vpop.xlane.xlu1 %3990 }
0x1243   : > { %5696 = vrsqrt.f32 %v3999_v19  ;;  %v3997_v27 = vmul.f32 0.03125, %v3991_v9 }
0x1245   : > { %v4001_v34 = vadd.f32 1e-05, %v3997_v27 }
0x1246   : > { %v3994_v10 = vpop.xlane.xlu0 %3993 }
0x1247   : > { %5698 = vrsqrt.f32 %v4001_v34  ;;  %v3998_v30 = vmul.f32 0.03125, %v3994_v10 }
0x1249   : > { %v4002_v26 = vadd.f32 1e-05, %v3998_v30 }
0x124b   : > { %5700 = vrsqrt.f32 %v4002_v26 }
0x124e   : > { %v5695_v11 = vpop.eup %5694 }
0x124f   : > { %v4008_v33 = vmul.f32 %v5695_v11, %v3976_v6 }
0x1250   : > { %v5697_v18 = vpop.eup %5696 }
0x1251   : > { %v4007_v15 = vmul.f32 %v5697_v18, %v7340_v35  ;;  %v4020_v60 = vmul.f32 %v4779_v40, %v4008_v33 }
0x1253   : > { %v4019_v47 = vmul.f32 %v4779_v40, %v4007_v15  ;;  %v4032_v50 = vadd.f32 %v4780_v1, %v4020_v60 }
0x1254   : > { %v5699_v14 = vpop.eup %5698 }
0x1255   : > { %v4031_v49 = vadd.f32 %v4780_v1, %v4019_v47  ;;  %v4009_v3 = vmul.f32 %v5699_v14, %v3977_v51  ;;  %v6082_v14 = vmov 0.0  }
0x1256   : > { %5385 = vmatprep.subr.mxu0 %v6082_v14 }
0x1257   : > { %5357 = vmatprep.mubr.msk.f32.mxu0 %vm873_vm1, %v4031_v49  ;;  %v4021_v29 = vmul.f32 %v4779_v40, %v4009_v3 }
0x1258   : > { %v5701_v13 = vpop.eup %5700  ;;  %5358 = vmatmul.mubr.msk.f32.vlgmr.msra.gmra.mxu0 %vm873_vm1, %v4032_v50 }
0x1259   : > { %v4033_v32 = vadd.f32 %v4780_v1, %v4021_v29  ;;  %v4010_v56 = vmul.f32 %v5701_v13, %v7346_v55 }
0x125b   : > { %5360 = vmatprep.mubr.msk.f32.mxu0 %vm873_vm1, %v4033_v32  ;;  %v4022_v39 = vmul.f32 %v4779_v40, %v4010_v56 }
0x125d   : > { %v4034_v58 = vadd.f32 %v4780_v1, %v4022_v39 }
0x125f   : > { %5361 = vmatmul.mubr.msk.f32.gmra.mxu0 %vm873_vm1, %v4034_v58 }
0x1260   : > { %5393 = vmatprep.mubr.msk.f32.mxu0 %vm6083_vm5, %v6082_v14 }
0x1318   : > { %v5359_v44 = vpop.f32.mrf.mxu0 }
0x1319   : > { %v4132_v17 = vadd.f32 %v5359_v44, %v4785_v53 }
0x131a   : > { %v4126_v8 = vpop.f32.mrf.mxu0 }
0x131b   : > { %v4127_v63 = vadd.f32 %v4785_v53, %v4126_v8  ;;  %v4146_v59 = vmax.f32 %v4132_v17, 0.0  ;;  %v4805_v8 = vld [vmem:[%s7476_s14 + $0x1] ss:$0 sm:$0xff] }
0x131d   : > { %v4145_v6 = vmax.f32 %v4127_v63, 0.0 }
0x131f   : > { %v5362_v35 = vpop.f32.mrf.mxu0  ;;  %5379 = vmatprep.mubr.msk.f32.mxu1 %vm2423_vm4, %v4145_v6 }
0x1320   : > { %5380 = vmatmul.mubr.msk.f32.vlgmr.msra.gmra.mxu1 %vm2423_vm4, %v4146_v59  ;;  %v4142_v48 = vadd.f32 %v5362_v35, %v4785_v53  ;;  %v4346_v35 = vld [vmem:[%s7477_s15 + $0x18] sm:$0xff] }
0x1321   : > { %v4136_v12 = vpop.f32.mrf.mxu0 }
0x1322   : > { %v4137_v45 = vadd.f32 %v4785_v53, %v4136_v12  ;;  %v4148_v28 = vmax.f32 %v4142_v48, 0.0  ;;  %v4803_v53 = vld [vmem:[#allocation16 + $0x1] ss:$0 sm:$0xff] }
0x1324   : > { %v4147_v52 = vmax.f32 %v4137_v45, 0.0 }
0x1326   : > { %5382 = vmatprep.mubr.msk.f32.mxu1 %vm2423_vm4, %v4147_v52 }
0x1327   : > { %5383 = vmatmul.mubr.msk.f32.gmra.mxu1 %vm2423_vm4, %v4148_v28  ;;  %v4345_v28 = vld [vmem:[%s7477_s15 + $0x10] sm:$0xff] }
0x13e0   : > { %v5381_v51 = vpop.f32.mrf.mxu1 }
0x13e1   : > { %v4250_v38 = vadd.f32 %v5381_v51, %v4798_v23 }
0x13e2   : > { %v4244_v54 = vpop.f32.mrf.mxu1 }
0x13e3   : > { %v4245_v36 = vadd.f32 %v4798_v23, %v4244_v54  ;;  %v4264_v2 = vadd.f32 %v4250_v38, %v4032_v50  ;;  %v4344_v38 = vld [vmem:[%s7477_s15 + $0x8] sm:$0xff] }
0x13e5   : > { %v4263_v62 = vadd.f32 %v4245_v36, %v4031_v49  ;;  %v4270_v41 = vsel %vm873_vm1, %v4264_v2, 0.0 }
0x13e7   : > { %v5384_v0 = vpop.f32.mrf.mxu1  ;;  %v4267_v24 = vsel %vm873_vm1, %v4263_v62, 0.0 }
0x13e8   : > { %v4260_v55 = vadd.f32 %v5384_v0, %v4798_v23 }
0x13e9   : > { %v4254_v16 = vpop.f32.mrf.mxu1 }
0x13ea   : > { %v4266_v4 = vadd.f32 %v4260_v55, %v4034_v58  ;;  %v4255_v7 = vadd.f32 %v4798_v23, %v4254_v16 }
0x13ec   : > { %v4265_v20 = vadd.f32 %v4255_v7, %v4033_v32  ;;  %v4276_v5 = vsel %vm873_vm1, %v4266_v4, 0.0 }
0x13ed   : > { %4277 = vadd.xlane.f32.xlu1 %v4276_v5  ;;  %v4351_v5 = vld [vmem:[%s7480_s18] sm:$0xf] }
0x13ee   : > { %v4273_v61 = vsel %vm873_vm1, %v4265_v20, 0.0 }
0x13ef   : > { %4274 = vadd.xlane.f32.xlu0 %v4273_v61 }
0x13f1   : > { %4271 = vadd.xlane.f32.xlu1 %v4270_v41 }
0x13f3   : > { %4268 = vadd.xlane.f32.xlu0 %v4267_v24  ;;  %v4807_v24 = vld [vmem:[%s7478_s16] ss:$0 sm:$0xff] }
0x1476   : > { %v4278_v43 = vpop.xlane.xlu1 %4277 }
0x1477   : > { %v4282_v42 = vmul.f32 0.03125, %v4278_v43 }
0x1478   : > { %v4275_v22 = vpop.xlane.xlu0 %4274 }
0x1479   : > { %v4286_v25 = vsub.f32 %v4266_v4, %v4282_v42  ;;  %v4281_v46 = vmul.f32 0.03125, %v4275_v22  ;;  %v4343_v4 = vld [vmem:[%s7477_s15] sm:$0xff] }
0x147a   : > { %v4272_v19 = vpop.xlane.xlu1 %4271 }
0x147b   : > { %v4285_v9 = vsub.f32 %v4265_v20, %v4281_v46  ;;  %v4280_v27 = vmul.f32 0.03125, %v4272_v19  ;;  %v4290_v34 = vmul.f32 %v4286_v25, %v4286_v25 }
0x147c   : > { %v4269_v10 = vpop.xlane.xlu0 %4268 }
0x147d   : > { %v4284_v30 = vsub.f32 %v4264_v2, %v4280_v27  ;;  %v4279_v26 = vmul.f32 0.03125, %v4269_v10  ;;  %v4300_v11 = vsel %vm873_vm1, %v4290_v34, 0.0  ;;  %v4289_v33 = vmul.f32 %v4285_v9, %v4285_v9 }
0x147e   : > { %4301 = vadd.xlane.f32.xlu1 %v4300_v11 }
0x147f   : > { %v4283_v40 = vsub.f32 %v4263_v62, %v4279_v26  ;;  %v4297_v18 = vsel %vm873_vm1, %v4289_v33, 0.0  ;;  %v4288_v15 = vmul.f32 %v4284_v30, %v4284_v30 }
0x1480   : > { %4298 = vadd.xlane.f32.xlu0 %v4297_v18 }
0x1481   : > { %v4294_v60 = vsel %vm873_vm1, %v4288_v15, 0.0  ;;  %v4287_v47 = vmul.f32 %v4283_v40, %v4283_v40 }
0x1482   : > { %4295 = vadd.xlane.f32.xlu1 %v4294_v60 }
0x1483   : > { %v4291_v1 = vsel %vm873_vm1, %v4287_v47, 0.0 }
0x1484   : > { %4292 = vadd.xlane.f32.xlu0 %v4291_v1 }
0x1507   : > { %v4302_v49 = vpop.xlane.xlu1 %4301 }
0x1508   : > { %v4306_v3 = vmul.f32 0.03125, %v4302_v49 }
0x1509   : > { %v4299_v50 = vpop.xlane.xlu0 %4298 }
0x150a   : > { %v4310_v29 = vadd.f32 1e-05, %v4306_v3  ;;  %v4305_v13 = vmul.f32 0.03125, %v4299_v50 }
0x150b   : > { %v4296_v32 = vpop.xlane.xlu1 %4295 }
0x150c   : > { %5702 = vrsqrt.f32 %v4310_v29  ;;  %v4309_v56 = vadd.f32 1e-05, %v4305_v13  ;;  %v4304_v39 = vmul.f32 0.03125, %v4296_v32 }
0x150d   : > { %v4293_v58 = vpop.xlane.xlu0 %4292 }
0x150e   : > { %5704 = vrsqrt.f32 %v4309_v56  ;;  %v4308_v31 = vadd.f32 1e-05, %v4304_v39  ;;  %v4303_v57 = vmul.f32 0.03125, %v4293_v58 }
0x1510   : > { %5706 = vrsqrt.f32 %v4308_v31  ;;  %v4307_v21 = vadd.f32 1e-05, %v4303_v57 }
0x1512   : > { %5708 = vrsqrt.f32 %v4307_v21 }
0x1519   : > { %v5703_v37 = vpop.eup %5702 }
0x151a   : > { %v4318_v44 = vmul.f32 %v5703_v37, %v4286_v25 }
0x151b   : > { %v5705_v17 = vpop.eup %5704 }
0x151c   : > { %v4330_v63 = vmul.f32 %v4803_v53, %v4318_v44  ;;  %v4317_v6 = vmul.f32 %v5705_v17, %v4285_v9 }
0x151d   : > { %v5707_v59 = vpop.eup %5706 }
0x151e   : > { %v4342_v48 = vadd.f32 %v4805_v8, %v4330_v63  ;;  %v4329_v12 = vmul.f32 %v4803_v53, %v4317_v6  ;;  %v4316_v45 = vmul.f32 %v5707_v59, %v4284_v30 }
0x151f   : > { %v5709_v52 = vpop.eup %5708 }
0x1520   : > { %v4350_v51 = vmul.f32 %v4346_v35, %v4342_v48  ;;  %v4341_v23 = vadd.f32 %v4805_v8, %v4329_v12  ;;  %v4328_v54 = vmul.f32 %v4803_v53, %v4316_v45  ;;  %v4315_v0 = vmul.f32 %v5709_v52, %v4283_v40 }
0x1522   : > { %5386 = vmatpush3.msra.mxu0 %v4350_v51  ;;  %v4349_v55 = vmul.f32 %v4345_v28, %v4341_v23  ;;  %v4340_v16 = vadd.f32 %v4805_v8, %v4328_v54  ;;  %v4327_v36 = vmul.f32 %v4803_v53, %v4315_v0 }
0x1523   : > { %5387 = vmatprep.subr.mxu0 %v6082_v14 }
0x1524   : > { %5388 = vmatpush3.msra.mxu0 %v4349_v55  ;;  %v4348_v7 = vmul.f32 %v4344_v38, %v4340_v16  ;;  %v4339_v2 = vadd.f32 %v4805_v8, %v4327_v36 }
0x1525   : > { %5389 = vmatprep.subr.mxu0 %v6082_v14 }
0x1526   : > { %5390 = vmatpush3.msra.mxu0 %v4348_v7  ;;  %v4347_v20 = vmul.f32 %v4343_v4, %v4339_v2 }
0x1527   : > { %5391 = vmatprep.subr.mxu0 %v6082_v14 }
0x1528   : > { %5392 = vmatpush3.msra.mxu0 %v4347_v20 }
0x1529   : > { %5394 = vmatmul.mubr.msk.f32.vlgmr.msra.gmra.mxu0 %vm873_vm1, %v4351_v5 }
0x15e9   : > { %v4421_v62 = vpop.f32.mrf.mxu0 }
0x15ea   : > { %v4426_v61 = vsel %vm4425_vm6, %v4421_v62, 0.0 }
0x15eb   : > { %v5395_v41 = vpop.f32.mrf.mxu0  ;;  %4427 = vadd.xlane.f32.xlu1 %v4426_v61 }
0x1674   : > { %v4428_v43 = vpop.xlane.xlu1 %4427 }
0x1675   : > { %v4436_v42 = vadd.f32 %v4807_v24, %v4428_v43 }
0x1677   : > { %4437 = vst [vmem:[%s740_s26] sm:$0xf] %v4436_v42 }
0x1678   : > { %5987 = shalt.err (!%p5984_p1)
}
0x1679   : > { %s5988_s6 = scalar_lea.hbm %s4450_s2, 64  ;;  %s5992_s28 = scalar_lea.hbm %s7541_s25, 128 }
0x167a   : > { %p5989_p2 = scmp.ne.s32.totalorder %s4450_s2, %s5988_s6  ;;  %p5993_p8 = scmp.lt.s32.totalorder %s4450_s2, %s7541_s25 }
0x167b   : > { %p5994_p13 = scmp.lt.s32.totalorder %s5992_s28, %s5988_s6 }
0x167c   : > { %p5990_p4 = pnand %p5989_p2, %p6223_p5 }
0x167d   : > { %p5995_p7 = por %p5994_p13, %p5993_p8 }
0x167e   : > { %p5991_p9 = pneg %p5990_p4 }
0x1680   : > { %p5996_p11 = pnand %p5995_p7, %p5991_p9 }
0x1682   : > { %5999 = shalt.err (!%p5996_p11)
}
0x1683   : > { %5436 = dma.vmem_to_hbm [thread:$0]  (%p6223_p5), %s4453_s0, 64, %s4450_s2, %s4439_s27  }
0x1684 PF: > { %s7542_s20 = sld [smem:[#allocation29_spill]] }
0x1685   : > { %s7543_s22 = sld [smem:[#allocation27_spill]] }
0x168a   : > { %p5493_p0 = scmp.ge.s32.totalorder %s7542_s20, 2 }
0x168b   : > { %s4464_s21 = sand.u32 1, %s7543_s22  }
0x168c   : > { %p5470_p3 = pnand %p5493_p0, %p6227_p6  ;;  %s4465_s1 = scalar_lea.sflag [#allocation4], %s4464_s21 }
0x168e   : > { %p5471_p12 = pneg %p5470_p3 }
0x1690   : > { %6041 = dma.done.wait (%p5471_p12), %s4465_s1, 64  }
0x1691   : > { %6043 = vsyncadd (%p5471_p12), %s4465_s1, 4294967232  ;;  %s7545_s21 = sld [smem:[#allocation30_spill]]  ;;  %s7548_s0 = smov %s6050_s30 }
0x1692   : > { %s7546_s6 = sld [smem:[#allocation28_spill]] }
0x1693   : > { %s7547_s20 = sld [smem:[#allocation31_spill]] }
0x1697   : > { %p35_p10 = scmp.ge.s32.totalorder %s7545_s21, 4  }
0x1698   : > { %s7549_s30 = smov %s7546_s6 }
0x1699   :  { %37 = sbr.rel (!%p35_p10) target bundleno = 17 (0x11), region = 184 }
0x169e   :  { %4470 = vsyncpa [#allocation3], 1 }
0x169f   :  { %4472 = vsyncpa [#allocation3 + $0x1], 1 }
0x16a0   :  { %4473 = vsyncpa [#allocation6], 1 }
0x16a1   :  { %4474 = vsyncpa [#allocation9], 1 }
0x16a2   :  { %4475 = vsyncpa [#allocation12], 1 }
0x16a3   :  { %4476 = vsyncpa [#allocation15], 1 }
0x16a4   :  { %4477 = vsyncpa [#allocation18], 1 }
0x16a5   :  { %4478 = vsyncpa [#allocation4], 1 }
0x16a6   :  { %4480 = vsyncpa [#allocation4 + $0x1], 1 }

</bundles_post_ra>
